<compile_context>
chip_gen: v7x
topology: tpu7x:2x2x1
jax: 0.10.0
libtpu: 0.0.40
codegen_flags: <defaults>
</compile_context>

<pallas_src>
import functools

import numpy as np
import jax
import jax.numpy as jnp
from jax.experimental import pallas as pl
from jax.experimental.pallas import tpu as pltpu


# ----------------------------------------------------------------------------
# Host-side constant builders (static shapes only; baked in at trace time)
# ----------------------------------------------------------------------------
def _im2col_selector(n, h, w, stride):
    """Stacked 0/1 selector S (9*Mo, Mi).  Block t picks, for every output
    position, the input row of tap t (zero row where the tap hits padding)."""
    ho = (h + 2 - 3) // stride + 1
    wo = (w + 2 - 3) // stride + 1
    mo, mi = n * ho * wo, n * h * w
    s = np.zeros((9 * mo, mi), np.float32)
    for img in range(n):
        for oy in range(ho):
            for ox in range(wo):
                r = (img * ho + oy) * wo + ox
                for kh in range(3):
                    for kw in range(3):
                        yy = oy * stride + kh - 1
                        xx = ox * stride + kw - 1
                        if 0 <= yy < h and 0 <= xx < w:
                            s[(kh * 3 + kw) * mo + r, (img * h + yy) * w + xx] = 1.0
    return jnp.asarray(s, jnp.bfloat16), ho, wo, mo


def _maxpool_selector(n, h, w):
    """Stacked 0/1 selector P (4*Mo_pad, Mi).  Block j picks element j of each
    2x2 window; Mo is padded to a multiple of 8 so in-kernel sublane slices of
    the result stay tile aligned."""
    ho, wo = h // 2, w // 2
    mo, mi = n * ho * wo, n * h * w
    mo_pad = max(8, -(-mo // 8) * 8)
    s = np.zeros((4 * mo_pad, mi), np.float32)
    for img in range(n):
        for oy in range(ho):
            for ox in range(wo):
                r = (img * ho + oy) * wo + ox
                for i in range(2):
                    for j in range(2):
                        s[(i * 2 + j) * mo_pad + r,
                          (img * h + 2 * oy + i) * w + 2 * ox + j] = 1.0
    return jnp.asarray(s, jnp.bfloat16), ho, wo, mo, mo_pad


def _fold_bn(conv_b, bn):
    """Fold eval-mode BatchNorm (running stats) + conv bias into scale/shift."""
    gamma, beta, mean, var, eps = bn
    scale = gamma / jnp.sqrt(var + eps)
    shift = beta + (conv_b - mean) * scale
    return (scale.reshape(-1).astype(jnp.float32),
            shift.reshape(-1).astype(jnp.float32))


def _gelu(x):
    # tanh-approx GELU (EUP-friendly).
    # TODO(synk): PyTorch nn.GELU defaults to exact erf; ~1e-3 max deviation.
    c = 0.7978845608028654  # sqrt(2/pi)
    return 0.5 * x * (1.0 + jnp.tanh(c * (x + 0.044715 * x * x * x)))


# ----------------------------------------------------------------------------
# Fused Pallas kernel: whole network in one invocation
# ----------------------------------------------------------------------------
def _fused_forward_kernel(
    x_ref, sel1_ref, w1_ref, p1_ref,
    sel2_ref, w2_ref, p2_ref,
    sel3_ref, w3_ref, w4_ref, w5_ref, p3_ref,
    wf1_ref, wf2_ref, wf3_ref, aff_ref,
    o_ref, *, dims,
):
    f32, bf16 = jnp.float32, jnp.bfloat16

    def conv_bn_gelu(x, sel_ref, w_ref, m, aff_row, pad_lanes=0):
        # One tall-skinny selection matmul builds all 9 im2col taps at once;
        # the slab then feeds ONE big-K MXU matmul (K = 9*Cin).
        cout = w_ref.shape[1]
        sc = aff_ref[aff_row:aff_row + 1, 0:cout]          # (1, Cout) f32
        sh = aff_ref[aff_row + 1:aff_row + 2, 0:cout]
        z = jnp.dot(sel_ref[...], x, preferred_element_type=f32)   # (9m, Cin)
        pieces = [z[t * m:(t + 1) * m, :] for t in range(9)]        # 8-aligned rows
        if pad_lanes:
            pieces.append(jnp.zeros((m, pad_lanes), f32))
        slab = jnp.concatenate(pieces, axis=1).astype(bf16)         # (m, 9*Cin[+pad])
        y = jnp.dot(slab, w_ref[...], preferred_element_type=f32)   # (m, Cout)
        return _gelu(y * sc + sh).astype(bf16)

    def maxpool(x, p_ref, mo, mo_pad):
        # One stacked selection matmul, then an elementwise max over the four
        # candidate blocks (blocks are 8-row aligned by construction).
        z = jnp.dot(p_ref[...], x, preferred_element_type=f32)      # (4*mo_pad, C)
        m01 = jnp.maximum(z[0:mo_pad], z[mo_pad:2 * mo_pad])
        m23 = jnp.maximum(z[2 * mo_pad:3 * mo_pad], z[3 * mo_pad:4 * mo_pad])
        return jnp.maximum(m01, m23)[0:mo].astype(bf16)

    def dense(x, w_ref, aff_row):
        cout = w_ref.shape[1]
        b = aff_ref[aff_row:aff_row + 1, 0:cout]
        return jnp.dot(x, w_ref[...], preferred_element_type=f32) + b

    x = x_ref[...]                                                   # (N*16*16, 3) bf16

    # ---- features --------------------------------------------------------
    x = conv_bn_gelu(x, sel1_ref, w1_ref, dims["m1"], 0,
                     pad_lanes=dims["pad1"])                         # (N*8*8, 32)
    x = maxpool(x, p1_ref, *dims["p1"])                              # (N*4*4, 32)
    x = conv_bn_gelu(x, sel2_ref, w2_ref, dims["m2"], 2)             # (N*4*4, 64)
    x = maxpool(x, p2_ref, *dims["p2"])                              # (N*2*2, 64)
    x = conv_bn_gelu(x, sel3_ref, w3_ref, dims["m3"], 4)             # (N*2*2, 128)
    x = conv_bn_gelu(x, sel3_ref, w4_ref, dims["m3"], 6)             # (N*2*2, 128)
    x = conv_bn_gelu(x, sel3_ref, w5_ref, dims["m3"], 8)             # (N*2*2, 256)
    x = maxpool(x, p3_ref, *dims["p3"])                              # (N, 256)
    # AdaptiveAvgPool2d((1,1)) over a 1x1 map + flatten is the identity here.

    # ---- classifier (Dropout = identity in eval mode) ---------------------
    x = _gelu(dense(x, wf1_ref, 10)).astype(bf16)                    # (N, 128)
    x = _gelu(dense(x, wf2_ref, 11)).astype(bf16)                    # (N, 64)
    o_ref[...] = jax.nn.sigmoid(dense(x, wf3_ref, 12)).astype(o_ref.dtype)


# ----------------------------------------------------------------------------
# Wrapper: fold params, build constants, single pallas_call
# ----------------------------------------------------------------------------
def degradation_type_detector(x_nchw, params):
    n, cin, h, w = x_nchw.shape
    bf16 = jnp.bfloat16

    # NHWC rows=(n,y,x), lanes=channels; im2col / pooling all happen in-kernel.
    x = jnp.transpose(x_nchw, (0, 2, 3, 1)).reshape(n * h * w, cin).astype(bf16)

    # ---- constant selection matrices (static shapes only) -----------------
    sel1, h1, w1, m1 = _im2col_selector(n, h, w, stride=2)      # conv1: 16 -> 8
    p1, h2, w2, mo1, mp1 = _maxpool_selector(n, h1, w1)          # 8 -> 4
    sel2, _, _, m2 = _im2col_selector(n, h2, w2, stride=1)       # conv2 @ 4x4
    p2, h3, w3, mo2, mp2 = _maxpool_selector(n, h2, w2)          # 4 -> 2
    sel3, _, _, m3 = _im2col_selector(n, h3, w3, stride=1)       # conv3/4/5 @ 2x2
    p3, h4, w4, mo3, mp3 = _maxpool_selector(n, h3, w3)          # 2 -> 1
    assert h4 == 1 and w4 == 1  # AdaptiveAvgPool2d((1,1)) is the identity here

    # ---- weights: big-K conv weights + BN folded into scale/shift ---------
    def conv_w(name, pad_k=0):
        wq, b, bn = params[name]                   # HWIO (3,3,ci,co)
        ci, co = wq.shape[2], wq.shape[3]
        wm = wq.reshape(9 * ci, co)
        if pad_k:
            wm = jnp.pad(wm, ((0, pad_k), (0, 0)))
        sc, sh = _fold_bn(b, bn)
        return wm.astype(bf16), sc, sh

    pad1 = (-(9 * cin)) % 8                        # pad K=27 up to 32
    w1m, sc1, sh1 = conv_w("conv1", pad_k=pad1)
    w2m, sc2, sh2 = conv_w("conv2")
    w3m, sc3, sh3 = conv_w("conv3")
    w4m, sc4, sh4 = conv_w("conv4")
    w5m, sc5, sh5 = conv_w("conv5")

    wf1, bfc1 = params["fc1"]
    wf2, bfc2 = params["fc2"]
    wf3, bfc3 = params["fc3"]
    wf1, wf2, wf3 = wf1.astype(bf16), wf2.astype(bf16), wf3.astype(bf16)

    # All per-channel epilogue vectors packed into ONE (13, 256) f32 operand:
    # rows 0-9: (scale, shift) for conv1..5; rows 10-12: fc1..3 biases.
    rows = [sc1, sh1, sc2, sh2, sc3, sh3, sc4, sh4, sc5, sh5,
            bfc1.reshape(-1), bfc2.reshape(-1), bfc3.reshape(-1)]
    width = max(int(v.shape[0]) for v in rows)
    aff = jnp.stack([jnp.pad(v.astype(jnp.float32), (0, width - int(v.shape[0])))
                     for v in rows])

    dims = dict(m1=m1, m2=m2, m3=m3, pad1=pad1,
                p1=(mo1, mp1), p2=(mo2, mp2), p3=(mo3, mp3))

    args = (x, sel1, w1m, p1, sel2, w2m, p2, sel3, w3m, w4m, w5m, p3,
            wf1, wf2, wf3, aff)
    in_specs = [pl.BlockSpec(a.shape, lambda i: (0, 0)) for a in args]

    kernel = functools.partial(_fused_forward_kernel, dims=dims)
    return pl.pallas_call(
        kernel,
        out_shape=jax.ShapeDtypeStruct((n, 1), jnp.float32),
        grid=(1,),
        in_specs=in_specs,
        out_specs=pl.BlockSpec((n, 1), lambda i: (0, 0)),
        compiler_params=pltpu.CompilerParams(
            dimension_semantics=("arbitrary",)),
    )(*args)


# ----------------------------------------------------------------------------
# Pure-JAX reference (same eval-mode semantics, f32) for a loose sanity check
# ----------------------------------------------------------------------------
def _reference_forward(x_nchw, params):
    x = jnp.transpose(x_nchw, (0, 2, 3, 1)).astype(jnp.float32)

    def conv_bn_gelu(x, name, stride):
        wq, b, bn = params[name]
        y = jax.lax.conv_general_dilated(
            x, wq.astype(jnp.float32), (stride, stride), ((1, 1), (1, 1)),
            dimension_numbers=("NHWC", "HWIO", "NHWC")) + b
        gamma, beta, mean, var, eps = bn
        y = (y - mean) / jnp.sqrt(var + eps) * gamma + beta
        return _gelu(y)

    def maxpool(x):
        return jax.lax.reduce_window(
            x, jnp.array(-jnp.inf, x.dtype), jax.lax.max,
            (1, 2, 2, 1), (1, 2, 2, 1), "VALID")

    x = conv_bn_gelu(x, "conv1", 2); x = maxpool(x)
    x = conv_bn_gelu(x, "conv2", 1); x = maxpool(x)
    x = conv_bn_gelu(x, "conv3", 1)
    x = conv_bn_gelu(x, "conv4", 1)
    x = conv_bn_gelu(x, "conv5", 1); x = maxpool(x)
    x = jnp.mean(x, axis=(1, 2))                                  # (N, 256)
    wf1, b1 = params["fc1"]; wf2, b2 = params["fc2"]; wf3, b3 = params["fc3"]
    x = _gelu(x @ wf1.astype(jnp.float32) + b1)
    x = _gelu(x @ wf2.astype(jnp.float32) + b2)
    return jax.nn.sigmoid(x @ wf3.astype(jnp.float32) + b3)


# ----------------------------------------------------------------------------
# Parameters (deterministic synthetic init, PyTorch-equivalent layout choices)
# ----------------------------------------------------------------------------
def init_params(key):
    params = {}
    conv_defs = [
        ("conv1", 3, 32), ("conv2", 32, 64), ("conv3", 64, 128),
        ("conv4", 128, 128), ("conv5", 128, 256),
    ]
    fc_defs = [("fc1", 256, 128), ("fc2", 128, 64), ("fc3", 64, 1)]
    keys = jax.random.split(key, 2 * (len(conv_defs) + len(fc_defs)))
    ki = 0
    for name, cin, cout in conv_defs:
        wq = 0.05 * jax.random.normal(keys[ki], (3, 3, cin, cout), jnp.float32)
        b = 0.01 * jax.random.normal(keys[ki + 1], (cout,), jnp.float32)
        ki += 2
        bn = (jnp.ones((cout,), jnp.float32),    # gamma
              jnp.zeros((cout,), jnp.float32),   # beta
              jnp.zeros((cout,), jnp.float32),   # running_mean
              jnp.ones((cout,), jnp.float32),    # running_var
              1e-5)                              # eps
        params[name] = (wq, b, bn)
    for name, fin, fout in fc_defs:
        wq = 0.05 * jax.random.normal(keys[ki], (fin, fout), jnp.float32)
        b = 0.01 * jax.random.normal(keys[ki + 1], (fout,), jnp.float32)
        ki += 2
        params[name] = (wq, b)
    return params


if __name__ == "__main__":
    key = jax.random.PRNGKey(0)
    k_x, k_p = jax.random.split(key)
    x = jax.random.normal(k_x, (2, 3, 16, 16), jnp.float32)  # NCHW, like PyTorch
    params = init_params(k_p)

    fwd = jax.jit(degradation_type_detector)
    out = jax.block_until_ready(fwd(x, params))

    assert out.shape == (2, 1), out.shape
    assert bool(jnp.all(jnp.isfinite(out)))
    assert bool(jnp.all((out >= 0.0) & (out <= 1.0)))        # sigmoid range

    ref = _reference_forward(x, params)
    assert float(jnp.max(jnp.abs(out - ref))) < 3e-2, (out, ref)

    print("KERNEL_OK")
</pallas_src>

<mosaic_0001>
module attributes {stable_mosaic.version = 11 : i64} {
  func.func @_fused_forward_kernel(%arg0: i32, %arg1: memref<512x3xbf16, #tpu.memory_space<vmem>>, %arg2: memref<1152x512xbf16, #tpu.memory_space<vmem>>, %arg3: memref<32x32xbf16, #tpu.memory_space<vmem>>, %arg4: memref<128x128xbf16, #tpu.memory_space<vmem>>, %arg5: memref<288x32xbf16, #tpu.memory_space<vmem>>, %arg6: memref<288x64xbf16, #tpu.memory_space<vmem>>, %arg7: memref<32x32xbf16, #tpu.memory_space<vmem>>, %arg8: memref<72x8xbf16, #tpu.memory_space<vmem>>, %arg9: memref<576x128xbf16, #tpu.memory_space<vmem>>, %arg10: memref<1152x128xbf16, #tpu.memory_space<vmem>>, %arg11: memref<1152x256xbf16, #tpu.memory_space<vmem>>, %arg12: memref<32x8xbf16, #tpu.memory_space<vmem>>, %arg13: memref<256x128xbf16, #tpu.memory_space<vmem>>, %arg14: memref<128x64xbf16, #tpu.memory_space<vmem>>, %arg15: memref<64x1xbf16, #tpu.memory_space<vmem>>, %arg16: memref<13x256xf32, #tpu.memory_space<vmem>>, %arg17: memref<2x1xf32, #tpu.memory_space<vmem>>) attributes {dimension_semantics = [#tpu.dimension_semantics<arbitrary>], iteration_bounds = array<i64: 1>, scalar_prefetch = 0 : i64, scratch_operands = 0 : i64, tpu.core_type = #tpu.core_type<tc>, window_params = [{pipeline_mode = #tpu.pipeline_mode<synchronous>, transform_indices = @transform_0, window_bounds = array<i64: 512, 3>}, {pipeline_mode = #tpu.pipeline_mode<synchronous>, transform_indices = @transform_1, window_bounds = array<i64: 1152, 512>}, {pipeline_mode = #tpu.pipeline_mode<synchronous>, transform_indices = @transform_2, window_bounds = array<i64: 32, 32>}, {pipeline_mode = #tpu.pipeline_mode<synchronous>, transform_indices = @transform_3, window_bounds = array<i64: 128, 128>}, {pipeline_mode = #tpu.pipeline_mode<synchronous>, transform_indices = @transform_4, window_bounds = array<i64: 288, 32>}, {pipeline_mode = #tpu.pipeline_mode<synchronous>, transform_indices = @transform_5, window_bounds = array<i64: 288, 64>}, {pipeline_mode = #tpu.pipeline_mode<synchronous>, transform_indices = @transform_6, window_bounds = array<i64: 32, 32>}, {pipeline_mode = #tpu.pipeline_mode<synchronous>, transform_indices = @transform_7, window_bounds = array<i64: 72, 8>}, {pipeline_mode = #tpu.pipeline_mode<synchronous>, transform_indices = @transform_8, window_bounds = array<i64: 576, 128>}, {pipeline_mode = #tpu.pipeline_mode<synchronous>, transform_indices = @transform_9, window_bounds = array<i64: 1152, 128>}, {pipeline_mode = #tpu.pipeline_mode<synchronous>, transform_indices = @transform_10, window_bounds = array<i64: 1152, 256>}, {pipeline_mode = #tpu.pipeline_mode<synchronous>, transform_indices = @transform_11, window_bounds = array<i64: 32, 8>}, {pipeline_mode = #tpu.pipeline_mode<synchronous>, transform_indices = @transform_12, window_bounds = array<i64: 256, 128>}, {pipeline_mode = #tpu.pipeline_mode<synchronous>, transform_indices = @transform_13, window_bounds = array<i64: 128, 64>}, {pipeline_mode = #tpu.pipeline_mode<synchronous>, transform_indices = @transform_14, window_bounds = array<i64: 64, 1>}, {pipeline_mode = #tpu.pipeline_mode<synchronous>, transform_indices = @transform_15, window_bounds = array<i64: 13, 256>}, {pipeline_mode = #tpu.pipeline_mode<synchronous>, transform_indices = @transform_16, window_bounds = array<i64: 2, 1>}]} {
    %c0 = arith.constant 0 : index
    %c0_0 = arith.constant 0 : index
    %0 = vector.load %arg1[%c0, %c0_0] : memref<512x3xbf16, #tpu.memory_space<vmem>>, vector<512x3xbf16>
    %c0_1 = arith.constant 0 : index
    %c0_2 = arith.constant 0 : index
    %1 = vector.load %arg16[%c0_1, %c0_2] : memref<13x256xf32, #tpu.memory_space<vmem>>, vector<1x32xf32>
    %c1 = arith.constant 1 : index
    %c0_3 = arith.constant 0 : index
    %2 = vector.load %arg16[%c1, %c0_3] : memref<13x256xf32, #tpu.memory_space<vmem>>, vector<1x32xf32>
    %c0_4 = arith.constant 0 : index
    %c0_5 = arith.constant 0 : index
    %3 = vector.load %arg2[%c0_4, %c0_5] : memref<1152x512xbf16, #tpu.memory_space<vmem>>, vector<1152x512xbf16>
    %cst = arith.constant dense<0.000000e+00> : vector<1152x3xf32>
    %4 = tpu.matmul %3, %0, %cst {dimension_numbers = #tpu.dot_dimension_numbers<[1], [0], [0], [1], [0, 0, 1, 1], [], []>} : vector<1152x512xbf16>, vector<512x3xbf16>, vector<1152x3xf32> -> vector<1152x3xf32>
    %5 = vector.extract_strided_slice %4 {offsets = [0, 0], sizes = [128, 3], strides = [1, 1]} : vector<1152x3xf32> to vector<128x3xf32>
    %6 = vector.extract_strided_slice %4 {offsets = [128, 0], sizes = [128, 3], strides = [1, 1]} : vector<1152x3xf32> to vector<128x3xf32>
    %7 = vector.extract_strided_slice %4 {offsets = [256, 0], sizes = [128, 3], strides = [1, 1]} : vector<1152x3xf32> to vector<128x3xf32>
    %8 = vector.extract_strided_slice %4 {offsets = [384, 0], sizes = [128, 3], strides = [1, 1]} : vector<1152x3xf32> to vector<128x3xf32>
    %9 = vector.extract_strided_slice %4 {offsets = [512, 0], sizes = [128, 3], strides = [1, 1]} : vector<1152x3xf32> to vector<128x3xf32>
    %10 = vector.extract_strided_slice %4 {offsets = [640, 0], sizes = [128, 3], strides = [1, 1]} : vector<1152x3xf32> to vector<128x3xf32>
    %11 = vector.extract_strided_slice %4 {offsets = [768, 0], sizes = [128, 3], strides = [1, 1]} : vector<1152x3xf32> to vector<128x3xf32>
    %12 = vector.extract_strided_slice %4 {offsets = [896, 0], sizes = [128, 3], strides = [1, 1]} : vector<1152x3xf32> to vector<128x3xf32>
    %13 = vector.extract_strided_slice %4 {offsets = [1024, 0], sizes = [128, 3], strides = [1, 1]} : vector<1152x3xf32> to vector<128x3xf32>
    %cst_6 = arith.constant 0.000000e+00 : f32
    %14 = vector.broadcast %cst_6 : f32 to vector<128x5xf32>
    %15 = tpu.concatenate %5, %6, %7, %8, %9, %10, %11, %12, %13, %14 in 1 : vector<128x3xf32>, vector<128x3xf32>, vector<128x3xf32>, vector<128x3xf32>, vector<128x3xf32>, vector<128x3xf32>, vector<128x3xf32>, vector<128x3xf32>, vector<128x3xf32>, vector<128x5xf32> -> vector<128x32xf32>
    %16 = arith.truncf %15 : vector<128x32xf32> to vector<128x32xbf16>
    %c0_7 = arith.constant 0 : index
    %c0_8 = arith.constant 0 : index
    %17 = vector.load %arg3[%c0_7, %c0_8] : memref<32x32xbf16, #tpu.memory_space<vmem>>, vector<32x32xbf16>
    %cst_9 = arith.constant dense<0.000000e+00> : vector<128x32xf32>
    %18 = tpu.matmul %16, %17, %cst_9 {dimension_numbers = #tpu.dot_dimension_numbers<[1], [0], [0], [1], [0, 0, 1, 1], [], []>} : vector<128x32xbf16>, vector<32x32xbf16>, vector<128x32xf32> -> vector<128x32xf32>
    %19 = vector.broadcast %1 : vector<1x32xf32> to vector<128x32xf32>
    %20 = arith.mulf %18, %19 : vector<128x32xf32>
    %21 = vector.broadcast %2 : vector<1x32xf32> to vector<128x32xf32>
    %22 = arith.addf %20, %21 : vector<128x32xf32>
    %cst_10 = arith.constant 5.000000e-01 : f32
    %23 = vector.broadcast %cst_10 : f32 to vector<128x32xf32>
    %24 = arith.mulf %23, %22 : vector<128x32xf32>
    %cst_11 = arith.constant 4.471500e-02 : f32
    %25 = vector.broadcast %cst_11 : f32 to vector<128x32xf32>
    %26 = arith.mulf %25, %22 : vector<128x32xf32>
    %27 = arith.mulf %26, %22 : vector<128x32xf32>
    %28 = arith.mulf %27, %22 : vector<128x32xf32>
    %29 = arith.addf %22, %28 : vector<128x32xf32>
    %cst_12 = arith.constant 0.797884583 : f32
    %30 = vector.broadcast %cst_12 : f32 to vector<128x32xf32>
    %31 = arith.mulf %30, %29 : vector<128x32xf32>
    %32 = math.tanh %31 : vector<128x32xf32>
    %cst_13 = arith.constant 1.000000e+00 : f32
    %33 = vector.broadcast %cst_13 : f32 to vector<128x32xf32>
    %34 = arith.addf %33, %32 : vector<128x32xf32>
    %35 = arith.mulf %24, %34 : vector<128x32xf32>
    %36 = arith.truncf %35 : vector<128x32xf32> to vector<128x32xbf16>
    %c0_14 = arith.constant 0 : index
    %c0_15 = arith.constant 0 : index
    %37 = vector.load %arg4[%c0_14, %c0_15] : memref<128x128xbf16, #tpu.memory_space<vmem>>, vector<128x128xbf16>
    %cst_16 = arith.constant dense<0.000000e+00> : vector<128x32xf32>
    %38 = tpu.matmul %37, %36, %cst_16 {dimension_numbers = #tpu.dot_dimension_numbers<[1], [0], [0], [1], [0, 0, 1, 1], [], []>} : vector<128x128xbf16>, vector<128x32xbf16>, vector<128x32xf32> -> vector<128x32xf32>
    %39 = vector.extract_strided_slice %38 {offsets = [0, 0], sizes = [32, 32], strides = [1, 1]} : vector<128x32xf32> to vector<32x32xf32>
    %40 = vector.extract_strided_slice %38 {offsets = [32, 0], sizes = [32, 32], strides = [1, 1]} : vector<128x32xf32> to vector<32x32xf32>
    %41 = arith.maximumf %39, %40 : vector<32x32xf32>
    %42 = vector.extract_strided_slice %38 {offsets = [64, 0], sizes = [32, 32], strides = [1, 1]} : vector<128x32xf32> to vector<32x32xf32>
    %43 = vector.extract_strided_slice %38 {offsets = [96, 0], sizes = [32, 32], strides = [1, 1]} : vector<128x32xf32> to vector<32x32xf32>
    %44 = arith.maximumf %42, %43 : vector<32x32xf32>
    %45 = arith.maximumf %41, %44 : vector<32x32xf32>
    %46 = arith.truncf %45 : vector<32x32xf32> to vector<32x32xbf16>
    %c2 = arith.constant 2 : index
    %c0_17 = arith.constant 0 : index
    %47 = vector.load %arg16[%c2, %c0_17] : memref<13x256xf32, #tpu.memory_space<vmem>>, vector<1x64xf32>
    %c3 = arith.constant 3 : index
    %c0_18 = arith.constant 0 : index
    %48 = vector.load %arg16[%c3, %c0_18] : memref<13x256xf32, #tpu.memory_space<vmem>>, vector<1x64xf32>
    %c0_19 = arith.constant 0 : index
    %c0_20 = arith.constant 0 : index
    %49 = vector.load %arg5[%c0_19, %c0_20] : memref<288x32xbf16, #tpu.memory_space<vmem>>, vector<288x32xbf16>
    %cst_21 = arith.constant dense<0.000000e+00> : vector<288x32xf32>
    %50 = tpu.matmul %49, %46, %cst_21 {dimension_numbers = #tpu.dot_dimension_numbers<[1], [0], [0], [1], [0, 0, 1, 1], [], []>} : vector<288x32xbf16>, vector<32x32xbf16>, vector<288x32xf32> -> vector<288x32xf32>
    %51 = vector.extract_strided_slice %50 {offsets = [0, 0], sizes = [32, 32], strides = [1, 1]} : vector<288x32xf32> to vector<32x32xf32>
    %52 = vector.extract_strided_slice %50 {offsets = [32, 0], sizes = [32, 32], strides = [1, 1]} : vector<288x32xf32> to vector<32x32xf32>
    %53 = vector.extract_strided_slice %50 {offsets = [64, 0], sizes = [32, 32], strides = [1, 1]} : vector<288x32xf32> to vector<32x32xf32>
    %54 = vector.extract_strided_slice %50 {offsets = [96, 0], sizes = [32, 32], strides = [1, 1]} : vector<288x32xf32> to vector<32x32xf32>
    %55 = vector.extract_strided_slice %50 {offsets = [128, 0], sizes = [32, 32], strides = [1, 1]} : vector<288x32xf32> to vector<32x32xf32>
    %56 = vector.extract_strided_slice %50 {offsets = [160, 0], sizes = [32, 32], strides = [1, 1]} : vector<288x32xf32> to vector<32x32xf32>
    %57 = vector.extract_strided_slice %50 {offsets = [192, 0], sizes = [32, 32], strides = [1, 1]} : vector<288x32xf32> to vector<32x32xf32>
    %58 = vector.extract_strided_slice %50 {offsets = [224, 0], sizes = [32, 32], strides = [1, 1]} : vector<288x32xf32> to vector<32x32xf32>
    %59 = vector.extract_strided_slice %50 {offsets = [256, 0], sizes = [32, 32], strides = [1, 1]} : vector<288x32xf32> to vector<32x32xf32>
    %60 = tpu.concatenate %51, %52, %53, %54, %55, %56, %57, %58, %59 in 1 : vector<32x32xf32>, vector<32x32xf32>, vector<32x32xf32>, vector<32x32xf32>, vector<32x32xf32>, vector<32x32xf32>, vector<32x32xf32>, vector<32x32xf32>, vector<32x32xf32> -> vector<32x288xf32>
    %61 = arith.truncf %60 : vector<32x288xf32> to vector<32x288xbf16>
    %c0_22 = arith.constant 0 : index
    %c0_23 = arith.constant 0 : index
    %62 = vector.load %arg6[%c0_22, %c0_23] : memref<288x64xbf16, #tpu.memory_space<vmem>>, vector<288x64xbf16>
    %cst_24 = arith.constant dense<0.000000e+00> : vector<32x64xf32>
    %63 = tpu.matmul %61, %62, %cst_24 {dimension_numbers = #tpu.dot_dimension_numbers<[1], [0], [0], [1], [0, 0, 1, 1], [], []>} : vector<32x288xbf16>, vector<288x64xbf16>, vector<32x64xf32> -> vector<32x64xf32>
    %64 = vector.broadcast %47 : vector<1x64xf32> to vector<32x64xf32>
    %65 = arith.mulf %63, %64 : vector<32x64xf32>
    %66 = vector.broadcast %48 : vector<1x64xf32> to vector<32x64xf32>
    %67 = arith.addf %65, %66 : vector<32x64xf32>
    %cst_25 = arith.constant 5.000000e-01 : f32
    %68 = vector.broadcast %cst_25 : f32 to vector<32x64xf32>
    %69 = arith.mulf %68, %67 : vector<32x64xf32>
    %cst_26 = arith.constant 4.471500e-02 : f32
    %70 = vector.broadcast %cst_26 : f32 to vector<32x64xf32>
    %71 = arith.mulf %70, %67 : vector<32x64xf32>
    %72 = arith.mulf %71, %67 : vector<32x64xf32>
    %73 = arith.mulf %72, %67 : vector<32x64xf32>
    %74 = arith.addf %67, %73 : vector<32x64xf32>
    %cst_27 = arith.constant 0.797884583 : f32
    %75 = vector.broadcast %cst_27 : f32 to vector<32x64xf32>
    %76 = arith.mulf %75, %74 : vector<32x64xf32>
    %77 = math.tanh %76 : vector<32x64xf32>
    %cst_28 = arith.constant 1.000000e+00 : f32
    %78 = vector.broadcast %cst_28 : f32 to vector<32x64xf32>
    %79 = arith.addf %78, %77 : vector<32x64xf32>
    %80 = arith.mulf %69, %79 : vector<32x64xf32>
    %81 = arith.truncf %80 : vector<32x64xf32> to vector<32x64xbf16>
    %c0_29 = arith.constant 0 : index
    %c0_30 = arith.constant 0 : index
    %82 = vector.load %arg7[%c0_29, %c0_30] : memref<32x32xbf16, #tpu.memory_space<vmem>>, vector<32x32xbf16>
    %cst_31 = arith.constant dense<0.000000e+00> : vector<32x64xf32>
    %83 = tpu.matmul %82, %81, %cst_31 {dimension_numbers = #tpu.dot_dimension_numbers<[1], [0], [0], [1], [0, 0, 1, 1], [], []>} : vector<32x32xbf16>, vector<32x64xbf16>, vector<32x64xf32> -> vector<32x64xf32>
    %84 = vector.extract_strided_slice %83 {offsets = [0, 0], sizes = [8, 64], strides = [1, 1]} : vector<32x64xf32> to vector<8x64xf32>
    %85 = vector.extract_strided_slice %83 {offsets = [8, 0], sizes = [8, 64], strides = [1, 1]} : vector<32x64xf32> to vector<8x64xf32>
    %86 = arith.maximumf %84, %85 : vector<8x64xf32>
    %87 = vector.extract_strided_slice %83 {offsets = [16, 0], sizes = [8, 64], strides = [1, 1]} : vector<32x64xf32> to vector<8x64xf32>
    %88 = vector.extract_strided_slice %83 {offsets = [24, 0], sizes = [8, 64], strides = [1, 1]} : vector<32x64xf32> to vector<8x64xf32>
    %89 = arith.maximumf %87, %88 : vector<8x64xf32>
    %90 = arith.maximumf %86, %89 : vector<8x64xf32>
    %91 = arith.truncf %90 : vector<8x64xf32> to vector<8x64xbf16>
    %c4 = arith.constant 4 : index
    %c0_32 = arith.constant 0 : index
    %92 = vector.load %arg16[%c4, %c0_32] : memref<13x256xf32, #tpu.memory_space<vmem>>, vector<1x128xf32>
    %c5 = arith.constant 5 : index
    %c0_33 = arith.constant 0 : index
    %93 = vector.load %arg16[%c5, %c0_33] : memref<13x256xf32, #tpu.memory_space<vmem>>, vector<1x128xf32>
    %c0_34 = arith.constant 0 : index
    %c0_35 = arith.constant 0 : index
    %94 = vector.load %arg8[%c0_34, %c0_35] : memref<72x8xbf16, #tpu.memory_space<vmem>>, vector<72x8xbf16>
    %cst_36 = arith.constant dense<0.000000e+00> : vector<72x64xf32>
    %95 = tpu.matmul %94, %91, %cst_36 {dimension_numbers = #tpu.dot_dimension_numbers<[1], [0], [0], [1], [0, 0, 1, 1], [], []>} : vector<72x8xbf16>, vector<8x64xbf16>, vector<72x64xf32> -> vector<72x64xf32>
    %96 = vector.extract_strided_slice %95 {offsets = [0, 0], sizes = [8, 64], strides = [1, 1]} : vector<72x64xf32> to vector<8x64xf32>
    %97 = vector.extract_strided_slice %95 {offsets = [8, 0], sizes = [8, 64], strides = [1, 1]} : vector<72x64xf32> to vector<8x64xf32>
    %98 = vector.extract_strided_slice %95 {offsets = [16, 0], sizes = [8, 64], strides = [1, 1]} : vector<72x64xf32> to vector<8x64xf32>
    %99 = vector.extract_strided_slice %95 {offsets = [24, 0], sizes = [8, 64], strides = [1, 1]} : vector<72x64xf32> to vector<8x64xf32>
    %100 = vector.extract_strided_slice %95 {offsets = [32, 0], sizes = [8, 64], strides = [1, 1]} : vector<72x64xf32> to vector<8x64xf32>
    %101 = vector.extract_strided_slice %95 {offsets = [40, 0], sizes = [8, 64], strides = [1, 1]} : vector<72x64xf32> to vector<8x64xf32>
    %102 = vector.extract_strided_slice %95 {offsets = [48, 0], sizes = [8, 64], strides = [1, 1]} : vector<72x64xf32> to vector<8x64xf32>
    %103 = vector.extract_strided_slice %95 {offsets = [56, 0], sizes = [8, 64], strides = [1, 1]} : vector<72x64xf32> to vector<8x64xf32>
    %104 = vector.extract_strided_slice %95 {offsets = [64, 0], sizes = [8, 64], strides = [1, 1]} : vector<72x64xf32> to vector<8x64xf32>
    %105 = tpu.concatenate %96, %97, %98, %99, %100, %101, %102, %103, %104 in 1 : vector<8x64xf32>, vector<8x64xf32>, vector<8x64xf32>, vector<8x64xf32>, vector<8x64xf32>, vector<8x64xf32>, vector<8x64xf32>, vector<8x64xf32>, vector<8x64xf32> -> vector<8x576xf32>
    %106 = arith.truncf %105 : vector<8x576xf32> to vector<8x576xbf16>
    %c0_37 = arith.constant 0 : index
    %c0_38 = arith.constant 0 : index
    %107 = vector.load %arg9[%c0_37, %c0_38] : memref<576x128xbf16, #tpu.memory_space<vmem>>, vector<576x128xbf16>
    %cst_39 = arith.constant dense<0.000000e+00> : vector<8x128xf32>
    %108 = tpu.matmul %106, %107, %cst_39 {dimension_numbers = #tpu.dot_dimension_numbers<[1], [0], [0], [1], [0, 0, 1, 1], [], []>} : vector<8x576xbf16>, vector<576x128xbf16>, vector<8x128xf32> -> vector<8x128xf32>
    %109 = vector.broadcast %92 : vector<1x128xf32> to vector<8x128xf32>
    %110 = arith.mulf %108, %109 : vector<8x128xf32>
    %111 = vector.broadcast %93 : vector<1x128xf32> to vector<8x128xf32>
    %112 = arith.addf %110, %111 : vector<8x128xf32>
    %cst_40 = arith.constant 5.000000e-01 : f32
    %113 = vector.broadcast %cst_40 : f32 to vector<8x128xf32>
    %114 = arith.mulf %113, %112 : vector<8x128xf32>
    %cst_41 = arith.constant 4.471500e-02 : f32
    %115 = vector.broadcast %cst_41 : f32 to vector<8x128xf32>
    %116 = arith.mulf %115, %112 : vector<8x128xf32>
    %117 = arith.mulf %116, %112 : vector<8x128xf32>
    %118 = arith.mulf %117, %112 : vector<8x128xf32>
    %119 = arith.addf %112, %118 : vector<8x128xf32>
    %cst_42 = arith.constant 0.797884583 : f32
    %120 = vector.broadcast %cst_42 : f32 to vector<8x128xf32>
    %121 = arith.mulf %120, %119 : vector<8x128xf32>
    %122 = math.tanh %121 : vector<8x128xf32>
    %cst_43 = arith.constant 1.000000e+00 : f32
    %123 = vector.broadcast %cst_43 : f32 to vector<8x128xf32>
    %124 = arith.addf %123, %122 : vector<8x128xf32>
    %125 = arith.mulf %114, %124 : vector<8x128xf32>
    %126 = arith.truncf %125 : vector<8x128xf32> to vector<8x128xbf16>
    %c6 = arith.constant 6 : index
    %c0_44 = arith.constant 0 : index
    %127 = vector.load %arg16[%c6, %c0_44] : memref<13x256xf32, #tpu.memory_space<vmem>>, vector<1x128xf32>
    %c7 = arith.constant 7 : index
    %c0_45 = arith.constant 0 : index
    %128 = vector.load %arg16[%c7, %c0_45] : memref<13x256xf32, #tpu.memory_space<vmem>>, vector<1x128xf32>
    %c0_46 = arith.constant 0 : index
    %c0_47 = arith.constant 0 : index
    %129 = vector.load %arg8[%c0_46, %c0_47] : memref<72x8xbf16, #tpu.memory_space<vmem>>, vector<72x8xbf16>
    %cst_48 = arith.constant dense<0.000000e+00> : vector<72x128xf32>
    %130 = tpu.matmul %129, %126, %cst_48 {dimension_numbers = #tpu.dot_dimension_numbers<[1], [0], [0], [1], [0, 0, 1, 1], [], []>} : vector<72x8xbf16>, vector<8x128xbf16>, vector<72x128xf32> -> vector<72x128xf32>
    %131 = vector.extract_strided_slice %130 {offsets = [0, 0], sizes = [8, 128], strides = [1, 1]} : vector<72x128xf32> to vector<8x128xf32>
    %132 = vector.extract_strided_slice %130 {offsets = [8, 0], sizes = [8, 128], strides = [1, 1]} : vector<72x128xf32> to vector<8x128xf32>
    %133 = vector.extract_strided_slice %130 {offsets = [16, 0], sizes = [8, 128], strides = [1, 1]} : vector<72x128xf32> to vector<8x128xf32>
    %134 = vector.extract_strided_slice %130 {offsets = [24, 0], sizes = [8, 128], strides = [1, 1]} : vector<72x128xf32> to vector<8x128xf32>
    %135 = vector.extract_strided_slice %130 {offsets = [32, 0], sizes = [8, 128], strides = [1, 1]} : vector<72x128xf32> to vector<8x128xf32>
    %136 = vector.extract_strided_slice %130 {offsets = [40, 0], sizes = [8, 128], strides = [1, 1]} : vector<72x128xf32> to vector<8x128xf32>
    %137 = vector.extract_strided_slice %130 {offsets = [48, 0], sizes = [8, 128], strides = [1, 1]} : vector<72x128xf32> to vector<8x128xf32>
    %138 = vector.extract_strided_slice %130 {offsets = [56, 0], sizes = [8, 128], strides = [1, 1]} : vector<72x128xf32> to vector<8x128xf32>
    %139 = vector.extract_strided_slice %130 {offsets = [64, 0], sizes = [8, 128], strides = [1, 1]} : vector<72x128xf32> to vector<8x128xf32>
    %140 = tpu.concatenate %131, %132, %133, %134, %135, %136, %137, %138, %139 in 1 : vector<8x128xf32>, vector<8x128xf32>, vector<8x128xf32>, vector<8x128xf32>, vector<8x128xf32>, vector<8x128xf32>, vector<8x128xf32>, vector<8x128xf32>, vector<8x128xf32> -> vector<8x1152xf32>
    %141 = arith.truncf %140 : vector<8x1152xf32> to vector<8x1152xbf16>
    %c0_49 = arith.constant 0 : index
    %c0_50 = arith.constant 0 : index
    %142 = vector.load %arg10[%c0_49, %c0_50] : memref<1152x128xbf16, #tpu.memory_space<vmem>>, vector<1152x128xbf16>
    %cst_51 = arith.constant dense<0.000000e+00> : vector<8x128xf32>
    %143 = tpu.matmul %141, %142, %cst_51 {dimension_numbers = #tpu.dot_dimension_numbers<[1], [0], [0], [1], [0, 0, 1, 1], [], []>} : vector<8x1152xbf16>, vector<1152x128xbf16>, vector<8x128xf32> -> vector<8x128xf32>
    %144 = vector.broadcast %127 : vector<1x128xf32> to vector<8x128xf32>
    %145 = arith.mulf %143, %144 : vector<8x128xf32>
    %146 = vector.broadcast %128 : vector<1x128xf32> to vector<8x128xf32>
    %147 = arith.addf %145, %146 : vector<8x128xf32>
    %cst_52 = arith.constant 5.000000e-01 : f32
    %148 = vector.broadcast %cst_52 : f32 to vector<8x128xf32>
    %149 = arith.mulf %148, %147 : vector<8x128xf32>
    %cst_53 = arith.constant 4.471500e-02 : f32
    %150 = vector.broadcast %cst_53 : f32 to vector<8x128xf32>
    %151 = arith.mulf %150, %147 : vector<8x128xf32>
    %152 = arith.mulf %151, %147 : vector<8x128xf32>
    %153 = arith.mulf %152, %147 : vector<8x128xf32>
    %154 = arith.addf %147, %153 : vector<8x128xf32>
    %cst_54 = arith.constant 0.797884583 : f32
    %155 = vector.broadcast %cst_54 : f32 to vector<8x128xf32>
    %156 = arith.mulf %155, %154 : vector<8x128xf32>
    %157 = math.tanh %156 : vector<8x128xf32>
    %cst_55 = arith.constant 1.000000e+00 : f32
    %158 = vector.broadcast %cst_55 : f32 to vector<8x128xf32>
    %159 = arith.addf %158, %157 : vector<8x128xf32>
    %160 = arith.mulf %149, %159 : vector<8x128xf32>
    %161 = arith.truncf %160 : vector<8x128xf32> to vector<8x128xbf16>
    %c8 = arith.constant 8 : index
    %c0_56 = arith.constant 0 : index
    %162 = vector.load %arg16[%c8, %c0_56] : memref<13x256xf32, #tpu.memory_space<vmem>>, vector<1x256xf32>
    %c9 = arith.constant 9 : index
    %c0_57 = arith.constant 0 : index
    %163 = vector.load %arg16[%c9, %c0_57] : memref<13x256xf32, #tpu.memory_space<vmem>>, vector<1x256xf32>
    %c0_58 = arith.constant 0 : index
    %c0_59 = arith.constant 0 : index
    %164 = vector.load %arg8[%c0_58, %c0_59] : memref<72x8xbf16, #tpu.memory_space<vmem>>, vector<72x8xbf16>
    %cst_60 = arith.constant dense<0.000000e+00> : vector<72x128xf32>
    %165 = tpu.matmul %164, %161, %cst_60 {dimension_numbers = #tpu.dot_dimension_numbers<[1], [0], [0], [1], [0, 0, 1, 1], [], []>} : vector<72x8xbf16>, vector<8x128xbf16>, vector<72x128xf32> -> vector<72x128xf32>
    %166 = vector.extract_strided_slice %165 {offsets = [0, 0], sizes = [8, 128], strides = [1, 1]} : vector<72x128xf32> to vector<8x128xf32>
    %167 = vector.extract_strided_slice %165 {offsets = [8, 0], sizes = [8, 128], strides = [1, 1]} : vector<72x128xf32> to vector<8x128xf32>
    %168 = vector.extract_strided_slice %165 {offsets = [16, 0], sizes = [8, 128], strides = [1, 1]} : vector<72x128xf32> to vector<8x128xf32>
    %169 = vector.extract_strided_slice %165 {offsets = [24, 0], sizes = [8, 128], strides = [1, 1]} : vector<72x128xf32> to vector<8x128xf32>
    %170 = vector.extract_strided_slice %165 {offsets = [32, 0], sizes = [8, 128], strides = [1, 1]} : vector<72x128xf32> to vector<8x128xf32>
    %171 = vector.extract_strided_slice %165 {offsets = [40, 0], sizes = [8, 128], strides = [1, 1]} : vector<72x128xf32> to vector<8x128xf32>
    %172 = vector.extract_strided_slice %165 {offsets = [48, 0], sizes = [8, 128], strides = [1, 1]} : vector<72x128xf32> to vector<8x128xf32>
    %173 = vector.extract_strided_slice %165 {offsets = [56, 0], sizes = [8, 128], strides = [1, 1]} : vector<72x128xf32> to vector<8x128xf32>
    %174 = vector.extract_strided_slice %165 {offsets = [64, 0], sizes = [8, 128], strides = [1, 1]} : vector<72x128xf32> to vector<8x128xf32>
    %175 = tpu.concatenate %166, %167, %168, %169, %170, %171, %172, %173, %174 in 1 : vector<8x128xf32>, vector<8x128xf32>, vector<8x128xf32>, vector<8x128xf32>, vector<8x128xf32>, vector<8x128xf32>, vector<8x128xf32>, vector<8x128xf32>, vector<8x128xf32> -> vector<8x1152xf32>
    %176 = arith.truncf %175 : vector<8x1152xf32> to vector<8x1152xbf16>
    %c0_61 = arith.constant 0 : index
    %c0_62 = arith.constant 0 : index
    %177 = vector.load %arg11[%c0_61, %c0_62] : memref<1152x256xbf16, #tpu.memory_space<vmem>>, vector<1152x256xbf16>
    %cst_63 = arith.constant dense<0.000000e+00> : vector<8x256xf32>
    %178 = tpu.matmul %176, %177, %cst_63 {dimension_numbers = #tpu.dot_dimension_numbers<[1], [0], [0], [1], [0, 0, 1, 1], [], []>} : vector<8x1152xbf16>, vector<1152x256xbf16>, vector<8x256xf32> -> vector<8x256xf32>
    %179 = vector.broadcast %162 : vector<1x256xf32> to vector<8x256xf32>
    %180 = arith.mulf %178, %179 : vector<8x256xf32>
    %181 = vector.broadcast %163 : vector<1x256xf32> to vector<8x256xf32>
    %182 = arith.addf %180, %181 : vector<8x256xf32>
    %cst_64 = arith.constant 5.000000e-01 : f32
    %183 = vector.broadcast %cst_64 : f32 to vector<8x256xf32>
    %184 = arith.mulf %183, %182 : vector<8x256xf32>
    %cst_65 = arith.constant 4.471500e-02 : f32
    %185 = vector.broadcast %cst_65 : f32 to vector<8x256xf32>
    %186 = arith.mulf %185, %182 : vector<8x256xf32>
    %187 = arith.mulf %186, %182 : vector<8x256xf32>
    %188 = arith.mulf %187, %182 : vector<8x256xf32>
    %189 = arith.addf %182, %188 : vector<8x256xf32>
    %cst_66 = arith.constant 0.797884583 : f32
    %190 = vector.broadcast %cst_66 : f32 to vector<8x256xf32>
    %191 = arith.mulf %190, %189 : vector<8x256xf32>
    %192 = math.tanh %191 : vector<8x256xf32>
    %cst_67 = arith.constant 1.000000e+00 : f32
    %193 = vector.broadcast %cst_67 : f32 to vector<8x256xf32>
    %194 = arith.addf %193, %192 : vector<8x256xf32>
    %195 = arith.mulf %184, %194 : vector<8x256xf32>
    %196 = arith.truncf %195 : vector<8x256xf32> to vector<8x256xbf16>
    %c0_68 = arith.constant 0 : index
    %c0_69 = arith.constant 0 : index
    %197 = vector.load %arg12[%c0_68, %c0_69] : memref<32x8xbf16, #tpu.memory_space<vmem>>, vector<32x8xbf16>
    %cst_70 = arith.constant dense<0.000000e+00> : vector<32x256xf32>
    %198 = tpu.matmul %197, %196, %cst_70 {dimension_numbers = #tpu.dot_dimension_numbers<[1], [0], [0], [1], [0, 0, 1, 1], [], []>} : vector<32x8xbf16>, vector<8x256xbf16>, vector<32x256xf32> -> vector<32x256xf32>
    %199 = vector.extract_strided_slice %198 {offsets = [0, 0], sizes = [8, 256], strides = [1, 1]} : vector<32x256xf32> to vector<8x256xf32>
    %200 = vector.extract_strided_slice %198 {offsets = [8, 0], sizes = [8, 256], strides = [1, 1]} : vector<32x256xf32> to vector<8x256xf32>
    %201 = arith.maximumf %199, %200 : vector<8x256xf32>
    %202 = vector.extract_strided_slice %198 {offsets = [16, 0], sizes = [8, 256], strides = [1, 1]} : vector<32x256xf32> to vector<8x256xf32>
    %203 = vector.extract_strided_slice %198 {offsets = [24, 0], sizes = [8, 256], strides = [1, 1]} : vector<32x256xf32> to vector<8x256xf32>
    %204 = arith.maximumf %202, %203 : vector<8x256xf32>
    %205 = arith.maximumf %201, %204 : vector<8x256xf32>
    %206 = vector.extract_strided_slice %205 {offsets = [0, 0], sizes = [2, 256], strides = [1, 1]} : vector<8x256xf32> to vector<2x256xf32>
    %207 = arith.truncf %206 : vector<2x256xf32> to vector<2x256xbf16>
    %c10 = arith.constant 10 : index
    %c0_71 = arith.constant 0 : index
    %208 = vector.load %arg16[%c10, %c0_71] : memref<13x256xf32, #tpu.memory_space<vmem>>, vector<1x128xf32>
    %c0_72 = arith.constant 0 : index
    %c0_73 = arith.constant 0 : index
    %209 = vector.load %arg13[%c0_72, %c0_73] : memref<256x128xbf16, #tpu.memory_space<vmem>>, vector<256x128xbf16>
    %cst_74 = arith.constant dense<0.000000e+00> : vector<2x128xf32>
    %210 = tpu.matmul %207, %209, %cst_74 {dimension_numbers = #tpu.dot_dimension_numbers<[1], [0], [0], [1], [0, 0, 1, 1], [], []>} : vector<2x256xbf16>, vector<256x128xbf16>, vector<2x128xf32> -> vector<2x128xf32>
    %211 = vector.broadcast %208 : vector<1x128xf32> to vector<2x128xf32>
    %212 = arith.addf %210, %211 : vector<2x128xf32>
    %cst_75 = arith.constant 5.000000e-01 : f32
    %213 = vector.broadcast %cst_75 : f32 to vector<2x128xf32>
    %214 = arith.mulf %213, %212 : vector<2x128xf32>
    %cst_76 = arith.constant 4.471500e-02 : f32
    %215 = vector.broadcast %cst_76 : f32 to vector<2x128xf32>
    %216 = arith.mulf %215, %212 : vector<2x128xf32>
    %217 = arith.mulf %216, %212 : vector<2x128xf32>
    %218 = arith.mulf %217, %212 : vector<2x128xf32>
    %219 = arith.addf %212, %218 : vector<2x128xf32>
    %cst_77 = arith.constant 0.797884583 : f32
    %220 = vector.broadcast %cst_77 : f32 to vector<2x128xf32>
    %221 = arith.mulf %220, %219 : vector<2x128xf32>
    %222 = math.tanh %221 : vector<2x128xf32>
    %cst_78 = arith.constant 1.000000e+00 : f32
    %223 = vector.broadcast %cst_78 : f32 to vector<2x128xf32>
    %224 = arith.addf %223, %222 : vector<2x128xf32>
    %225 = arith.mulf %214, %224 : vector<2x128xf32>
    %226 = arith.truncf %225 : vector<2x128xf32> to vector<2x128xbf16>
    %c11 = arith.constant 11 : index
    %c0_79 = arith.constant 0 : index
    %227 = vector.load %arg16[%c11, %c0_79] : memref<13x256xf32, #tpu.memory_space<vmem>>, vector<1x64xf32>
    %c0_80 = arith.constant 0 : index
    %c0_81 = arith.constant 0 : index
    %228 = vector.load %arg14[%c0_80, %c0_81] : memref<128x64xbf16, #tpu.memory_space<vmem>>, vector<128x64xbf16>
    %cst_82 = arith.constant dense<0.000000e+00> : vector<2x64xf32>
    %229 = tpu.matmul %226, %228, %cst_82 {dimension_numbers = #tpu.dot_dimension_numbers<[1], [0], [0], [1], [0, 0, 1, 1], [], []>} : vector<2x128xbf16>, vector<128x64xbf16>, vector<2x64xf32> -> vector<2x64xf32>
    %230 = vector.broadcast %227 : vector<1x64xf32> to vector<2x64xf32>
    %231 = arith.addf %229, %230 : vector<2x64xf32>
    %cst_83 = arith.constant 5.000000e-01 : f32
    %232 = vector.broadcast %cst_83 : f32 to vector<2x64xf32>
    %233 = arith.mulf %232, %231 : vector<2x64xf32>
    %cst_84 = arith.constant 4.471500e-02 : f32
    %234 = vector.broadcast %cst_84 : f32 to vector<2x64xf32>
    %235 = arith.mulf %234, %231 : vector<2x64xf32>
    %236 = arith.mulf %235, %231 : vector<2x64xf32>
    %237 = arith.mulf %236, %231 : vector<2x64xf32>
    %238 = arith.addf %231, %237 : vector<2x64xf32>
    %cst_85 = arith.constant 0.797884583 : f32
    %239 = vector.broadcast %cst_85 : f32 to vector<2x64xf32>
    %240 = arith.mulf %239, %238 : vector<2x64xf32>
    %241 = math.tanh %240 : vector<2x64xf32>
    %cst_86 = arith.constant 1.000000e+00 : f32
    %242 = vector.broadcast %cst_86 : f32 to vector<2x64xf32>
    %243 = arith.addf %242, %241 : vector<2x64xf32>
    %244 = arith.mulf %233, %243 : vector<2x64xf32>
    %245 = arith.truncf %244 : vector<2x64xf32> to vector<2x64xbf16>
    %c12 = arith.constant 12 : index
    %c0_87 = arith.constant 0 : index
    %246 = vector.load %arg16[%c12, %c0_87] : memref<13x256xf32, #tpu.memory_space<vmem>>, vector<1x1xf32>
    %c0_88 = arith.constant 0 : index
    %c0_89 = arith.constant 0 : index
    %247 = vector.load %arg15[%c0_88, %c0_89] : memref<64x1xbf16, #tpu.memory_space<vmem>>, vector<64x1xbf16>
    %cst_90 = arith.constant dense<0.000000e+00> : vector<2x1xf32>
    %248 = tpu.matmul %245, %247, %cst_90 {dimension_numbers = #tpu.dot_dimension_numbers<[1], [0], [0], [1], [0, 0, 1, 1], [], []>} : vector<2x64xbf16>, vector<64x1xbf16>, vector<2x1xf32> -> vector<2x1xf32>
    %249 = vector.broadcast %246 : vector<1x1xf32> to vector<2x1xf32>
    %250 = arith.addf %248, %249 : vector<2x1xf32>
    %251 = arith.negf %250 : vector<2x1xf32>
    %252 = math.exp %251 : vector<2x1xf32>
    %cst_91 = arith.constant 1.000000e+00 : f32
    %253 = vector.broadcast %cst_91 : f32 to vector<2x1xf32>
    %254 = arith.addf %253, %252 : vector<2x1xf32>
    %255 = arith.divf %253, %254 : vector<2x1xf32>
    %c0_92 = arith.constant 0 : index
    %c0_93 = arith.constant 0 : index
    %256 = vector.load %arg17[%c0_92, %c0_93] : memref<2x1xf32, #tpu.memory_space<vmem>>, vector<2x1xf32>
    tpu.vector_store %arg17[%c0_92, %c0_93], %255 {strides = array<i32>} : memref<2x1xf32, #tpu.memory_space<vmem>>, vector<2x1xf32>,
    return
  }
  func.func @transform_0(%arg0: i32) -> (i32, i32) {
    %c0_i32 = arith.constant 0 : i32
    %c0_i32_0 = arith.constant 0 : i32
    %c0_i32_1 = arith.constant 0 : i32
    return %c0_i32, %c0_i32_0 : i32, i32
  }
  func.func @transform_1(%arg0: i32) -> (i32, i32) {
    %c0_i32 = arith.constant 0 : i32
    %c0_i32_0 = arith.constant 0 : i32
    %c0_i32_1 = arith.constant 0 : i32
    return %c0_i32, %c0_i32_0 : i32, i32
  }
  func.func @transform_2(%arg0: i32) -> (i32, i32) {
    %c0_i32 = arith.constant 0 : i32
    %c0_i32_0 = arith.constant 0 : i32
    %c0_i32_1 = arith.constant 0 : i32
    return %c0_i32, %c0_i32_0 : i32, i32
  }
  func.func @transform_3(%arg0: i32) -> (i32, i32) {
    %c0_i32 = arith.constant 0 : i32
    %c0_i32_0 = arith.constant 0 : i32
    %c0_i32_1 = arith.constant 0 : i32
    return %c0_i32, %c0_i32_0 : i32, i32
  }
  func.func @transform_4(%arg0: i32) -> (i32, i32) {
    %c0_i32 = arith.constant 0 : i32
    %c0_i32_0 = arith.constant 0 : i32
    %c0_i32_1 = arith.constant 0 : i32
    return %c0_i32, %c0_i32_0 : i32, i32
  }
  func.func @transform_5(%arg0: i32) -> (i32, i32) {
    %c0_i32 = arith.constant 0 : i32
    %c0_i32_0 = arith.constant 0 : i32
    %c0_i32_1 = arith.constant 0 : i32
    return %c0_i32, %c0_i32_0 : i32, i32
  }
  func.func @transform_6(%arg0: i32) -> (i32, i32) {
    %c0_i32 = arith.constant 0 : i32
    %c0_i32_0 = arith.constant 0 : i32
    %c0_i32_1 = arith.constant 0 : i32
    return %c0_i32, %c0_i32_0 : i32, i32
  }
  func.func @transform_7(%arg0: i32) -> (i32, i32) {
    %c0_i32 = arith.constant 0 : i32
    %c0_i32_0 = arith.constant 0 : i32
    %c0_i32_1 = arith.constant 0 : i32
    return %c0_i32, %c0_i32_0 : i32, i32
  }
  func.func @transform_8(%arg0: i32) -> (i32, i32) {
    %c0_i32 = arith.constant 0 : i32
    %c0_i32_0 = arith.constant 0 : i32
    %c0_i32_1 = arith.constant 0 : i32
    return %c0_i32, %c0_i32_0 : i32, i32
  }
  func.func @transform_9(%arg0: i32) -> (i32, i32) {
    %c0_i32 = arith.constant 0 : i32
    %c0_i32_0 = arith.constant 0 : i32
    %c0_i32_1 = arith.constant 0 : i32
    return %c0_i32, %c0_i32_0 : i32, i32
  }
  func.func @transform_10(%arg0: i32) -> (i32, i32) {
    %c0_i32 = arith.constant 0 : i32
    %c0_i32_0 = arith.constant 0 : i32
    %c0_i32_1 = arith.constant 0 : i32
    return %c0_i32, %c0_i32_0 : i32, i32
  }
  func.func @transform_11(%arg0: i32) -> (i32, i32) {
    %c0_i32 = arith.constant 0 : i32
    %c0_i32_0 = arith.constant 0 : i32
    %c0_i32_1 = arith.constant 0 : i32
    return %c0_i32, %c0_i32_0 : i32, i32
  }
  func.func @transform_12(%arg0: i32) -> (i32, i32) {
    %c0_i32 = arith.constant 0 : i32
    %c0_i32_0 = arith.constant 0 : i32
    %c0_i32_1 = arith.constant 0 : i32
    return %c0_i32, %c0_i32_0 : i32, i32
  }
  func.func @transform_13(%arg0: i32) -> (i32, i32) {
    %c0_i32 = arith.constant 0 : i32
    %c0_i32_0 = arith.constant 0 : i32
    %c0_i32_1 = arith.constant 0 : i32
    return %c0_i32, %c0_i32_0 : i32, i32
  }
  func.func @transform_14(%arg0: i32) -> (i32, i32) {
    %c0_i32 = arith.constant 0 : i32
    %c0_i32_0 = arith.constant 0 : i32
    %c0_i32_1 = arith.constant 0 : i32
    return %c0_i32, %c0_i32_0 : i32, i32
  }
  func.func @transform_15(%arg0: i32) -> (i32, i32) {
    %c0_i32 = arith.constant 0 : i32
    %c0_i32_0 = arith.constant 0 : i32
    %c0_i32_1 = arith.constant 0 : i32
    return %c0_i32, %c0_i32_0 : i32, i32
  }
  func.func @transform_16(%arg0: i32) -> (i32, i32) {
    %c0_i32 = arith.constant 0 : i32
    %c0_i32_0 = arith.constant 0 : i32
    %c0_i32_1 = arith.constant 0 : i32
    return %c0_i32, %c0_i32_0 : i32, i32
  }
}

</mosaic_0001>

<bundles_post_ra>
// kernel: degradation_type_detector.1
= control target key start
LH: loop header
LB: loop body
LE: loop exit
PB: predicated region body
PF: predicated region fallthrough
CT: control target
= control target key end

     0   :  { %v14470_v0 = vmov 0   ;;  %s11263_s19 = smov 3   ;;  %vm3770_vm0 = vcmask 23552   ;;  %s11266_s29 = smov 12   ;;  %vm3787_vm1 = vcmask 48128   ;;  %vm3804_vm2 = vcmask 72704   ;;  %s14452_s0 = inlined_call_operand.vmem [shape: bf16[512,3], index: 0, kind: input, shape index: {}]   ;;  %s14453_s1 = inlined_call_operand.vmem [shape: bf16[1152,512], index: 1, kind: input, shape index: {}]   ;;  %s14454_s2 = inlined_call_operand.vmem [shape: bf16[32,32], index: 2, kind: input, shape index: {}]   ;;  %s14455_s3 = inlined_call_operand.vmem [shape: bf16[128,128], index: 3, kind: input, shape index: {}]   ;;  %s14456_s15 = inlined_call_operand.vmem [shape: f32[13,256], index: 15, kind: input, shape index: {}]   ;;  %s14457_s4 = inlined_call_operand.vmem [shape: bf16[288,32], index: 4, kind: input, shape index: {}]   ;;  %s14458_s5 = inlined_call_operand.vmem [shape: bf16[288,64], index: 5, kind: input, shape index: {}]   ;;  %s14459_s6 = inlined_call_operand.vmem [shape: bf16[32,32], index: 6, kind: input, shape index: {}]   ;;  %s14460_s7 = inlined_call_operand.vmem [shape: bf16[72,8], index: 7, kind: input, shape index: {}]   ;;  %s14461_s8 = inlined_call_operand.vmem [shape: bf16[576,128], index: 8, kind: input, shape index: {}]   ;;  %s14462_s9 = inlined_call_operand.vmem [shape: bf16[1152,128], index: 9, kind: input, shape index: {}]   ;;  %s14463_s10 = inlined_call_operand.vmem [shape: bf16[1152,256], index: 10, kind: input, shape index: {}]   ;;  %s14464_s11 = inlined_call_operand.vmem [shape: bf16[32,8], index: 11, kind: input, shape index: {}]   ;;  %s14465_s12 = inlined_call_operand.vmem [shape: bf16[256,128], index: 12, kind: input, shape index: {}]   ;;  %s14466_s13 = inlined_call_operand.vmem [shape: bf16[128,64], index: 13, kind: input, shape index: {}]   ;;  %s14467_s14 = inlined_call_operand.vmem [shape: bf16[64,1], index: 14, kind: input, shape index: {}]   ;;  %s14468_s16 = inlined_call_operand.vmem [shape: f32[2,1], index: 16, kind: output, shape index: {}]  }
   0x1   :  { %14474 = sst [smem:[#allocation14_spill]] %s14452_s0  ;;  %2040 = vmatprep.subr.bf16.mxu0 %v14470_v0  ;;  %9630 = vmatprep.subr.bf16.mxu1 %v14470_v0  ;;  %v10348_v6 = vld [vmem:[%s14453_s1 + $0x4] ss:$16 sps:$4 sm:$0xff]   ;;  %v10346_v18 = vld [vmem:[%s14453_s1] ss:$16 sps:$4 sm:$0xff]   ;;  %s11267_s17 = smov 15  }
   0x2   :  { %s14475_s23 = sld [smem:[#allocation14_spill]]  ;;  %2072 = vmatprep.mubr.bf16.mxu0 %v10348_v6  ;;  %v10349_v19 = vld [vmem:[%s14453_s1 + $0x24] ss:$16 sps:$4 sm:$0xff]   ;;  %v10351_v22 = vld [vmem:[%s14453_s1 + $0x20] ss:$16 sps:$4 sm:$0xff]   ;;  %vm3821_vm3 = vcmask 97280  }
   0x3   :  { %v10352_v23 = vld [vmem:[%s14453_s1 + $0x44] ss:$16 sps:$4 sm:$0xff]   ;;  %v10354_v26 = vld [vmem:[%s14453_s1 + $0x40] ss:$16 sps:$4 sm:$0xff]   ;;  %s11269_s22 = smov 21   ;;  %vm3838_vm4 = vcmask 121856  }
   0x4   :  { %v10355_v27 = vld [vmem:[%s14453_s1 + $0x64] ss:$16 sps:$4 sm:$0xff]   ;;  %v10357_v29 = vld [vmem:[%s14453_s1 + $0x60] ss:$16 sps:$4 sm:$0xff]   ;;  %vm3855_vm5 = vcmask 146432   ;;  %vm3872_vm6 = vcmask 171008  }
   0x5   :  { %v10359_v30 = vld [vmem:[%s14453_s1 + $0x84] ss:$16 sps:$4 sm:$0xff]   ;;  %v10361_v32 = vld [vmem:[%s14453_s1 + $0x80] ss:$16 sps:$4 sm:$0xff]   ;;  %vm3889_vm7 = vcmask 195584   ;;  %vm3906_vm8 = vcmask 220160  }
   0x6   :  { %v10362_v33 = vld [vmem:[%s14453_s1 + $0xa4] ss:$16 sps:$4 sm:$0xff]   ;;  %v10364_v34 = vld [vmem:[%s14453_s1 + $0xa0] ss:$16 sps:$4 sm:$0xff]   ;;  %vm3947_vm9 = vcmask 261120   ;;  %s11271_s30 = smov 32  }
   0x7   :  { %v10365_v35 = vld [vmem:[%s14453_s1 + $0xc4] ss:$16 sps:$4 sm:$0xff]   ;;  %v10367_v36 = vld [vmem:[%s14453_s1 + $0xc0] ss:$16 sps:$4 sm:$0xff]   ;;  %s11273_s24 = smov 96   ;;  %vm4887_vm10 = vcmask 523264  }
   0x8   :  { %v10330_v1 = vld [vmem:[%s14475_s23] sm:$0xff]   ;;  %v10331_v2 = vld [vmem:[%s14475_s23 + $0x8] sm:$0xff]   ;;  %v10332_v3 = vld [vmem:[%s14475_s23 + $0x10] sm:$0xff]   ;;  %vm4892_vm11 = vcmask 785408   ;;  %vm11275_vm12 = vmmov 0   ;;  %vm5332_vm13 = vcmask 1043456  }
   0x9   :  { %2041 = vmatpush1.bf16.msra.mxu0 %v10330_v1  ;;  %9646 = vmatpush1.bf16.msra.mxu1 %v10330_v1  ;;  %v10333_v4 = vld [vmem:[%s14475_s23 + $0x18] sm:$0xff]   ;;  %v10334_v5 = vld [vmem:[%s14475_s23 + $0x20] sm:$0xff]   ;;  %v10335_v7 = vld [vmem:[%s14475_s23 + $0x28] sm:$0xff]   ;;  %vm5316_vm14 = vcmask 64512   ;;  %vm8396_vm15 = vcmask 1024  }
   0xa   :  { %2042 = vmatprep.subr.bf16.mxu0 %v14470_v0  ;;  %9631 = vmatprep.subr.bf16.mxu1 %v14470_v0  ;;  %v10336_v8 = vld [vmem:[%s14475_s23 + $0x30] sm:$0xff]   ;;  %v10337_v9 = vld [vmem:[%s14475_s23 + $0x38] sm:$0xff]   ;;  %v10338_v10 = vld [vmem:[%s14475_s23 + $0x40] sm:$0xff]  }
   0xb   :  { %v10339_v11 = vld [vmem:[%s14475_s23 + $0x48] sm:$0xff]   ;;  %v10340_v12 = vld [vmem:[%s14475_s23 + $0x50] sm:$0xff]   ;;  %v10341_v13 = vld [vmem:[%s14475_s23 + $0x58] sm:$0xff]  }
   0xc   :  { %v10342_v14 = vld [vmem:[%s14475_s23 + $0x60] sm:$0xff]   ;;  %v10343_v15 = vld [vmem:[%s14475_s23 + $0x68] sm:$0xff]   ;;  %v10344_v16 = vld [vmem:[%s14475_s23 + $0x70] sm:$0xff]  }
   0xd   :  { %2043 = vmatpush1.bf16.msra.mxu0 %v10331_v2  ;;  %9647 = vmatpush1.bf16.msra.mxu1 %v10331_v2  ;;  %v10345_v17 = vld [vmem:[%s14475_s23 + $0x78] sm:$0xff]   ;;  %v10358_v20 = vld [vmem:[%s14475_s23 + $0x80] sm:$0xff]   ;;  %v10368_v21 = vld [vmem:[%s14475_s23 + $0x88] sm:$0xff]  }
   0xe   :  { %2044 = vmatprep.subr.bf16.mxu0 %v14470_v0  ;;  %9632 = vmatprep.subr.bf16.mxu1 %v14470_v0  ;;  %v10378_v24 = vld [vmem:[%s14475_s23 + $0x90] sm:$0xff]   ;;  %v10390_v25 = vld [vmem:[%s14475_s23 + $0x98] sm:$0xff]   ;;  %v10401_v28 = vld [vmem:[%s14475_s23 + $0xa0] sm:$0xff]  }
   0xf   :  { %v10411_v31 = vld [vmem:[%s14475_s23 + $0xa8] sm:$0xff]   ;;  %v10369_v37 = vld [vmem:[%s14453_s1 + $0xe4] ss:$16 sps:$4 sm:$0xff]   ;;  %v10371_v39 = vld [vmem:[%s14453_s1 + $0xe0] ss:$16 sps:$4 sm:$0xff]  }
  0x10   :  { %v10421_v38 = vld [vmem:[%s14475_s23 + $0xb0] sm:$0xff]   ;;  %v10433_v45 = vld [vmem:[%s14475_s23 + $0xb8] sm:$0xff]   ;;  %v10444_v54 = vld [vmem:[%s14475_s23 + $0xc0] sm:$0xff]  }
  0x11   :  { %2045 = vmatpush1.bf16.msra.mxu0 %v10332_v3  ;;  %9648 = vmatpush1.bf16.msra.mxu1 %v10332_v3  ;;  %v10372_v40 = vld [vmem:[%s14453_s1 + $0x104] ss:$16 sps:$4 sm:$0xff]   ;;  %v10374_v41 = vld [vmem:[%s14453_s1 + $0x100] ss:$16 sps:$4 sm:$0xff]   ;;  %v10454_v61 = vld [vmem:[%s14475_s23 + $0xc8] sm:$0xff]  }
  0x12   :  { %2046 = vmatprep.subr.bf16.mxu0 %v14470_v0  ;;  %9633 = vmatprep.subr.bf16.mxu1 %v14470_v0  ;;  %v10375_v42 = vld [vmem:[%s14453_s1 + $0x124] ss:$16 sps:$4 sm:$0xff]   ;;  %v10377_v43 = vld [vmem:[%s14453_s1 + $0x120] ss:$16 sps:$4 sm:$0xff]  }
  0x13   :  { %v10379_v44 = vld [vmem:[%s14453_s1 + $0x144] ss:$16 sps:$4 sm:$0xff]   ;;  %v10381_v46 = vld [vmem:[%s14453_s1 + $0x140] ss:$16 sps:$4 sm:$0xff]  }
  0x14   :  { %v10382_v47 = vld [vmem:[%s14453_s1 + $0x164] ss:$16 sps:$4 sm:$0xff]   ;;  %v10384_v48 = vld [vmem:[%s14453_s1 + $0x160] ss:$16 sps:$4 sm:$0xff]  }
  0x15   :  { %2047 = vmatpush1.bf16.msra.mxu0 %v10333_v4  ;;  %9649 = vmatpush1.bf16.msra.mxu1 %v10333_v4  ;;  %v10385_v49 = vld [vmem:[%s14453_s1 + $0x184] ss:$16 sps:$4 sm:$0xff]   ;;  %v10387_v50 = vld [vmem:[%s14453_s1 + $0x180] ss:$16 sps:$4 sm:$0xff]  }
  0x16   :  { %2048 = vmatprep.subr.bf16.mxu0 %v14470_v0  ;;  %9634 = vmatprep.subr.bf16.mxu1 %v14470_v0  ;;  %v10388_v51 = vld [vmem:[%s14453_s1 + $0x1a4] ss:$16 sps:$4 sm:$0xff]   ;;  %v10391_v52 = vld [vmem:[%s14453_s1 + $0x1a0] ss:$16 sps:$4 sm:$0xff]  }
  0x17   :  { %v10392_v53 = vld [vmem:[%s14453_s1 + $0x1c4] ss:$16 sps:$4 sm:$0xff]   ;;  %v10394_v55 = vld [vmem:[%s14453_s1 + $0x1c0] ss:$16 sps:$4 sm:$0xff]  }
  0x18   :  { %v10395_v56 = vld [vmem:[%s14453_s1 + $0x1e4] ss:$16 sps:$4 sm:$0xff]   ;;  %v10397_v57 = vld [vmem:[%s14453_s1 + $0x1e0] ss:$16 sps:$4 sm:$0xff]  }
  0x19   :  { %2049 = vmatpush1.bf16.msra.mxu0 %v10334_v5  ;;  %9650 = vmatpush1.bf16.msra.mxu1 %v10334_v5  ;;  %v10398_v58 = vld [vmem:[%s14453_s1 + $0x204] ss:$16 sps:$4 sm:$0xff]   ;;  %v10400_v59 = vld [vmem:[%s14453_s1 + $0x200] ss:$16 sps:$4 sm:$0xff]  }
  0x1a   :  { %2050 = vmatprep.subr.bf16.mxu0 %v14470_v0  ;;  %9635 = vmatprep.subr.bf16.mxu1 %v14470_v0  ;;  %v10402_v60 = vld [vmem:[%s14453_s1 + $0x224] ss:$16 sps:$4 sm:$0xff]   ;;  %v10404_v62 = vld [vmem:[%s14453_s1 + $0x220] ss:$16 sps:$4 sm:$0xff]  }
  0x1b   :  { %v10405_v63 = vld [vmem:[%s14453_s1 + $0x244] ss:$16 sps:$4 sm:$0xff]   ;;  %v10407_v1 = vld [vmem:[%s14453_s1 + $0x240] ss:$16 sps:$4 sm:$0xff]  }
  0x1c   :  { %v10408_v2 = vld [vmem:[%s14453_s1 + $0x264] ss:$16 sps:$4 sm:$0xff]   ;;  %v10410_v3 = vld [vmem:[%s14453_s1 + $0x260] ss:$16 sps:$4 sm:$0xff]  }
  0x1d   :  { %2051 = vmatpush1.bf16.msra.mxu0 %v10335_v7  ;;  %9651 = vmatpush1.bf16.msra.mxu1 %v10335_v7  ;;  %v10412_v4 = vld [vmem:[%s14453_s1 + $0x284] ss:$16 sps:$4 sm:$0xff]   ;;  %v10414_v6 = vld [vmem:[%s14453_s1 + $0x280] ss:$16 sps:$4 sm:$0xff]  }
  0x1e   :  { %2052 = vmatprep.subr.bf16.mxu0 %v14470_v0  ;;  %9636 = vmatprep.subr.bf16.mxu1 %v14470_v0  ;;  %v10464_v5 = vld [vmem:[%s14475_s23 + $0xd0] sm:$0xff]  }
  0x1f   :  { %v10415_v7 = vld [vmem:[%s14453_s1 + $0x2a4] ss:$16 sps:$4 sm:$0xff]  }
  0x21   :  { %2053 = vmatpush1.bf16.msra.mxu0 %v10336_v8  ;;  %9652 = vmatpush1.bf16.msra.mxu1 %v10336_v8  ;;  %v10417_v8 = vld [vmem:[%s14453_s1 + $0x2a0] ss:$16 sps:$4 sm:$0xff]  }
  0x22   :  { %2054 = vmatprep.subr.bf16.mxu0 %v14470_v0  ;;  %9637 = vmatprep.subr.bf16.mxu1 %v14470_v0 }
  0x25   :  { %2055 = vmatpush1.bf16.msra.mxu0 %v10337_v9  ;;  %9653 = vmatpush1.bf16.msra.mxu1 %v10337_v9  ;;  %v10418_v9 = vld [vmem:[%s14453_s1 + $0x2c4] ss:$16 sps:$4 sm:$0xff]  }
  0x26   :  { %2056 = vmatprep.subr.bf16.mxu0 %v14470_v0  ;;  %9638 = vmatprep.subr.bf16.mxu1 %v14470_v0 }
  0x29   :  { %2057 = vmatpush1.bf16.msra.mxu0 %v10338_v10  ;;  %9654 = vmatpush1.bf16.msra.mxu1 %v10338_v10  ;;  %v10420_v10 = vld [vmem:[%s14453_s1 + $0x2c0] ss:$16 sps:$4 sm:$0xff]  }
  0x2a   :  { %2058 = vmatprep.subr.bf16.mxu0 %v14470_v0  ;;  %9639 = vmatprep.subr.bf16.mxu1 %v14470_v0 }
  0x2d   :  { %2059 = vmatpush1.bf16.msra.mxu0 %v10339_v11  ;;  %9655 = vmatpush1.bf16.msra.mxu1 %v10339_v11  ;;  %v10422_v11 = vld [vmem:[%s14453_s1 + $0x2e4] ss:$16 sps:$4 sm:$0xff]  }
  0x2e   :  { %2060 = vmatprep.subr.bf16.mxu0 %v14470_v0  ;;  %9640 = vmatprep.subr.bf16.mxu1 %v14470_v0 }
  0x31   :  { %2061 = vmatpush1.bf16.msra.mxu0 %v10340_v12  ;;  %9656 = vmatpush1.bf16.msra.mxu1 %v10340_v12  ;;  %v10476_v12 = vld [vmem:[%s14475_s23 + $0xd8] sm:$0xff]  }
  0x32   :  { %2062 = vmatprep.subr.bf16.mxu0 %v14470_v0  ;;  %9641 = vmatprep.subr.bf16.mxu1 %v14470_v0 }
  0x35   :  { %2063 = vmatpush1.bf16.msra.mxu0 %v10341_v13  ;;  %9657 = vmatpush1.bf16.msra.mxu1 %v10341_v13  ;;  %v10424_v13 = vld [vmem:[%s14453_s1 + $0x2e0] ss:$16 sps:$4 sm:$0xff]  }
  0x36   :  { %2064 = vmatprep.subr.bf16.mxu0 %v14470_v0  ;;  %9642 = vmatprep.subr.bf16.mxu1 %v14470_v0 }
  0x39   :  { %2065 = vmatpush1.bf16.msra.mxu0 %v10342_v14  ;;  %9658 = vmatpush1.bf16.msra.mxu1 %v10342_v14  ;;  %v10425_v14 = vld [vmem:[%s14453_s1 + $0x304] ss:$16 sps:$4 sm:$0xff]  }
  0x3a   :  { %2066 = vmatprep.subr.bf16.mxu0 %v14470_v0  ;;  %9643 = vmatprep.subr.bf16.mxu1 %v14470_v0 }
  0x3d   :  { %2067 = vmatpush1.bf16.msra.mxu0 %v10343_v15  ;;  %9659 = vmatpush1.bf16.msra.mxu1 %v10343_v15  ;;  %v10427_v15 = vld [vmem:[%s14453_s1 + $0x300] ss:$16 sps:$4 sm:$0xff]  }
  0x3e   :  { %2068 = vmatprep.subr.bf16.mxu0 %v14470_v0  ;;  %9644 = vmatprep.subr.bf16.mxu1 %v14470_v0 }
  0x41   :  { %2069 = vmatpush1.bf16.msra.mxu0 %v10344_v16  ;;  %9660 = vmatpush1.bf16.msra.mxu1 %v10344_v16  ;;  %v10428_v16 = vld [vmem:[%s14453_s1 + $0x324] ss:$16 sps:$4 sm:$0xff]  }
  0x42   :  { %2070 = vmatprep.subr.bf16.mxu0 %v14470_v0  ;;  %9645 = vmatprep.subr.bf16.mxu1 %v14470_v0 }
  0x45   :  { %2071 = vmatpush1.bf16.msra.mxu0 %v10345_v17  ;;  %9661 = vmatpush1.bf16.msra.mxu1 %v10345_v17  ;;  %v10430_v17 = vld [vmem:[%s14453_s1 + $0x320] ss:$16 sps:$4 sm:$0xff]  }
  0x46   :  { %2649 = vmatprep.subr.bf16.mxu0 %v14470_v0 }
  0x48   :  { %2073 = vmatmul.mubr.bf16.vlgmr.msra.gmra.mrb[0].mxu0 %v10346_v18  ;;  %v10431_v18 = vld [vmem:[%s14453_s1 + $0x344] ss:$16 sps:$4 sm:$0xff]  }
  0x49   :  { %2080 = vmatprep.mubr.bf16.mxu0 %v10349_v19  ;;  %2650 = vmatpush1.bf16.msra.mxu0 %v10358_v20  ;;  %v10434_v19 = vld [vmem:[%s14453_s1 + $0x340] ss:$16 sps:$4 sm:$0xff]   ;;  %v10435_v20 = vld [vmem:[%s14453_s1 + $0x364] ss:$16 sps:$4 sm:$0xff]  }
  0x4a   :  { %2651 = vmatprep.subr.bf16.mxu0 %v14470_v0 }
  0x4d   :  { %2652 = vmatpush1.bf16.msra.mxu0 %v10368_v21  ;;  %v10487_v21 = vld [vmem:[%s14475_s23 + $0xe0] sm:$0xff]  }
  0x4e   :  { %2653 = vmatprep.subr.bf16.mxu0 %v14470_v0 }
  0x50   :  { %2081 = vmatmul.mubr.bf16.gmra.mrb[4].mxu0 %v10351_v22  ;;  %v10437_v22 = vld [vmem:[%s14453_s1 + $0x360] ss:$16 sps:$4 sm:$0xff]  }
  0x51   :  { %2088 = vmatprep.mubr.bf16.mxu0 %v10352_v23  ;;  %2654 = vmatpush1.bf16.msra.mxu0 %v10378_v24  ;;  %v10438_v23 = vld [vmem:[%s14453_s1 + $0x384] ss:$16 sps:$4 sm:$0xff]   ;;  %v10440_v24 = vld [vmem:[%s14453_s1 + $0x380] ss:$16 sps:$4 sm:$0xff]  }
  0x52   :  { %2655 = vmatprep.subr.bf16.mxu0 %v14470_v0 }
  0x55   :  { %2656 = vmatpush1.bf16.msra.mxu0 %v10390_v25  ;;  %v10441_v25 = vld [vmem:[%s14453_s1 + $0x3a4] ss:$16 sps:$4 sm:$0xff]  }
  0x56   :  { %2657 = vmatprep.subr.bf16.mxu0 %v14470_v0 }
  0x58   :  { %2089 = vmatmul.mubr.bf16.gmra.mrb[8].mxu0 %v10354_v26  ;;  %v10443_v26 = vld [vmem:[%s14453_s1 + $0x3a0] ss:$16 sps:$4 sm:$0xff]  }
  0x59   :  { %2096 = vmatprep.mubr.bf16.mxu0 %v10355_v27  ;;  %2658 = vmatpush1.bf16.msra.mxu0 %v10401_v28  ;;  %v10445_v27 = vld [vmem:[%s14453_s1 + $0x3c4] ss:$16 sps:$4 sm:$0xff]   ;;  %v10497_v28 = vld [vmem:[%s14475_s23 + $0xe8] sm:$0xff]  }
  0x5a   :  { %2659 = vmatprep.subr.bf16.mxu0 %v14470_v0 }
  0x5d   :  { %2660 = vmatpush1.bf16.msra.mxu0 %v10411_v31  ;;  %v10450_v31 = vld [vmem:[%s14453_s1 + $0x3e0] ss:$16 sps:$4 sm:$0xff]  }
  0x5e   :  { %2661 = vmatprep.subr.bf16.mxu0 %v14470_v0 }
  0x60   :  { %2097 = vmatmul.mubr.bf16.gmra.mrb[12].mxu0 %v10357_v29  ;;  %v10447_v29 = vld [vmem:[%s14453_s1 + $0x3c0] ss:$16 sps:$4 sm:$0xff]  }
  0x61   :  { %2104 = vmatprep.mubr.bf16.mxu0 %v10359_v30  ;;  %2662 = vmatpush1.bf16.msra.mxu0 %v10421_v38  ;;  %v10448_v30 = vld [vmem:[%s14453_s1 + $0x3e4] ss:$16 sps:$4 sm:$0xff]   ;;  %v10460_v38 = vld [vmem:[%s14453_s1 + $0x440] ss:$16 sps:$4 sm:$0xff]  }
  0x62   :  { %2663 = vmatprep.subr.bf16.mxu0 %v14470_v0 }
  0x65   :  { %2664 = vmatpush1.bf16.msra.mxu0 %v10433_v45  ;;  %v10470_v45 = vld [vmem:[%s14453_s1 + $0x4a0] ss:$16 sps:$4 sm:$0xff]  }
  0x66   :  { %2665 = vmatprep.subr.bf16.mxu0 %v14470_v0 }
  0x68   :  { %2105 = vmatmul.mubr.bf16.gmra.mrb[16].mxu0 %v10361_v32  ;;  %v10451_v32 = vld [vmem:[%s14453_s1 + $0x404] ss:$16 sps:$4 sm:$0xff]  }
  0x69   :  { %2112 = vmatprep.mubr.bf16.mxu0 %v10362_v33  ;;  %2666 = vmatpush1.bf16.msra.mxu0 %v10444_v54  ;;  %v10453_v33 = vld [vmem:[%s14453_s1 + $0x400] ss:$16 sps:$4 sm:$0xff]   ;;  %v10484_v54 = vld [vmem:[%s14453_s1 + $0x544] ss:$16 sps:$4 sm:$0xff]  }
  0x6a   :  { %2667 = vmatprep.subr.bf16.mxu0 %v14470_v0 }
  0x6d   :  { %2668 = vmatpush1.bf16.msra.mxu0 %v10454_v61  ;;  %v10496_v61 = vld [vmem:[%s14453_s1 + $0x5a0] ss:$16 sps:$4 sm:$0xff]  }
  0x6e   :  { %2669 = vmatprep.subr.bf16.mxu0 %v14470_v0 }
  0x70   :  { %2113 = vmatmul.mubr.bf16.gmra.mrb[20].mxu0 %v10364_v34  ;;  %v10455_v34 = vld [vmem:[%s14453_s1 + $0x424] ss:$16 sps:$4 sm:$0xff]  }
  0x71   :  { %2120 = vmatprep.mubr.bf16.mxu0 %v10365_v35  ;;  %2670 = vmatpush1.bf16.msra.mxu0 %v10464_v5  ;;  %v10507_v35 = vld [vmem:[%s14475_s23 + $0xf0] sm:$0xff]  }
  0x72   :  { %2671 = vmatprep.subr.bf16.mxu0 %v14470_v0  ;;  %v10508_v5 = vld [vmem:[%s14453_s1 + $0x624] ss:$16 sps:$4 sm:$0xff]  }
  0x75   :  { %2672 = vmatpush1.bf16.msra.mxu0 %v10476_v12  ;;  %v10518_v12 = vld [vmem:[%s14453_s1 + $0x8] ss:$16 sps:$4 sm:$0xff]  }
  0x76   :  { %2673 = vmatprep.subr.bf16.mxu0 %v14470_v0 }
  0x78   :  { %2121 = vmatmul.mubr.bf16.gmra.mrb[24].mxu0 %v10367_v36  ;;  %v10457_v36 = vld [vmem:[%s14453_s1 + $0x420] ss:$16 sps:$4 sm:$0xff]  }
  0x79   :  { %2128 = vmatprep.mubr.bf16.mxu0 %v10369_v37  ;;  %2674 = vmatpush1.bf16.msra.mxu0 %v10487_v21  ;;  %v10458_v37 = vld [vmem:[%s14453_s1 + $0x444] ss:$16 sps:$4 sm:$0xff]   ;;  %v10533_v21 = vld [vmem:[%s14453_s1 + $0xac] ss:$16 sps:$4 sm:$0xff]  }
  0x7a   :  { %2675 = vmatprep.subr.bf16.mxu0 %v14470_v0 }
  0x7d   :  { %2676 = vmatpush1.bf16.msra.mxu0 %v10497_v28  ;;  %v10544_v28 = vld [vmem:[%s14453_s1 + $0x108] ss:$16 sps:$4 sm:$0xff]  }
  0x7e   :  { %2677 = vmatprep.subr.bf16.mxu0 %v14470_v0 }
  0x80   :  { %2129 = vmatmul.mubr.bf16.gmra.mrb[28].mxu0 %v10371_v39  ;;  %v10461_v39 = vld [vmem:[%s14453_s1 + $0x464] ss:$16 sps:$4 sm:$0xff]  }
  0x81   :  { %2136 = vmatprep.mubr.bf16.mxu0 %v10372_v40  ;;  %2678 = vmatpush1.bf16.msra.mxu0 %v10507_v35  ;;  %v10463_v40 = vld [vmem:[%s14453_s1 + $0x460] ss:$16 sps:$4 sm:$0xff]   ;;  %v10554_v35 = vld [vmem:[%s14453_s1 + $0x18c] ss:$16 sps:$4 sm:$0xff]  }
  0x82   :  { %2679 = vmatprep.subr.bf16.mxu0 %v14470_v0 }
  0x88   :  { %2137 = vmatmul.mubr.bf16.gmra.mrb[32].mxu0 %v10374_v41  ;;  %v10465_v41 = vld [vmem:[%s14453_s1 + $0x484] ss:$16 sps:$4 sm:$0xff]  }
  0x89   :  { %2144 = vmatprep.mubr.bf16.mxu0 %v10375_v42  ;;  %v10517_v42 = vld [vmem:[%s14475_s23 + $0xf8] sm:$0xff]  }
  0x8a   :  { %2680 = vmatpush1.bf16.msra.mxu0 %v10517_v42  ;;  %v10565_v42 = vld [vmem:[%s14453_s1 + $0x1e8] ss:$16 sps:$4 sm:$0xff]  }
  0x90   :  { %2145 = vmatmul.mubr.bf16.gmra.mrb[36].mxu0 %v10377_v43  ;;  %v10467_v43 = vld [vmem:[%s14453_s1 + $0x480] ss:$16 sps:$4 sm:$0xff]  }
  0x91   :  { %2152 = vmatprep.mubr.bf16.mxu0 %v10379_v44  ;;  %v10468_v44 = vld [vmem:[%s14453_s1 + $0x4a4] ss:$16 sps:$4 sm:$0xff]  }
  0x98   :  { %2153 = vmatmul.mubr.bf16.gmra.mrb[40].mxu0 %v10381_v46  ;;  %v10471_v46 = vld [vmem:[%s14453_s1 + $0x4c4] ss:$16 sps:$4 sm:$0xff]  }
  0x99   :  { %2160 = vmatprep.mubr.bf16.mxu0 %v10382_v47  ;;  %v10473_v47 = vld [vmem:[%s14453_s1 + $0x4c0] ss:$16 sps:$4 sm:$0xff]  }
  0xa0   :  { %2161 = vmatmul.mubr.bf16.gmra.mrb[44].mxu0 %v10384_v48  ;;  %v10474_v48 = vld [vmem:[%s14453_s1 + $0x4e4] ss:$16 sps:$4 sm:$0xff]  }
  0xa1   :  { %2168 = vmatprep.mubr.bf16.mxu0 %v10385_v49  ;;  %v10477_v49 = vld [vmem:[%s14453_s1 + $0x4e0] ss:$16 sps:$4 sm:$0xff]  }
  0xa8   :  { %2169 = vmatmul.mubr.bf16.gmra.mrb[48].mxu0 %v10387_v50  ;;  %v10478_v50 = vld [vmem:[%s14453_s1 + $0x504] ss:$16 sps:$4 sm:$0xff]  }
  0xa9   :  { %2176 = vmatprep.mubr.bf16.mxu0 %v10388_v51  ;;  %v10480_v51 = vld [vmem:[%s14453_s1 + $0x500] ss:$16 sps:$4 sm:$0xff]  }
  0xb0   :  { %2177 = vmatmul.mubr.bf16.gmra.mrb[52].mxu0 %v10391_v52  ;;  %v10481_v52 = vld [vmem:[%s14453_s1 + $0x524] ss:$16 sps:$4 sm:$0xff]  }
  0xb1   :  { %2184 = vmatprep.mubr.bf16.mxu0 %v10392_v53  ;;  %v10483_v53 = vld [vmem:[%s14453_s1 + $0x520] ss:$16 sps:$4 sm:$0xff]  }
  0xb8   :  { %2185 = vmatmul.mubr.bf16.gmra.mrb[56].mxu0 %v10394_v55  ;;  %v10486_v55 = vld [vmem:[%s14453_s1 + $0x540] ss:$16 sps:$4 sm:$0xff]  }
  0xb9   :  { %2192 = vmatprep.mubr.bf16.mxu0 %v10395_v56  ;;  %v10488_v56 = vld [vmem:[%s14453_s1 + $0x564] ss:$16 sps:$4 sm:$0xff]  }
  0xc0   :  { %2193 = vmatmul.mubr.bf16.gmra.mrb[60].mxu0 %v10397_v57  ;;  %v10490_v57 = vld [vmem:[%s14453_s1 + $0x560] ss:$16 sps:$4 sm:$0xff]  }
  0xc1   :  { %2200 = vmatprep.mubr.bf16.mxu0 %v10398_v58  ;;  %v10491_v58 = vld [vmem:[%s14453_s1 + $0x584] ss:$16 sps:$4 sm:$0xff]  }
  0xc8   :  { %2201 = vmatmul.mubr.bf16.gmra.mrb[64].mxu0 %v10400_v59  ;;  %v10493_v59 = vld [vmem:[%s14453_s1 + $0x580] ss:$16 sps:$4 sm:$0xff]  }
  0xc9   :  { %2208 = vmatprep.mubr.bf16.mxu0 %v10402_v60  ;;  %v10494_v60 = vld [vmem:[%s14453_s1 + $0x5a4] ss:$16 sps:$4 sm:$0xff]  }
  0xd0   :  { %2209 = vmatmul.mubr.bf16.gmra.mrb[68].mxu0 %v10404_v62  ;;  %v10498_v62 = vld [vmem:[%s14453_s1 + $0x5c4] ss:$16 sps:$4 sm:$0xff]  }
  0xd1   :  { %2216 = vmatprep.mubr.bf16.mxu0 %v10405_v63  ;;  %v10500_v63 = vld [vmem:[%s14453_s1 + $0x5c0] ss:$16 sps:$4 sm:$0xff]  }
  0xd8   :  { %2217 = vmatmul.mubr.bf16.gmra.mrb[72].mxu0 %v10407_v1  ;;  %v10501_v1 = vld [vmem:[%s14453_s1 + $0x5e4] ss:$16 sps:$4 sm:$0xff]  }
  0xd9   :  { %2224 = vmatprep.mubr.bf16.mxu0 %v10408_v2  ;;  %v10503_v2 = vld [vmem:[%s14453_s1 + $0x5e0] ss:$16 sps:$4 sm:$0xff]  }
  0xe0   :  { %2225 = vmatmul.mubr.bf16.gmra.mrb[76].mxu0 %v10410_v3  ;;  %v10504_v3 = vld [vmem:[%s14453_s1 + $0x604] ss:$16 sps:$4 sm:$0xff]  }
  0xe1   :  { %2232 = vmatprep.mubr.bf16.mxu0 %v10412_v4  ;;  %v10506_v4 = vld [vmem:[%s14453_s1 + $0x600] ss:$16 sps:$4 sm:$0xff]  }
  0xe8   :  { %2233 = vmatmul.mubr.bf16.gmra.mrb[80].mxu0 %v10414_v6  ;;  %v10510_v6 = vld [vmem:[%s14453_s1 + $0x620] ss:$16 sps:$4 sm:$0xff]  }
  0xe9   :  { %2240 = vmatprep.mubr.bf16.mxu0 %v10415_v7  ;;  %v10511_v7 = vld [vmem:[%s14453_s1 + $0x644] ss:$16 sps:$4 sm:$0xff]  }
  0xf0   :  { %2241 = vmatmul.mubr.bf16.gmra.mrb[84].mxu0 %v10417_v8  ;;  %v10513_v8 = vld [vmem:[%s14453_s1 + $0x640] ss:$16 sps:$4 sm:$0xff]  }
  0xf1   :  { %2248 = vmatprep.mubr.bf16.mxu0 %v10418_v9  ;;  %v10514_v9 = vld [vmem:[%s14453_s1 + $0x664] ss:$16 sps:$4 sm:$0xff]  }
  0xf8   :  { %2249 = vmatmul.mubr.bf16.gmra.mrb[88].mxu0 %v10420_v10  ;;  %v10516_v10 = vld [vmem:[%s14453_s1 + $0x660] ss:$16 sps:$4 sm:$0xff]  }
  0xf9   :  { %2256 = vmatprep.mubr.bf16.mxu0 %v10422_v11  ;;  %v10520_v11 = vld [vmem:[%s14453_s1 + $0xc] ss:$16 sps:$4 sm:$0xff]  }
 0x100   :  { %2257 = vmatmul.mubr.bf16.gmra.mrb[92].mxu0 %v10424_v13  ;;  %v10521_v13 = vld [vmem:[%s14453_s1 + $0x2c] ss:$16 sps:$4 sm:$0xff]  }
 0x101   :  { %2264 = vmatprep.mubr.bf16.mxu0 %v10425_v14  ;;  %v10523_v14 = vld [vmem:[%s14453_s1 + $0x28] ss:$16 sps:$4 sm:$0xff]  }
 0x108   :  { %2265 = vmatmul.mubr.bf16.gmra.mrb[96].mxu0 %v10427_v15  ;;  %v10524_v15 = vld [vmem:[%s14453_s1 + $0x4c] ss:$16 sps:$4 sm:$0xff]  }
 0x109   :  { %2272 = vmatprep.mubr.bf16.mxu0 %v10428_v16  ;;  %v10526_v16 = vld [vmem:[%s14453_s1 + $0x48] ss:$16 sps:$4 sm:$0xff]  }
 0x110   :  { %2273 = vmatmul.mubr.bf16.gmra.mrb[100].mxu0 %v10430_v17  ;;  %v10527_v17 = vld [vmem:[%s14453_s1 + $0x6c] ss:$16 sps:$4 sm:$0xff]  }
 0x111   :  { %2280 = vmatprep.mubr.bf16.mxu0 %v10431_v18  ;;  %v10529_v18 = vld [vmem:[%s14453_s1 + $0x68] ss:$16 sps:$4 sm:$0xff]  }
 0x118   :  { %2281 = vmatmul.mubr.bf16.gmra.mrb[104].mxu0 %v10434_v19  ;;  %v10530_v19 = vld [vmem:[%s14453_s1 + $0x8c] ss:$16 sps:$4 sm:$0xff]  }
 0x119   :  { %2288 = vmatprep.mubr.bf16.mxu0 %v10435_v20  ;;  %v10532_v20 = vld [vmem:[%s14453_s1 + $0x88] ss:$16 sps:$4 sm:$0xff]  }
 0x120   :  { %2289 = vmatmul.mubr.bf16.gmra.mrb[108].mxu0 %v10437_v22  ;;  %v10535_v22 = vld [vmem:[%s14453_s1 + $0xa8] ss:$16 sps:$4 sm:$0xff]  }
 0x121   :  { %2296 = vmatprep.mubr.bf16.mxu0 %v10438_v23  ;;  %v10536_v23 = vld [vmem:[%s14453_s1 + $0xcc] ss:$16 sps:$4 sm:$0xff]  }
 0x128   :  { %2297 = vmatmul.mubr.bf16.gmra.mrb[112].mxu0 %v10440_v24  ;;  %v10538_v24 = vld [vmem:[%s14453_s1 + $0xc8] ss:$16 sps:$4 sm:$0xff]  }
 0x129   :  { %2304 = vmatprep.mubr.bf16.mxu0 %v10441_v25  ;;  %v10539_v25 = vld [vmem:[%s14453_s1 + $0xec] ss:$16 sps:$4 sm:$0xff]  }
 0x130   :  { %2305 = vmatmul.mubr.bf16.gmra.mrb[116].mxu0 %v10443_v26  ;;  %v10541_v26 = vld [vmem:[%s14453_s1 + $0xe8] ss:$16 sps:$4 sm:$0xff]  }
 0x131   :  { %2312 = vmatprep.mubr.bf16.mxu0 %v10445_v27  ;;  %v10542_v27 = vld [vmem:[%s14453_s1 + $0x10c] ss:$16 sps:$4 sm:$0xff]  }
 0x138   :  { %2313 = vmatmul.mubr.bf16.gmra.mrb[120].mxu0 %v10447_v29  ;;  %v10545_v29 = vld [vmem:[%s14453_s1 + $0x12c] ss:$16 sps:$4 sm:$0xff]  }
 0x139   :  { %2320 = vmatprep.mubr.bf16.mxu0 %v10448_v30  ;;  %v10547_v30 = vld [vmem:[%s14453_s1 + $0x128] ss:$16 sps:$4 sm:$0xff]  }
 0x140   :  { %2321 = vmatmul.mubr.bf16.gmra.mrb[124].mxu0 %v10450_v31  ;;  %v10548_v31 = vld [vmem:[%s14453_s1 + $0x14c] ss:$16 sps:$4 sm:$0xff]  }
 0x141   :  { %2328 = vmatprep.mubr.bf16.mxu0 %v10451_v32  ;;  %v10550_v32 = vld [vmem:[%s14453_s1 + $0x148] ss:$16 sps:$4 sm:$0xff]  }
 0x148   :  { %2329 = vmatmul.mubr.bf16.gmra.mrb[128].mxu0 %v10453_v33  ;;  %v10551_v33 = vld [vmem:[%s14453_s1 + $0x16c] ss:$16 sps:$4 sm:$0xff]  }
 0x149   :  { %2336 = vmatprep.mubr.bf16.mxu0 %v10455_v34  ;;  %v10553_v34 = vld [vmem:[%s14453_s1 + $0x168] ss:$16 sps:$4 sm:$0xff]  }
 0x150   :  { %2337 = vmatmul.mubr.bf16.gmra.mrb[132].mxu0 %v10457_v36  ;;  %v10556_v36 = vld [vmem:[%s14453_s1 + $0x188] ss:$16 sps:$4 sm:$0xff]  }
 0x151   :  { %2344 = vmatprep.mubr.bf16.mxu0 %v10458_v37  ;;  %v10557_v37 = vld [vmem:[%s14453_s1 + $0x1ac] ss:$16 sps:$4 sm:$0xff]  }
 0x158   :  { %2345 = vmatmul.mubr.bf16.gmra.mrb[136].mxu0 %v10460_v38  ;;  %v10559_v38 = vld [vmem:[%s14453_s1 + $0x1a8] ss:$16 sps:$4 sm:$0xff]  }
 0x159   :  { %2352 = vmatprep.mubr.bf16.mxu0 %v10461_v39  ;;  %v10560_v39 = vld [vmem:[%s14453_s1 + $0x1cc] ss:$16 sps:$4 sm:$0xff]  }
 0x160   :  { %2353 = vmatmul.mubr.bf16.gmra.mrb[140].mxu0 %v10463_v40  ;;  %v10562_v40 = vld [vmem:[%s14453_s1 + $0x1c8] ss:$16 sps:$4 sm:$0xff]  }
 0x161   :  { %2360 = vmatprep.mubr.bf16.mxu0 %v10465_v41  ;;  %v10563_v41 = vld [vmem:[%s14453_s1 + $0x1ec] ss:$16 sps:$4 sm:$0xff]  }
 0x168   :  { %2361 = vmatmul.mubr.bf16.gmra.mrb[144].mxu0 %v10467_v43  ;;  %v10566_v43 = vld [vmem:[%s14453_s1 + $0x20c] ss:$16 sps:$4 sm:$0xff]  }
 0x169   :  { %2368 = vmatprep.mubr.bf16.mxu0 %v10468_v44  ;;  %v10568_v44 = vld [vmem:[%s14453_s1 + $0x208] ss:$16 sps:$4 sm:$0xff]  }
 0x170   :  { %2369 = vmatmul.mubr.bf16.gmra.mrb[148].mxu0 %v10470_v45  ;;  %v10569_v45 = vld [vmem:[%s14453_s1 + $0x22c] ss:$16 sps:$4 sm:$0xff]  }
 0x171   :  { %2376 = vmatprep.mubr.bf16.mxu0 %v10471_v46  ;;  %v10571_v46 = vld [vmem:[%s14453_s1 + $0x228] ss:$16 sps:$4 sm:$0xff]  }
 0x178   :  { %2377 = vmatmul.mubr.bf16.gmra.mrb[152].mxu0 %v10473_v47  ;;  %v10572_v47 = vld [vmem:[%s14453_s1 + $0x24c] ss:$16 sps:$4 sm:$0xff]  }
 0x179   :  { %2384 = vmatprep.mubr.bf16.mxu0 %v10474_v48  ;;  %v10574_v48 = vld [vmem:[%s14453_s1 + $0x248] ss:$16 sps:$4 sm:$0xff]  }
 0x180   :  { %2385 = vmatmul.mubr.bf16.gmra.mrb[156].mxu0 %v10477_v49  ;;  %v10575_v49 = vld [vmem:[%s14453_s1 + $0x26c] ss:$16 sps:$4 sm:$0xff]  }
 0x181   :  { %2392 = vmatprep.mubr.bf16.mxu0 %v10478_v50  ;;  %v10577_v50 = vld [vmem:[%s14453_s1 + $0x268] ss:$16 sps:$4 sm:$0xff]  }
 0x188   :  { %2393 = vmatmul.mubr.bf16.gmra.mrb[160].mxu0 %v10480_v51  ;;  %v10578_v51 = vld [vmem:[%s14453_s1 + $0x28c] ss:$16 sps:$4 sm:$0xff]  }
 0x189   :  { %2400 = vmatprep.mubr.bf16.mxu0 %v10481_v52  ;;  %v10580_v52 = vld [vmem:[%s14453_s1 + $0x288] ss:$16 sps:$4 sm:$0xff]  }
 0x190   :  { %2401 = vmatmul.mubr.bf16.gmra.mrb[164].mxu0 %v10483_v53  ;;  %v10581_v53 = vld [vmem:[%s14453_s1 + $0x2ac] ss:$16 sps:$4 sm:$0xff]  }
 0x191   :  { %2408 = vmatprep.mubr.bf16.mxu0 %v10484_v54  ;;  %v10583_v54 = vld [vmem:[%s14453_s1 + $0x2a8] ss:$16 sps:$4 sm:$0xff]  }
 0x198   :  { %2409 = vmatmul.mubr.bf16.gmra.mrb[168].mxu0 %v10486_v55  ;;  %v10584_v55 = vld [vmem:[%s14453_s1 + $0x2cc] ss:$16 sps:$4 sm:$0xff]  }
 0x199   :  { %2416 = vmatprep.mubr.bf16.mxu0 %v10488_v56  ;;  %v10586_v56 = vld [vmem:[%s14453_s1 + $0x2c8] ss:$16 sps:$4 sm:$0xff]  }
 0x1a0   :  { %2417 = vmatmul.mubr.bf16.gmra.mrb[172].mxu0 %v10490_v57  ;;  %v10587_v57 = vld [vmem:[%s14453_s1 + $0x2ec] ss:$16 sps:$4 sm:$0xff]  }
 0x1a1   :  { %2424 = vmatprep.mubr.bf16.mxu0 %v10491_v58  ;;  %v10589_v58 = vld [vmem:[%s14453_s1 + $0x2e8] ss:$16 sps:$4 sm:$0xff]  }
 0x1a8   :  { %2425 = vmatmul.mubr.bf16.gmra.mrb[176].mxu0 %v10493_v59  ;;  %v10590_v59 = vld [vmem:[%s14453_s1 + $0x30c] ss:$16 sps:$4 sm:$0xff]  }
 0x1a9   :  { %2432 = vmatprep.mubr.bf16.mxu0 %v10494_v60  ;;  %v10592_v60 = vld [vmem:[%s14453_s1 + $0x308] ss:$16 sps:$4 sm:$0xff]  }
 0x1b0   :  { %2433 = vmatmul.mubr.bf16.gmra.mrb[180].mxu0 %v10496_v61  ;;  %v10593_v61 = vld [vmem:[%s14453_s1 + $0x32c] ss:$16 sps:$4 sm:$0xff]  }
 0x1b1   :  { %2440 = vmatprep.mubr.bf16.mxu0 %v10498_v62  ;;  %v10595_v62 = vld [vmem:[%s14453_s1 + $0x328] ss:$16 sps:$4 sm:$0xff]  }
 0x1b8   :  { %2441 = vmatmul.mubr.bf16.gmra.mrb[184].mxu0 %v10500_v63  ;;  %v10596_v63 = vld [vmem:[%s14453_s1 + $0x34c] ss:$16 sps:$4 sm:$0xff]  }
 0x1b9   :  { %2448 = vmatprep.mubr.bf16.mxu0 %v10501_v1  ;;  %v10598_v1 = vld [vmem:[%s14453_s1 + $0x348] ss:$16 sps:$4 sm:$0xff]  }
 0x1c0   :  { %2449 = vmatmul.mubr.bf16.gmra.mrb[188].mxu0 %v10503_v2  ;;  %v10599_v2 = vld [vmem:[%s14453_s1 + $0x36c] ss:$16 sps:$4 sm:$0xff]  }
 0x1c1   :  { %2456 = vmatprep.mubr.bf16.mxu0 %v10504_v3 }
 0x1c8   :  { %2457 = vmatmul.mubr.bf16.gmra.mrb[192].mxu0 %v10506_v4 }
 0x1c9   :  { %2464 = vmatprep.mubr.bf16.mxu0 %v10508_v5  ;;  %v10601_v5 = vld [vmem:[%s14453_s1 + $0x368] ss:$16 sps:$4 sm:$0xff]  }
 0x1d0   :  { %2465 = vmatmul.mubr.bf16.gmra.mrb[196].mxu0 %v10510_v6 }
 0x1d1   :  { %2472 = vmatprep.mubr.bf16.mxu0 %v10511_v7  ;;  %v10602_v7 = vld [vmem:[%s14453_s1 + $0x38c] ss:$16 sps:$4 sm:$0xff]  }
 0x1d8   :  { %2473 = vmatmul.mubr.bf16.gmra.mrb[200].mxu0 %v10513_v8 }
 0x1d9   :  { %2480 = vmatprep.mubr.bf16.mxu0 %v10514_v9 }
 0x1e0   :  { %2481 = vmatmul.mubr.bf16.gmra.mrb[204].mxu0 %v10516_v10 }
 0x1e1   :  { %2681 = vmatprep.mubr.bf16.mxu0 %v10520_v11  ;;  %v10604_v11 = vld [vmem:[%s14453_s1 + $0x388] ss:$16 sps:$4 sm:$0xff]  }
 0x1e8   :  { %2682 = vmatmul.mubr.bf16.vlgmr.msra.gmra.mrb[0].mxu0 %v10518_v12 }
 0x1e9   :  { %2689 = vmatprep.mubr.bf16.mxu0 %v10521_v13  ;;  %v10605_v13 = vld [vmem:[%s14453_s1 + $0x3ac] ss:$16 sps:$4 sm:$0xff]  }
 0x1f0   :  { %2690 = vmatmul.mubr.bf16.gmra.mrb[4].mxu0 %v10523_v14 }
 0x1f1   :  { %2697 = vmatprep.mubr.bf16.mxu0 %v10524_v15 }
 0x1f8   :  { %2698 = vmatmul.mubr.bf16.gmra.mrb[8].mxu0 %v10526_v16 }
 0x1f9   :  { %2705 = vmatprep.mubr.bf16.mxu0 %v10527_v17  ;;  %v10607_v17 = vld [vmem:[%s14453_s1 + $0x3a8] ss:$16 sps:$4 sm:$0xff]  }
 0x200   :  { %2706 = vmatmul.mubr.bf16.gmra.mrb[12].mxu0 %v10529_v18 }
 0x201   :  { %2713 = vmatprep.mubr.bf16.mxu0 %v10530_v19  ;;  %v10608_v19 = vld [vmem:[%s14453_s1 + $0x3cc] ss:$16 sps:$4 sm:$0xff]  }
 0x208   :  { %2714 = vmatmul.mubr.bf16.gmra.mrb[16].mxu0 %v10532_v20 }
 0x209   :  { %2721 = vmatprep.mubr.bf16.mxu0 %v10533_v21 }
 0x210   :  { %2722 = vmatmul.mubr.bf16.gmra.mrb[20].mxu0 %v10535_v22 }
 0x211   :  { %2729 = vmatprep.mubr.bf16.mxu0 %v10536_v23  ;;  %v10610_v23 = vld [vmem:[%s14453_s1 + $0x3c8] ss:$16 sps:$4 sm:$0xff]  }
 0x218   :  { %2730 = vmatmul.mubr.bf16.gmra.mrb[24].mxu0 %v10538_v24 }
 0x219   :  { %2737 = vmatprep.mubr.bf16.mxu0 %v10539_v25  ;;  %v10611_v25 = vld [vmem:[%s14453_s1 + $0x3ec] ss:$16 sps:$4 sm:$0xff]  }
 0x220   :  { %2738 = vmatmul.mubr.bf16.gmra.mrb[28].mxu0 %v10541_v26 }
 0x221   :  { %2745 = vmatprep.mubr.bf16.mxu0 %v10542_v27 }
 0x228   :  { %2746 = vmatmul.mubr.bf16.gmra.mrb[32].mxu0 %v10544_v28 }
 0x229   :  { %2753 = vmatprep.mubr.bf16.mxu0 %v10545_v29  ;;  %v10613_v29 = vld [vmem:[%s14453_s1 + $0x3e8] ss:$16 sps:$4 sm:$0xff]  }
 0x230   :  { %2754 = vmatmul.mubr.bf16.gmra.mrb[36].mxu0 %v10547_v30 }
 0x231   :  { %2761 = vmatprep.mubr.bf16.mxu0 %v10548_v31  ;;  %v10614_v31 = vld [vmem:[%s14453_s1 + $0x40c] ss:$16 sps:$4 sm:$0xff]  }
 0x238   :  { %2762 = vmatmul.mubr.bf16.gmra.mrb[40].mxu0 %v10550_v32 }
 0x239   :  { %2769 = vmatprep.mubr.bf16.mxu0 %v10551_v33 }
 0x240   :  { %2770 = vmatmul.mubr.bf16.gmra.mrb[44].mxu0 %v10553_v34 }
 0x241   :  { %2777 = vmatprep.mubr.bf16.mxu0 %v10554_v35  ;;  %v10616_v35 = vld [vmem:[%s14453_s1 + $0x408] ss:$16 sps:$4 sm:$0xff]  }
 0x248   :  { %2778 = vmatmul.mubr.bf16.gmra.mrb[48].mxu0 %v10556_v36 }
 0x249   :  { %2785 = vmatprep.mubr.bf16.mxu0 %v10557_v37  ;;  %v10617_v37 = vld [vmem:[%s14453_s1 + $0x42c] ss:$16 sps:$4 sm:$0xff]  }
 0x250   :  { %2786 = vmatmul.mubr.bf16.gmra.mrb[52].mxu0 %v10559_v38 }
 0x251   :  { %2793 = vmatprep.mubr.bf16.mxu0 %v10560_v39 }
 0x258   :  { %2794 = vmatmul.mubr.bf16.gmra.mrb[56].mxu0 %v10562_v40 }
 0x259   :  { %2801 = vmatprep.mubr.bf16.mxu0 %v10563_v41  ;;  %v10619_v41 = vld [vmem:[%s14453_s1 + $0x428] ss:$16 sps:$4 sm:$0xff]  }
 0x260   :  { %2802 = vmatmul.mubr.bf16.gmra.mrb[60].mxu0 %v10565_v42 }
 0x261   :  { %2809 = vmatprep.mubr.bf16.mxu0 %v10566_v43  ;;  %v10620_v43 = vld [vmem:[%s14453_s1 + $0x44c] ss:$16 sps:$4 sm:$0xff]  }
 0x268   :  { %2810 = vmatmul.mubr.bf16.gmra.mrb[64].mxu0 %v10568_v44 }
 0x269   :  { %2817 = vmatprep.mubr.bf16.mxu0 %v10569_v45 }
 0x270   :  { %2818 = vmatmul.mubr.bf16.gmra.mrb[68].mxu0 %v10571_v46 }
 0x271   :  { %2825 = vmatprep.mubr.bf16.mxu0 %v10572_v47  ;;  %v10622_v47 = vld [vmem:[%s14453_s1 + $0x448] ss:$16 sps:$4 sm:$0xff]  }
 0x278   :  { %2826 = vmatmul.mubr.bf16.gmra.mrb[72].mxu0 %v10574_v48 }
 0x279   :  { %2833 = vmatprep.mubr.bf16.mxu0 %v10575_v49  ;;  %v10623_v49 = vld [vmem:[%s14453_s1 + $0x46c] ss:$16 sps:$4 sm:$0xff]  }
 0x280   :  { %2834 = vmatmul.mubr.bf16.gmra.mrb[76].mxu0 %v10577_v50 }
 0x281   :  { %2841 = vmatprep.mubr.bf16.mxu0 %v10578_v51 }
 0x288   :  { %2842 = vmatmul.mubr.bf16.gmra.mrb[80].mxu0 %v10580_v52 }
 0x289   :  { %2849 = vmatprep.mubr.bf16.mxu0 %v10581_v53  ;;  %v10625_v53 = vld [vmem:[%s14453_s1 + $0x468] ss:$16 sps:$4 sm:$0xff]  }
 0x290   :  { %2850 = vmatmul.mubr.bf16.gmra.mrb[84].mxu0 %v10583_v54 }
 0x291   :  { %2857 = vmatprep.mubr.bf16.mxu0 %v10584_v55  ;;  %v10626_v55 = vld [vmem:[%s14453_s1 + $0x48c] ss:$16 sps:$4 sm:$0xff]  }
 0x298   :  { %2858 = vmatmul.mubr.bf16.gmra.mrb[88].mxu0 %v10586_v56 }
 0x299   :  { %2865 = vmatprep.mubr.bf16.mxu0 %v10587_v57 }
 0x2a0   :  { %2866 = vmatmul.mubr.bf16.gmra.mrb[92].mxu0 %v10589_v58  ;;  %v10676_v58 = vld [vmem:[%s14453_s1 + $0x684] ss:$16 sps:$4 sm:$0xff]  }
 0x2a1   :  { %2873 = vmatprep.mubr.bf16.mxu0 %v10590_v59  ;;  %2488 = vmatprep.mubr.bf16.mxu1 %v10676_v58  ;;  %v10706_v58 = vld [vmem:[%s14453_s1 + $0x720] ss:$16 sps:$4 sm:$0xff]  }
 0x2a8   :  { %2874 = vmatmul.mubr.bf16.gmra.mrb[96].mxu0 %v10592_v60  ;;  %v10674_v60 = vld [vmem:[%s14453_s1 + $0x680] ss:$16 sps:$4 sm:$0xff]  }
 0x2a9   :  { %2881 = vmatprep.mubr.bf16.mxu0 %v10593_v61  ;;  %2489 = vmatmul.mubr.bf16.vlgmr.msra.gmra.mrb[0].mxu1 %v10674_v60  ;;  %v10643_v60 = vld [vmem:[%s14453_s1 + $0x528] ss:$16 sps:$4 sm:$0xff]  }
 0x2b0   :  { %2882 = vmatmul.mubr.bf16.gmra.mrb[100].mxu0 %v10595_v62  ;;  %v10628_v62 = vld [vmem:[%s14453_s1 + $0x488] ss:$16 sps:$4 sm:$0xff]  }
 0x2b1   :  { %2889 = vmatprep.mubr.bf16.mxu0 %v10596_v63 }
 0x2b8   :  { %2890 = vmatmul.mubr.bf16.gmra.mrb[104].mxu0 %v10598_v1  ;;  %v10629_v1 = vld [vmem:[%s14453_s1 + $0x4ac] ss:$16 sps:$4 sm:$0xff]  }
 0x2b9   :  { %2897 = vmatprep.mubr.bf16.mxu0 %v10599_v2 }
 0x2bb   :  { %v11982_v3 = vpop.f32.mrb[0].mxu0 }
 0x2bc   :  { %v2685_v4 = vpop.f32.mrb[1].mxu0 }
 0x2bd   :  { %v11987_v6 = vpop.f32.mrb[2].mxu0 }
 0x2be   :  { %v2688_v8 = vpop.f32.mrb[3].mxu0 }
 0x2bf   :  { %v10682_v8 = vld [vmem:[%s14453_s1 + $0x6a0] ss:$16 sps:$4 sm:$0xff]  }
 0x2c0   :  { %2898 = vmatmul.mubr.bf16.gmra.mrb[108].mxu0 %v10601_v5  ;;  %v10680_v5 = vld [vmem:[%s14453_s1 + $0x6a4] ss:$16 sps:$4 sm:$0xff]  }
 0x2c1   :  { %2905 = vmatprep.mubr.bf16.mxu0 %v10602_v7  ;;  %2496 = vmatprep.mubr.bf16.mxu1 %v10680_v5  ;;  %v10712_v5 = vld [vmem:[%s14453_s1 + $0x740] ss:$16 sps:$4 sm:$0xff]  }
 0x2c2   :  { %2497 = vmatmul.mubr.bf16.gmra.mrb[4].mxu1 %v10682_v8  ;;  %v10646_v8 = vld [vmem:[%s14453_s1 + $0x548] ss:$16 sps:$4 sm:$0xff]  }
 0x2c3   :  { %v11992_v9 = vpop.f32.mrb[4].mxu0 }
 0x2c4   :  { %v2693_v10 = vpop.f32.mrb[5].mxu0 }
 0x2c5   :  { %v11997_v12 = vpop.f32.mrb[6].mxu0 }
 0x2c6   :  { %v2696_v14 = vpop.f32.mrb[7].mxu0 }
 0x2c7   :  { %v10632_v14 = vld [vmem:[%s14453_s1 + $0x4cc] ss:$16 sps:$4 sm:$0xff]  }
 0x2c8   :  { %2906 = vmatmul.mubr.bf16.gmra.mrb[112].mxu0 %v10604_v11  ;;  %v10631_v11 = vld [vmem:[%s14453_s1 + $0x4a8] ss:$16 sps:$4 sm:$0xff]  }
 0x2c9   :  { %2913 = vmatprep.mubr.bf16.mxu0 %v10605_v13 }
 0x2cb   :  { %v12002_v15 = vpop.f32.mrb[8].mxu0 }
 0x2cc   :  { %v2701_v16 = vpop.f32.mrb[9].mxu0 }
 0x2cd   :  { %v12007_v18 = vpop.f32.mrb[10].mxu0 }
 0x2ce   :  { %v2704_v20 = vpop.f32.mrb[11].mxu0 }
 0x2d0   :  { %2914 = vmatmul.mubr.bf16.gmra.mrb[116].mxu0 %v10607_v17 }
 0x2d1   :  { %2921 = vmatprep.mubr.bf16.mxu0 %v10608_v19  ;;  %v10686_v19 = vld [vmem:[%s14453_s1 + $0x6c4] ss:$16 sps:$4 sm:$0xff]  }
 0x2d2   :  { %2504 = vmatprep.mubr.bf16.mxu1 %v10686_v19  ;;  %v10718_v19 = vld [vmem:[%s14453_s1 + $0x760] ss:$16 sps:$4 sm:$0xff]  }
 0x2d3   :  { %v12012_v21 = vpop.f32.mrb[12].mxu0 }
 0x2d4   :  { %v2709_v22 = vpop.f32.mrb[13].mxu0 }
 0x2d5   :  { %v12017_v24 = vpop.f32.mrb[14].mxu0  ;;  %v10688_v22 = vld [vmem:[%s14453_s1 + $0x6c0] ss:$16 sps:$4 sm:$0xff]  }
 0x2d6   :  { %v2712_v26 = vpop.f32.mrb[15].mxu0  ;;  %2505 = vmatmul.mubr.bf16.gmra.mrb[8].mxu1 %v10688_v22  ;;  %v10649_v22 = vld [vmem:[%s14453_s1 + $0x568] ss:$16 sps:$4 sm:$0xff]  }
 0x2d8   :  { %2922 = vmatmul.mubr.bf16.gmra.mrb[120].mxu0 %v10610_v23 }
 0x2d9   :  { %2929 = vmatprep.mubr.bf16.mxu0 %v10611_v25  ;;  %v10634_v25 = vld [vmem:[%s14453_s1 + $0x4c8] ss:$16 sps:$4 sm:$0xff]  }
 0x2db   :  { %v12022_v27 = vpop.f32.mrb[16].mxu0 }
 0x2dc   :  { %v2717_v28 = vpop.f32.mrb[17].mxu0 }
 0x2dd   :  { %v12027_v30 = vpop.f32.mrb[18].mxu0  ;;  %v10635_v28 = vld [vmem:[%s14453_s1 + $0x4ec] ss:$16 sps:$4 sm:$0xff]  }
 0x2de   :  { %v2720_v32 = vpop.f32.mrb[19].mxu0 }
 0x2df   :  { %v10692_v32 = vld [vmem:[%s14453_s1 + $0x6e4] ss:$16 sps:$4 sm:$0xff]  }
 0x2e0   :  { %2930 = vmatmul.mubr.bf16.gmra.mrb[124].mxu0 %v10613_v29  ;;  %2512 = vmatprep.mubr.bf16.mxu1 %v10692_v32  ;;  %v10724_v32 = vld [vmem:[%s14453_s1 + $0x780] ss:$16 sps:$4 sm:$0xff]  }
 0x2e1   :  { %2937 = vmatprep.mubr.bf16.mxu0 %v10614_v31 }
 0x2e3   :  { %v12032_v33 = vpop.f32.mrb[20].mxu0 }
 0x2e4   :  { %v2725_v34 = vpop.f32.mrb[21].mxu0 }
 0x2e5   :  { %v12037_v36 = vpop.f32.mrb[22].mxu0 }
 0x2e6   :  { %v2728_v38 = vpop.f32.mrb[23].mxu0 }
 0x2e7   :  { %v10637_v38 = vld [vmem:[%s14453_s1 + $0x4e8] ss:$16 sps:$4 sm:$0xff]  }
 0x2e8   :  { %2938 = vmatmul.mubr.bf16.gmra.mrb[128].mxu0 %v10616_v35  ;;  %v10694_v35 = vld [vmem:[%s14453_s1 + $0x6e0] ss:$16 sps:$4 sm:$0xff]  }
 0x2e9   :  { %2945 = vmatprep.mubr.bf16.mxu0 %v10617_v37  ;;  %2513 = vmatmul.mubr.bf16.gmra.mrb[12].mxu1 %v10694_v35  ;;  %v10652_v35 = vld [vmem:[%s14453_s1 + $0x588] ss:$16 sps:$4 sm:$0xff]  }
 0x2eb   :  { %v12042_v39 = vpop.f32.mrb[24].mxu0 }
 0x2ec   :  { %v2733_v40 = vpop.f32.mrb[25].mxu0 }
 0x2ed   :  { %v12047_v42 = vpop.f32.mrb[26].mxu0 }
 0x2ee   :  { %v2736_v44 = vpop.f32.mrb[27].mxu0 }
 0x2f0   :  { %2946 = vmatmul.mubr.bf16.gmra.mrb[132].mxu0 %v10619_v41  ;;  %v10638_v41 = vld [vmem:[%s14453_s1 + $0x50c] ss:$16 sps:$4 sm:$0xff]  }
 0x2f1   :  { %2953 = vmatprep.mubr.bf16.mxu0 %v10620_v43 }
 0x2f3   :  { %v12052_v45 = vpop.f32.mrb[28].mxu0 }
 0x2f4   :  { %v2741_v46 = vpop.f32.mrb[29].mxu0 }
 0x2f5   :  { %v12057_v48 = vpop.f32.mrb[30].mxu0  ;;  %v10698_v46 = vld [vmem:[%s14453_s1 + $0x704] ss:$16 sps:$4 sm:$0xff]  }
 0x2f6   :  { %v2744_v50 = vpop.f32.mrb[31].mxu0  ;;  %2520 = vmatprep.mubr.bf16.mxu1 %v10698_v46  ;;  %v10730_v46 = vld [vmem:[%s14453_s1 + $0x7a0] ss:$16 sps:$4 sm:$0xff]  }
 0x2f8   :  { %2954 = vmatmul.mubr.bf16.gmra.mrb[136].mxu0 %v10622_v47 }
 0x2f9   :  { %2961 = vmatprep.mubr.bf16.mxu0 %v10623_v49  ;;  %v10700_v49 = vld [vmem:[%s14453_s1 + $0x700] ss:$16 sps:$4 sm:$0xff]  }
 0x2fa   :  { %2521 = vmatmul.mubr.bf16.gmra.mrb[16].mxu1 %v10700_v49  ;;  %v10655_v49 = vld [vmem:[%s14453_s1 + $0x5a8] ss:$16 sps:$4 sm:$0xff]  }
 0x2fb   :  { %v2747_v51 = vpop.f32.mrb[32].mxu0 }
 0x2fc   :  { %v2749_v52 = vpop.f32.mrb[33].mxu0 }
 0x2fd   :  { %v2750_v54 = vpop.f32.mrb[34].mxu0 }
 0x2fe   :  { %v9940_v56 = vpack.i.bf16 %v2750_v54, %v2747_v51  ;;  %v2752_v57 = vpop.f32.mrb[35].mxu0  ;;  %v10640_v51 = vld [vmem:[%s14453_s1 + $0x508] ss:$16 sps:$4 sm:$0xff]  }
 0x300   :  { %2962 = vmatmul.mubr.bf16.gmra.mrb[140].mxu0 %v10625_v53  ;;  %9941 = vrot.lane.b32.xlu0 %v9940_v56, %s11263_s19  ;;  %v10641_v53 = vld [vmem:[%s14453_s1 + $0x52c] ss:$16 sps:$4 sm:$0xff]   ;;  %v10704_v56 = vld [vmem:[%s14453_s1 + $0x724] ss:$16 sps:$4 sm:$0xff]  }
 0x301   :  { %2969 = vmatprep.mubr.bf16.mxu0 %v10626_v55  ;;  %2528 = vmatprep.mubr.bf16.mxu1 %v10704_v56  ;;  %v10736_v56 = vld [vmem:[%s14453_s1 + $0x7c0] ss:$16 sps:$4 sm:$0xff]  }
 0x302   :  { %2529 = vmatmul.mubr.bf16.gmra.mrb[20].mxu1 %v10706_v58  ;;  %v10658_v58 = vld [vmem:[%s14453_s1 + $0x5c8] ss:$16 sps:$4 sm:$0xff]  }
 0x303   :  { %v2755_v59 = vpop.f32.mrb[36].mxu0 }
 0x304   :  { %v2757_v61 = vpop.f32.mrb[37].mxu0 }
 0x305   :  { %v2758_v63 = vpop.f32.mrb[38].mxu0 }
 0x306   :  { %v9945_v2 = vpack.i.bf16 %v2758_v63, %v2755_v59  ;;  %v2760_v4 = vpop.f32.mrb[39].mxu0 }
 0x308   :  { %2970 = vmatmul.mubr.bf16.gmra.mrb[144].mxu0 %v10628_v62  ;;  %9946 = vrot.lane.b32.xlu0 %v9945_v2, %s11263_s19  ;;  %v10644_v62 = vld [vmem:[%s14453_s1 + $0x54c] ss:$16 sps:$4 sm:$0xff]   ;;  %v10710_v2 = vld [vmem:[%s14453_s1 + $0x744] ss:$16 sps:$4 sm:$0xff]  }
 0x309   :  { %2977 = vmatprep.mubr.bf16.mxu0 %v10629_v1  ;;  %2536 = vmatprep.mubr.bf16.mxu1 %v10710_v2  ;;  %v10742_v2 = vld [vmem:[%s14453_s1 + $0x7e0] ss:$16 sps:$4 sm:$0xff]  }
 0x30a   :  { %2537 = vmatmul.mubr.bf16.gmra.mrb[24].mxu1 %v10712_v5  ;;  %v10661_v5 = vld [vmem:[%s14453_s1 + $0x5e8] ss:$16 sps:$4 sm:$0xff]  }
 0x30b   :  { %v2763_v7 = vpop.f32.mrb[40].mxu0 }
 0x30c   :  { %v2765_v10 = vpop.f32.mrb[41].mxu0 }
 0x30d   :  { %v2766_v13 = vpop.f32.mrb[42].mxu0 }
 0x30e   :  { %v9950_v16 = vpack.i.bf16 %v2766_v13, %v2763_v7  ;;  %v2768_v17 = vpop.f32.mrb[43].mxu0 }
 0x310   :  { %2978 = vmatmul.mubr.bf16.gmra.mrb[148].mxu0 %v10631_v11  ;;  %9951 = vrot.lane.b32.xlu1 %v9950_v16, %s11263_s19  ;;  %v10647_v11 = vld [vmem:[%s14453_s1 + $0x56c] ss:$16 sps:$4 sm:$0xff]   ;;  %v10716_v16 = vld [vmem:[%s14453_s1 + $0x764] ss:$16 sps:$4 sm:$0xff]  }
 0x311   :  { %2985 = vmatprep.mubr.bf16.mxu0 %v10632_v14  ;;  %2544 = vmatprep.mubr.bf16.mxu1 %v10716_v16  ;;  %v10748_v16 = vld [vmem:[%s14453_s1 + $0x800] ss:$16 sps:$4 sm:$0xff]  }
 0x312   :  { %2545 = vmatmul.mubr.bf16.gmra.mrb[28].mxu1 %v10718_v19  ;;  %v10664_v19 = vld [vmem:[%s14453_s1 + $0x608] ss:$16 sps:$4 sm:$0xff]  }
 0x313   :  { %v2771_v20 = vpop.f32.mrb[44].mxu0 }
 0x314   :  { %v2773_v23 = vpop.f32.mrb[45].mxu0 }
 0x315   :  { %v2774_v26 = vpop.f32.mrb[46].mxu0 }
 0x316   :  { %v9955_v29 = vpack.i.bf16 %v2774_v26, %v2771_v20  ;;  %v2776_v31 = vpop.f32.mrb[47].mxu0 }
 0x318   :  { %2986 = vmatmul.mubr.bf16.gmra.mrb[152].mxu0 %v10634_v25  ;;  %9956 = vrot.lane.b32.xlu1 %v9955_v29, %s11263_s19  ;;  %v10650_v25 = vld [vmem:[%s14453_s1 + $0x58c] ss:$16 sps:$4 sm:$0xff]   ;;  %v10722_v29 = vld [vmem:[%s14453_s1 + $0x784] ss:$16 sps:$4 sm:$0xff]  }
 0x319   :  { %2993 = vmatprep.mubr.bf16.mxu0 %v10635_v28  ;;  %2552 = vmatprep.mubr.bf16.mxu1 %v10722_v29  ;;  %v10754_v29 = vld [vmem:[%s14453_s1 + $0x820] ss:$16 sps:$4 sm:$0xff]  }
 0x31a   :  { %2553 = vmatmul.mubr.bf16.gmra.mrb[32].mxu1 %v10724_v32  ;;  %v10667_v32 = vld [vmem:[%s14453_s1 + $0x628] ss:$16 sps:$4 sm:$0xff]  }
 0x31b   :  { %v2779_v34 = vpop.f32.mrb[48].mxu0 }
 0x31c   :  { %v2781_v37 = vpop.f32.mrb[49].mxu0 }
 0x31d   :  { %v2782_v40 = vpop.f32.mrb[50].mxu0 }
 0x31e   :  { %v9960_v43 = vpack.i.bf16 %v2782_v40, %v2779_v34  ;;  %v2784_v44 = vpop.f32.mrb[51].mxu0 }
 0x320   :  { %2994 = vmatmul.mubr.bf16.gmra.mrb[156].mxu0 %v10637_v38  ;;  %9961 = vrot.lane.b32.xlu1 %v9960_v43, %s11263_s19  ;;  %v10653_v38 = vld [vmem:[%s14453_s1 + $0x5ac] ss:$16 sps:$4 sm:$0xff]   ;;  %v10728_v43 = vld [vmem:[%s14453_s1 + $0x7a4] ss:$16 sps:$4 sm:$0xff]  }
 0x321   :  { %3001 = vmatprep.mubr.bf16.mxu0 %v10638_v41  ;;  %2560 = vmatprep.mubr.bf16.mxu1 %v10728_v43 }
 0x322   :  { %2561 = vmatmul.mubr.bf16.gmra.mrb[36].mxu1 %v10730_v46 }
 0x323   :  { %v2787_v47 = vpop.f32.mrb[52].mxu0 }
 0x324   :  { %v2789_v50 = vpop.f32.mrb[53].mxu0 }
 0x325   :  { %v2790_v52 = vpop.f32.mrb[54].mxu0 }
 0x326   :  { %v9965_v54 = vpack.i.bf16 %v2790_v52, %v2787_v47  ;;  %v2792_v55 = vpop.f32.mrb[55].mxu0 }
 0x328   :  { %3002 = vmatmul.mubr.bf16.gmra.mrb[160].mxu0 %v10640_v51  ;;  %9966 = vrot.lane.b32.xlu1 %v9965_v54, %s11263_s19  ;;  %v10656_v51 = vld [vmem:[%s14453_s1 + $0x5cc] ss:$16 sps:$4 sm:$0xff]   ;;  %v10734_v54 = vld [vmem:[%s14453_s1 + $0x7c4] ss:$16 sps:$4 sm:$0xff]  }
 0x329   :  { %3009 = vmatprep.mubr.bf16.mxu0 %v10641_v53  ;;  %2568 = vmatprep.mubr.bf16.mxu1 %v10734_v54  ;;  %v10671_v54 = vld [vmem:[%s14453_s1 + $0x66c] ss:$16 sps:$4 sm:$0xff]  }
 0x32a   :  { %2569 = vmatmul.mubr.bf16.gmra.mrb[40].mxu1 %v10736_v56 }
 0x32b   :  { %v2795_v57 = vpop.f32.mrb[56].mxu0 }
 0x32c   :  { %v2797_v59 = vpop.f32.mrb[57].mxu0 }
 0x32d   :  { %v2798_v61 = vpop.f32.mrb[58].mxu0 }
 0x32e   :  { %v9970_v63 = vpack.i.bf16 %v2798_v61, %v2795_v57  ;;  %v2800_v1 = vpop.f32.mrb[59].mxu0 }
 0x330   :  { %3010 = vmatmul.mubr.bf16.gmra.mrb[164].mxu0 %v10643_v60  ;;  %9971 = vrot.lane.b32.xlu1 %v9970_v63, %s11263_s19  ;;  %v10659_v60 = vld [vmem:[%s14453_s1 + $0x5ec] ss:$16 sps:$4 sm:$0xff]   ;;  %v10740_v63 = vld [vmem:[%s14453_s1 + $0x7e4] ss:$16 sps:$4 sm:$0xff]  }
 0x331   :  { %3017 = vmatprep.mubr.bf16.mxu0 %v10644_v62  ;;  %2576 = vmatprep.mubr.bf16.mxu1 %v10740_v63 }
 0x332   :  { %2577 = vmatmul.mubr.bf16.gmra.mrb[44].mxu1 %v10742_v2  ;;  %v10770_v2 = vld [vmem:[%s14453_s1 + $0x884] ss:$16 sps:$4 sm:$0xff]  }
 0x333   :  { %v2803_v4 = vpop.f32.mrb[60].mxu0 }
 0x334   :  { %v2805_v7 = vpop.f32.mrb[61].mxu0 }
 0x335   :  { %v2806_v10 = vpop.f32.mrb[62].mxu0 }
 0x336   :  { %v9975_v13 = vpack.i.bf16 %v2806_v10, %v2803_v4  ;;  %v2808_v14 = vpop.f32.mrb[63].mxu0 }
 0x338   :  { %3018 = vmatmul.mubr.bf16.gmra.mrb[168].mxu0 %v10646_v8  ;;  %9976 = vrot.lane.b32.xlu1 %v9975_v13, %s11263_s19  ;;  %s11264_s19 = smov 6   ;;  %v10662_v8 = vld [vmem:[%s14453_s1 + $0x60c] ss:$16 sps:$4 sm:$0xff]   ;;  %v10746_v13 = vld [vmem:[%s14453_s1 + $0x804] ss:$16 sps:$4 sm:$0xff]  }
 0x339   :  { %3025 = vmatprep.mubr.bf16.mxu0 %v10647_v11  ;;  %2584 = vmatprep.mubr.bf16.mxu1 %v10746_v13 }
 0x33a   :  { %2585 = vmatmul.mubr.bf16.gmra.mrb[48].mxu1 %v10748_v16 }
 0x33b   :  { %v2811_v17 = vpop.f32.mrb[64].mxu0 }
 0x33c   :  { %v2813_v20 = vpop.f32.mrb[65].mxu0 }
 0x33d   :  { %v2814_v23 = vpop.f32.mrb[66].mxu0 }
 0x33e   :  { %v9980_v26 = vpack.i.bf16 %v2814_v23, %v2811_v17  ;;  %v2816_v28 = vpop.f32.mrb[67].mxu0 }
 0x340   :  { %3026 = vmatmul.mubr.bf16.gmra.mrb[172].mxu0 %v10649_v22  ;;  %9981 = vrot.lane.b32.xlu1 %v9980_v26, %s11264_s19  ;;  %v10665_v22 = vld [vmem:[%s14453_s1 + $0x62c] ss:$16 sps:$4 sm:$0xff]   ;;  %v10752_v26 = vld [vmem:[%s14453_s1 + $0x824] ss:$16 sps:$4 sm:$0xff]  }
 0x341   :  { %3033 = vmatprep.mubr.bf16.mxu0 %v10650_v25  ;;  %2592 = vmatprep.mubr.bf16.mxu1 %v10752_v26  ;;  %v10778_v26 = vld [vmem:[%s14453_s1 + $0x8a0] ss:$16 sps:$4 sm:$0xff]  }
 0x342   :  { %2593 = vmatmul.mubr.bf16.gmra.mrb[52].mxu1 %v10754_v29  ;;  %v10685_v29 = vld [vmem:[%s14453_s1 + $0x6a8] ss:$16 sps:$4 sm:$0xff]  }
 0x343   :  { %v2819_v31 = vpop.f32.mrb[68].mxu0 }
 0x344   :  { %v2821_v34 = vpop.f32.mrb[69].mxu0 }
 0x345   :  { %v2822_v37 = vpop.f32.mrb[70].mxu0 }
 0x346   :  { %v9985_v40 = vpack.i.bf16 %v2822_v37, %v2819_v31  ;;  %v2824_v41 = vpop.f32.mrb[71].mxu0 }
 0x347   :  { %v10758_v41 = vld [vmem:[%s14453_s1 + $0x844] ss:$16 sps:$4 sm:$0xff]  }
 0x348   :  { %3034 = vmatmul.mubr.bf16.gmra.mrb[176].mxu0 %v10652_v35  ;;  %9986 = vrot.lane.b32.xlu1 %v9985_v40, %s11264_s19  ;;  %v10668_v35 = vld [vmem:[%s14453_s1 + $0x64c] ss:$16 sps:$4 sm:$0xff]  }
 0x349   :  { %3041 = vmatprep.mubr.bf16.mxu0 %v10653_v38  ;;  %2600 = vmatprep.mubr.bf16.mxu1 %v10758_v41 }
 0x34b   :  { %v2827_v44 = vpop.f32.mrb[72].mxu0 }
 0x34c   :  { %v2829_v47 = vpop.f32.mrb[73].mxu0 }
 0x34d   :  { %v2830_v50 = vpop.f32.mrb[74].mxu0  ;;  %v10760_v47 = vld [vmem:[%s14453_s1 + $0x840] ss:$16 sps:$4 sm:$0xff]  }
 0x34e   :  { %v9990_v52 = vpack.i.bf16 %v2830_v50, %v2827_v44  ;;  %v2832_v53 = vpop.f32.mrb[75].mxu0  ;;  %v10670_v50 = vld [vmem:[%s14453_s1 + $0x648] ss:$16 sps:$4 sm:$0xff]   ;;  %2601 = vmatmul.mubr.bf16.gmra.mrb[56].mxu1 %v10760_v47 }
 0x34f   :  { %v10691_v47 = vld [vmem:[%s14453_s1 + $0x6c8] ss:$16 sps:$4 sm:$0xff]  }
 0x350   :  { %3042 = vmatmul.mubr.bf16.gmra.mrb[180].mxu0 %v10655_v49  ;;  %9991 = vrot.lane.b32.xlu0 %v9990_v52, %s11264_s19 }
 0x351   :  { %3049 = vmatprep.mubr.bf16.mxu0 %v10656_v51 }
 0x353   :  { %v2835_v55 = vpop.f32.mrb[76].mxu0 }
 0x354   :  { %v2837_v57 = vpop.f32.mrb[77].mxu0 }
 0x355   :  { %v2838_v59 = vpop.f32.mrb[78].mxu0 }
 0x356   :  { %v9995_v61 = vpack.i.bf16 %v2838_v59, %v2835_v55  ;;  %v2840_v62 = vpop.f32.mrb[79].mxu0  ;;  %v10673_v59 = vld [vmem:[%s14453_s1 + $0x668] ss:$16 sps:$4 sm:$0xff]  }
 0x358   :  { %3050 = vmatmul.mubr.bf16.gmra.mrb[184].mxu0 %v10658_v58  ;;  %9996 = vrot.lane.b32.xlu1 %v9995_v61, %s11264_s19  ;;  %v10677_v61 = vld [vmem:[%s14453_s1 + $0x68c] ss:$16 sps:$4 sm:$0xff]  }
 0x359   :  { %3057 = vmatprep.mubr.bf16.mxu0 %v10659_v60 }
 0x35b   :  { %v2843_v1 = vpop.f32.mrb[80].mxu0 }
 0x35c   :  { %v2845_v4 = vpop.f32.mrb[81].mxu0 }
 0x35d   :  { %v2846_v7 = vpop.f32.mrb[82].mxu0 }
 0x35e   :  { %v10000_v10 = vpack.i.bf16 %v2846_v7, %v2843_v1  ;;  %v2848_v11 = vpop.f32.mrb[83].mxu0 }
 0x35f   :  { %v10679_v11 = vld [vmem:[%s14453_s1 + $0x688] ss:$16 sps:$4 sm:$0xff]  }
 0x360   :  { %3058 = vmatmul.mubr.bf16.gmra.mrb[188].mxu0 %v10661_v5  ;;  %10001 = vrot.lane.b32.xlu0 %v10000_v10, %s11264_s19 }
 0x361   :  { %3065 = vmatprep.mubr.bf16.mxu0 %v10662_v8  ;;  %v10772_v8 = vld [vmem:[%s14453_s1 + $0x880] ss:$16 sps:$4 sm:$0xff]  }
 0x363   :  { %v2851_v14 = vpop.f32.mrb[84].mxu0 }
 0x364   :  { %v2853_v17 = vpop.f32.mrb[85].mxu0 }
 0x365   :  { %v2854_v20 = vpop.f32.mrb[86].mxu0  ;;  %v10683_v17 = vld [vmem:[%s14453_s1 + $0x6ac] ss:$16 sps:$4 sm:$0xff]  }
 0x366   :  { %v10005_v23 = vpack.i.bf16 %v2854_v20, %v2851_v14  ;;  %v2856_v25 = vpop.f32.mrb[87].mxu0 }
 0x368   :  { %3066 = vmatmul.mubr.bf16.gmra.mrb[192].mxu0 %v10664_v19  ;;  %10006 = vrot.lane.b32.xlu1 %v10005_v23, %s11264_s19 }
 0x369   :  { %3073 = vmatprep.mubr.bf16.mxu0 %v10665_v22 }
 0x36b   :  { %v2859_v28 = vpop.f32.mrb[88].mxu0 }
 0x36c   :  { %v2861_v31 = vpop.f32.mrb[89].mxu0 }
 0x36d   :  { %v2862_v34 = vpop.f32.mrb[90].mxu0 }
 0x36e   :  { %v10010_v37 = vpack.i.bf16 %v2862_v34, %v2859_v28  ;;  %v2864_v38 = vpop.f32.mrb[91].mxu0 }
 0x370   :  { %3074 = vmatmul.mubr.bf16.gmra.mrb[196].mxu0 %v10667_v32  ;;  %10011 = vrot.lane.b32.xlu0 %v10010_v37, %s11264_s19 }
 0x371   :  { %3081 = vmatprep.mubr.bf16.mxu0 %v10668_v35  ;;  %v10689_v35 = vld [vmem:[%s14453_s1 + $0x6cc] ss:$16 sps:$4 sm:$0xff]  }
 0x372   :  { %v9942_v40 = vpop.permute.xlu0 %9941 }
 0x373   :  { %v9944_v43 = vunpack.i.h.bf16 %v9942_v40  ;;  %v9943_v44 = vunpack.i.l.bf16 %v9942_v40  ;;  %v2867_v46 = vpop.f32.mrb[92].mxu0 }
 0x374   :  { %v2869_v49 = vpop.f32.mrb[93].mxu0 }
 0x375   :  { %v12262_v51 = vsel %vm3770_vm0, %v11987_v6, %v9944_v43  ;;  %v12266_v52 = vsel %vm3770_vm0, %v11982_v3, %v9943_v44  ;;  %v2870_v53 = vpop.f32.mrb[94].mxu0  ;;  %v10764_v6 = vld [vmem:[%s14453_s1 + $0x864] ss:$16 sps:$4 sm:$0xff]   ;;  %v10766_v3 = vld [vmem:[%s14453_s1 + $0x860] ss:$16 sps:$4 sm:$0xff]  }
 0x376   :  { %v10015_v55 = vpack.i.bf16 %v2870_v53, %v2867_v46  ;;  %v2872_v56 = vpop.f32.mrb[95].mxu0  ;;  %2608 = vmatprep.mubr.bf16.mxu1 %v10764_v6  ;;  %v10784_v44 = vld [vmem:[%s14453_s1 + $0x8c0] ss:$16 sps:$4 sm:$0xff]  }
 0x377   :  { %2609 = vmatmul.mubr.bf16.gmra.mrb[60].mxu1 %v10766_v3 }
 0x378   :  { %3082 = vmatmul.mubr.bf16.gmra.mrb[200].mxu0 %v10670_v50  ;;  %10016 = vrot.lane.b32.xlu1 %v10015_v55, %s11264_s19  ;;  %s11265_s19 = smov 9  }
 0x379   :  { %3089 = vmatprep.mubr.bf16.mxu0 %v10671_v54  ;;  %2616 = vmatprep.mubr.bf16.mxu1 %v10770_v2  ;;  %v10695_v54 = vld [vmem:[%s14453_s1 + $0x6ec] ss:$16 sps:$4 sm:$0xff]  }
 0x37b   :  { %v2875_v57 = vpop.f32.mrb[96].mxu0 }
 0x37c   :  { %v2877_v58 = vpop.f32.mrb[97].mxu0 }
 0x37d   :  { %v2878_v60 = vpop.f32.mrb[98].mxu0  ;;  %v10790_v58 = vld [vmem:[%s14453_s1 + $0x8e0] ss:$16 sps:$4 sm:$0xff]  }
 0x37e   :  { %v10020_v62 = vpack.i.bf16 %v2878_v60, %v2875_v57  ;;  %v2880_v63 = vpop.f32.mrb[99].mxu0  ;;  %v10697_v60 = vld [vmem:[%s14453_s1 + $0x6e8] ss:$16 sps:$4 sm:$0xff]  }
 0x37f   :  { %2617 = vmatmul.mubr.bf16.gmra.mrb[64].mxu1 %v10772_v8 }
 0x380   :  { %3090 = vmatmul.mubr.bf16.gmra.mrb[204].mxu0 %v10673_v59  ;;  %10021 = vrot.lane.b32.xlu0 %v10020_v62, %s11265_s19 }
 0x381   :  { %3097 = vmatprep.mubr.bf16.mxu0 %v10677_v61 }
 0x382   :  { %v9952_v1 = vpop.permute.xlu1 %9951 }
 0x383   :  { %v9954_v4 = vunpack.i.h.bf16 %v9952_v1  ;;  %v9953_v5 = vunpack.i.l.bf16 %v9952_v1  ;;  %v2883_v7 = vpop.f32.mrb[100].mxu0  ;;  %v10701_v1 = vld [vmem:[%s14453_s1 + $0x70c] ss:$16 sps:$4 sm:$0xff]  }
 0x384   :  { %v2885_v10 = vpop.f32.mrb[101].mxu0 }
 0x385   :  { %v12296_v13 = vsel %vm3770_vm0, %v12007_v18, %v9954_v4  ;;  %v12300_v14 = vsel %vm3770_vm0, %v12002_v15, %v9953_v5  ;;  %v2886_v16 = vpop.f32.mrb[102].mxu0  ;;  %v10776_v18 = vld [vmem:[%s14453_s1 + $0x8a4] ss:$16 sps:$4 sm:$0xff]  }
 0x386   :  { %v10025_v19 = vpack.i.bf16 %v2886_v16, %v2883_v7  ;;  %v2888_v20 = vpop.f32.mrb[103].mxu0  ;;  %2624 = vmatprep.mubr.bf16.mxu1 %v10776_v18 }
 0x387   :  { %2625 = vmatmul.mubr.bf16.gmra.mrb[68].mxu1 %v10778_v26 }
 0x388   :  { %3098 = vmatmul.mubr.bf16.gmra.mrb[208].mxu0 %v10679_v11  ;;  %10026 = vrot.lane.b32.xlu1 %v10025_v19, %s11265_s19  ;;  %v10707_v19 = vld [vmem:[%s14453_s1 + $0x72c] ss:$16 sps:$4 sm:$0xff]  }
 0x389   :  { %3105 = vmatprep.mubr.bf16.mxu0 %v10683_v17 }
 0x38a   :  { %v9957_v22 = vpop.permute.xlu1 %9956 }
 0x38b   :  { %v9959_v23 = vunpack.i.h.bf16 %v9957_v22  ;;  %v9958_v15 = vunpack.i.l.bf16 %v9957_v22  ;;  %v2891_v25 = vpop.f32.mrb[104].mxu0 }
 0x38c   :  { %v2893_v28 = vpop.f32.mrb[105].mxu0 }
 0x38d   :  { %v12317_v31 = vsel %vm3770_vm0, %v12017_v24, %v9959_v23  ;;  %v12321_v32 = vsel %vm3770_vm0, %v12012_v21, %v9958_v15  ;;  %v2894_v34 = vpop.f32.mrb[106].mxu0  ;;  %v10782_v24 = vld [vmem:[%s14453_s1 + $0x8c4] ss:$16 sps:$4 sm:$0xff]  }
 0x38e   :  { %v10030_v37 = vpack.i.bf16 %v2894_v34, %v2891_v25  ;;  %v2896_v38 = vpop.f32.mrb[107].mxu0  ;;  %2632 = vmatprep.mubr.bf16.mxu1 %v10782_v24  ;;  %v10713_v34 = vld [vmem:[%s14453_s1 + $0x74c] ss:$16 sps:$4 sm:$0xff]  }
 0x38f   :  { %2633 = vmatmul.mubr.bf16.gmra.mrb[72].mxu1 %v10784_v44 }
 0x390   :  { %3106 = vmatmul.mubr.bf16.gmra.mrb[212].mxu0 %v10685_v29  ;;  %10031 = vrot.lane.b32.xlu0 %v10030_v37, %s11265_s19 }
 0x391   :  { %3113 = vmatprep.mubr.bf16.mxu0 %v10689_v35 }
 0x392   :  { %v9962_v40 = vpop.permute.xlu1 %9961 }
 0x393   :  { %v9964_v41 = vunpack.i.h.bf16 %v9962_v40  ;;  %v9963_v21 = vunpack.i.l.bf16 %v9962_v40  ;;  %v2899_v43 = vpop.f32.mrb[108].mxu0 }
 0x394   :  { %v2901_v46 = vpop.f32.mrb[109].mxu0 }
 0x395   :  { %v12338_v49 = vsel %vm3770_vm0, %v12027_v30, %v9964_v41  ;;  %v12342_v50 = vsel %vm3770_vm0, %v12022_v27, %v9963_v21  ;;  %v2902_v53 = vpop.f32.mrb[110].mxu0  ;;  %v10788_v30 = vld [vmem:[%s14453_s1 + $0x8e4] ss:$16 sps:$4 sm:$0xff]   ;;  %v10721_v46 = vld [vmem:[%s14453_s1 + $0x768] ss:$16 sps:$4 sm:$0xff]  }
 0x396   :  { %v10035_v55 = vpack.i.bf16 %v2902_v53, %v2899_v43  ;;  %v2904_v56 = vpop.f32.mrb[111].mxu0  ;;  %2640 = vmatprep.mubr.bf16.mxu1 %v10788_v30  ;;  %v10725_v53 = vld [vmem:[%s14453_s1 + $0x78c] ss:$16 sps:$4 sm:$0xff]  }
 0x397   :  { %2641 = vmatmul.mubr.bf16.gmra.mrb[76].mxu1 %v10790_v58 }
 0x398   :  { %3114 = vmatmul.mubr.bf16.gmra.mrb[216].mxu0 %v10691_v47  ;;  %10036 = vrot.lane.b32.xlu1 %v10035_v55, %s11265_s19 }
 0x399   :  { %3121 = vmatprep.mubr.bf16.mxu0 %v10695_v54  ;;  %v12412_v54 = vpop.permute.xlu0 %9946 }
 0x39a   :  { %v9967_v6 = vpop.permute.xlu1 %9966 }
 0x39b   :  { %v9969_v57 = vunpack.i.h.bf16 %v9967_v6  ;;  %v9968_v27 = vunpack.i.l.bf16 %v9967_v6  ;;  %v2907_v3 = vpop.f32.mrb[112].mxu0 }
 0x39c   :  { %v2909_v59 = vpop.f32.mrb[113].mxu0 }
 0x39d   :  { %v12359_v61 = vsel %vm3770_vm0, %v12037_v36, %v9969_v57  ;;  %v12363_v62 = vsel %vm3770_vm0, %v12032_v33, %v9968_v27  ;;  %v2910_v63 = vpop.f32.mrb[114].mxu0  ;;  %v10703_v33 = vld [vmem:[%s14453_s1 + $0x708] ss:$16 sps:$4 sm:$0xff]  }
 0x39e   :  { %v10040_v2 = vpack.i.bf16 %v2910_v63, %v2907_v3  ;;  %v2912_v4 = vpop.f32.mrb[115].mxu0  ;;  %v10727_v59 = vld [vmem:[%s14453_s1 + $0x788] ss:$16 sps:$4 sm:$0xff]  }
 0x3a0   :  { %3122 = vmatmul.mubr.bf16.gmra.mrb[220].mxu0 %v10697_v60  ;;  %10041 = vrot.lane.b32.xlu0 %v10040_v2, %s11265_s19  ;;  %v10731_v2 = vld [vmem:[%s14453_s1 + $0x7ac] ss:$16 sps:$4 sm:$0xff]  }
 0x3a1   :  { %3129 = vmatprep.mubr.bf16.mxu0 %v10701_v1 }
 0x3a2   :  { %v9972_v5 = vpop.permute.xlu1 %9971 }
 0x3a3   :  { %v9974_v7 = vunpack.i.h.bf16 %v9972_v5  ;;  %v9973_v36 = vunpack.i.l.bf16 %v9972_v5  ;;  %v2915_v8 = vpop.f32.mrb[116].mxu0 }
 0x3a4   :  { %v2917_v10 = vpop.f32.mrb[117].mxu0 }
 0x3a5   :  { %v12374_v11 = vsel %vm3770_vm0, %v12047_v42, %v9974_v7  ;;  %v12378_v16 = vsel %vm3770_vm0, %v12042_v39, %v9973_v36  ;;  %v2918_v17 = vpop.f32.mrb[118].mxu0  ;;  %v10709_v39 = vld [vmem:[%s14453_s1 + $0x728] ss:$16 sps:$4 sm:$0xff]  }
 0x3a6   :  { %v10045_v20 = vpack.i.bf16 %v2918_v17, %v2915_v8  ;;  %v2920_v22 = vpop.f32.mrb[119].mxu0 }
 0x3a7   :  { %v10737_v22 = vld [vmem:[%s14453_s1 + $0x7cc] ss:$16 sps:$4 sm:$0xff]  }
 0x3a8   :  { %3130 = vmatmul.mubr.bf16.gmra.mrb[224].mxu0 %v10703_v33  ;;  %10046 = vrot.lane.b32.xlu1 %v10045_v20, %s11265_s19 }
 0x3a9   :  { %3137 = vmatprep.mubr.bf16.mxu0 %v10707_v19 }
 0x3aa   :  { %v9977_v18 = vpop.permute.xlu1 %9976 }
 0x3ab   :  { %v9979_v23 = vunpack.i.h.bf16 %v9977_v18  ;;  %v9978_v15 = vunpack.i.l.bf16 %v9977_v18  ;;  %v2923_v42 = vpop.f32.mrb[120].mxu0 }
 0x3ac   :  { %v2925_v25 = vpop.f32.mrb[121].mxu0 }
 0x3ad   :  { %v12389_v26 = vsel %vm3770_vm0, %v12057_v48, %v9979_v23  ;;  %v12393_v28 = vsel %vm3770_vm0, %v12052_v45, %v9978_v15  ;;  %v2926_v29 = vpop.f32.mrb[122].mxu0  ;;  %v10715_v48 = vld [vmem:[%s14453_s1 + $0x748] ss:$16 sps:$4 sm:$0xff]   ;;  %v10719_v45 = vld [vmem:[%s14453_s1 + $0x76c] ss:$16 sps:$4 sm:$0xff]  }
 0x3ae   :  { %v10050_v35 = vpack.i.bf16 %v2926_v29, %v2923_v42  ;;  %v2928_v37 = vpop.f32.mrb[123].mxu0 }
 0x3af   :  { %v10743_v37 = vld [vmem:[%s14453_s1 + $0x7ec] ss:$16 sps:$4 sm:$0xff]  }
 0x3b0   :  { %3138 = vmatmul.mubr.bf16.gmra.mrb[228].mxu0 %v10709_v39  ;;  %10051 = vrot.lane.b32.xlu0 %v10050_v35, %s11265_s19 }
 0x3b1   :  { %3145 = vmatprep.mubr.bf16.mxu0 %v10713_v34 }
 0x3b2   :  { %v12415_v6 = vpop.permute.xlu1 %9981 }
 0x3b3   :  { %v2931_v38 = vpop.f32.mrb[124].mxu0 }
 0x3b4   :  { %v2933_v40 = vpop.f32.mrb[125].mxu0 }
 0x3b5   :  { %v2934_v24 = vpop.f32.mrb[126].mxu0 }
 0x3b6   :  { %v10055_v41 = vpack.i.bf16 %v2934_v24, %v2931_v38  ;;  %v2936_v21 = vpop.f32.mrb[127].mxu0 }
 0x3b8   :  { %3146 = vmatmul.mubr.bf16.gmra.mrb[232].mxu0 %v10715_v48  ;;  %10056 = vrot.lane.b32.xlu1 %v10055_v41, %s11265_s19  ;;  %v12464_v48 = vpop.f32.mrb[0].mxu1 }
 0x3b9   :  { %3153 = vmatprep.mubr.bf16.mxu0 %v10719_v45  ;;  %v2492_v24 = vpop.f32.mrb[1].mxu1 }
 0x3ba   :  { %v12431_v4 = vpop.permute.xlu1 %9986  ;;  %v12466_v45 = vpop.f32.mrb[2].mxu1  ;;  %v9984_v24 = vunpack.i.h.bf16 %v12415_v6 }
 0x3bb   :  { %v2939_v43 = vpop.f32.mrb[128].mxu0 }
 0x3bc   :  { %v2941_v44 = vpop.f32.mrb[129].mxu0 }
 0x3bd   :  { %v2942_v47 = vpop.f32.mrb[130].mxu0 }
 0x3be   :  { %v10060_v55 = vpack.i.bf16 %v2942_v47, %v2939_v43  ;;  %v2944_v56 = vpop.f32.mrb[131].mxu0  ;;  %v2495_v43 = vpop.f32.mrb[3].mxu1 }
 0x3bf   :  { %v10751_v56 = vld [vmem:[%s14453_s1 + $0x80c] ss:$16 sps:$4 sm:$0xff]  }
 0x3c0   :  { %3154 = vmatmul.mubr.bf16.gmra.mrb[236].mxu0 %v10721_v46  ;;  %10061 = vrot.lane.b32.xlu0 %v10060_v55, %s11266_s29  ;;  %v10745_v46 = vld [vmem:[%s14453_s1 + $0x7e8] ss:$16 sps:$4 sm:$0xff]  }
 0x3c1   :  { %3161 = vmatprep.mubr.bf16.mxu0 %v10725_v53 }
 0x3c2   :  { %v9992_v30 = vpop.permute.xlu0 %9991 }
 0x3c3   :  { %v9994_v57 = vunpack.i.h.bf16 %v9992_v30  ;;  %v9993_v27 = vunpack.i.l.bf16 %v9992_v30  ;;  %v2947_v3 = vpop.f32.mrb[132].mxu0 }
 0x3c4   :  { %v2949_v58 = vpop.f32.mrb[133].mxu0 }
 0x3c5   :  { %v12422_v60 = vsel %vm3787_vm1, %v12296_v13, %v9994_v57  ;;  %v12426_v63 = vsel %vm3787_vm1, %v12300_v14, %v9993_v27  ;;  %v2950_v1 = vpop.f32.mrb[134].mxu0  ;;  %v10733_v14 = vld [vmem:[%s14453_s1 + $0x7a8] ss:$16 sps:$4 sm:$0xff]   ;;  %v12483_v27 = vpop.f32.mrb[4].mxu1 }
 0x3c6   :  { %v10065_v5 = vpack.i.bf16 %v2950_v1, %v2947_v3  ;;  %v2952_v7 = vpop.f32.mrb[135].mxu0  ;;  %v2500_v3 = vpop.f32.mrb[5].mxu1 }
 0x3c7   :  { %v12485_v58 = vpop.f32.mrb[6].mxu1  ;;  %v10749_v7 = vld [vmem:[%s14453_s1 + $0x808] ss:$16 sps:$4 sm:$0xff]  }
 0x3c8   :  { %3162 = vmatmul.mubr.bf16.gmra.mrb[240].mxu0 %v10727_v59  ;;  %10066 = vrot.lane.b32.xlu1 %v10065_v5, %s11266_s29 }
 0x3c9   :  { %3169 = vmatprep.mubr.bf16.mxu0 %v10731_v2  ;;  %v2503_v2 = vpop.f32.mrb[7].mxu1 }
 0x3ca   :  { %v9997_v36 = vpop.permute.xlu1 %9996 }
 0x3cb   :  { %v9999_v13 = vunpack.i.h.bf16 %v9997_v36  ;;  %v9998_v8 = vunpack.i.l.bf16 %v9997_v36  ;;  %v2955_v10 = vpop.f32.mrb[136].mxu0 }
 0x3cc   :  { %v2957_v33 = vpop.f32.mrb[137].mxu0 }
 0x3cd   :  { %v12439_v17 = vsel %vm3787_vm1, %v12317_v31, %v9999_v13  ;;  %v12443_v19 = vsel %vm3787_vm1, %v12321_v32, %v9998_v8  ;;  %v2958_v20 = vpop.f32.mrb[138].mxu0  ;;  %v10739_v32 = vld [vmem:[%s14453_s1 + $0x7c8] ss:$16 sps:$4 sm:$0xff]  }
 0x3ce   :  { %14476 = vst [vmem:[#allocation2_spill] sm:$0xff] %v12439_v17  ;;  %14477 = vst [vmem:[#allocation3_spill] sm:$0xff] %v12443_v19  ;;  %v10070_v18 = vpack.i.bf16 %v2958_v20, %v2955_v10  ;;  %v2960_v23 = vpop.f32.mrb[139].mxu0  ;;  %v10757_v10 = vld [vmem:[%s14453_s1 + $0x82c] ss:$16 sps:$4 sm:$0xff]   ;;  %v12502_v20 = vpop.f32.mrb[8].mxu1 }
 0x3d0   :  { %3170 = vmatmul.mubr.bf16.gmra.mrb[244].mxu0 %v10733_v14  ;;  %10071 = vrot.lane.b32.xlu0 %v10070_v18, %s11266_s29 }
 0x3d1   :  { %3177 = vmatprep.mubr.bf16.mxu0 %v10737_v22  ;;  %v2508_v22 = vpop.f32.mrb[9].mxu1 }
 0x3d2   :  { %v10002_v15 = vpop.permute.xlu0 %10001  ;;  %v12504_v18 = vpop.f32.mrb[10].mxu1 }
 0x3d3   :  { %v10004_v42 = vunpack.i.h.bf16 %v10002_v15  ;;  %v10003_v25 = vunpack.i.l.bf16 %v10002_v15  ;;  %v2963_v31 = vpop.f32.mrb[140].mxu0 }
 0x3d4   :  { %v2965_v39 = vpop.f32.mrb[141].mxu0 }
 0x3d5   :  { %v12454_v29 = vsel %vm3787_vm1, %v12338_v49, %v10004_v42  ;;  %v12458_v34 = vsel %vm3787_vm1, %v12342_v50, %v10003_v25  ;;  %v2966_v35 = vpop.f32.mrb[142].mxu0  ;;  %v2511_v42 = vpop.f32.mrb[11].mxu1 }
 0x3d6   :  { %v10075_v38 = vpack.i.bf16 %v2966_v35, %v2963_v31  ;;  %v2968_v40 = vpop.f32.mrb[143].mxu0  ;;  %v10755_v31 = vld [vmem:[%s14453_s1 + $0x828] ss:$16 sps:$4 sm:$0xff]  }
 0x3d8   :  { %3178 = vmatmul.mubr.bf16.gmra.mrb[248].mxu0 %v10739_v32  ;;  %10076 = vrot.lane.b32.xlu1 %v10075_v38, %s11266_s29 }
 0x3d9   :  { %3185 = vmatprep.mubr.bf16.mxu0 %v10743_v37  ;;  %v10763_v37 = vld [vmem:[%s14453_s1 + $0x84c] ss:$16 sps:$4 sm:$0xff]  }
 0x3da   :  { %v10007_v49 = vpop.permute.xlu1 %10006 }
 0x3db   :  { %v10009_v41 = vunpack.i.h.bf16 %v10007_v49  ;;  %v10008_v50 = vunpack.i.l.bf16 %v10007_v49  ;;  %v2971_v21 = vpop.f32.mrb[144].mxu0  ;;  %v9983_v49 = vunpack.i.l.bf16 %v12415_v6 }
 0x3dc   :  { %v2973_v44 = vpop.f32.mrb[145].mxu0 }
 0x3dd   :  { %v12473_v47 = vsel %vm3787_vm1, %v12359_v61, %v10009_v41  ;;  %v12477_v53 = vsel %vm3787_vm1, %v12363_v62, %v10008_v50  ;;  %v2974_v55 = vpop.f32.mrb[146].mxu0  ;;  %v3788_v6 = vsel %vm3787_vm1, %v12266_v52, %v9983_v49 }
 0x3de   :  { %v10080_v30 = vpack.i.bf16 %v2974_v55, %v2971_v21  ;;  %v2976_v57 = vpop.f32.mrb[147].mxu0  ;;  %v3789_v55 = vsel %vm3787_vm1, %v12262_v51, %v9984_v24  ;;  %v10769_v51 = vld [vmem:[%s14453_s1 + $0x86c] ss:$16 sps:$4 sm:$0xff]  }
 0x3e0   :  { %3186 = vmatmul.mubr.bf16.gmra.mrb[252].mxu0 %v10745_v46  ;;  %10081 = vrot.lane.b32.xlu0 %v10080_v30, %s11266_s29  ;;  %v10761_v30 = vld [vmem:[%s14453_s1 + $0x848] ss:$16 sps:$4 sm:$0xff]  }
 0x3e1   :  { %3193 = vmatprep.mubr.bf16.mxu0 %v10751_v56 }
 0x3e2   :  { %v10012_v61 = vpop.permute.xlu0 %10011 }
 0x3e3   :  { %v10014_v59 = vunpack.i.h.bf16 %v10012_v61  ;;  %v10013_v62 = vunpack.i.l.bf16 %v10012_v61  ;;  %v2979_v1 = vpop.f32.mrb[148].mxu0 }
 0x3e4   :  { %v2981_v5 = vpop.f32.mrb[149].mxu0 }
 0x3e5   :  { %v12492_v36 = vsel %vm3787_vm1, %v12374_v11, %v10014_v59  ;;  %v12496_v13 = vsel %vm3787_vm1, %v12378_v16, %v10013_v62  ;;  %v2982_v8 = vpop.f32.mrb[150].mxu0 }
 0x3e6   :  { %v10085_v33 = vpack.i.bf16 %v2982_v8, %v2979_v1  ;;  %v2984_v14 = vpop.f32.mrb[151].mxu0 }
 0x3e7   :  { %v10775_v14 = vld [vmem:[%s14453_s1 + $0x88c] ss:$16 sps:$4 sm:$0xff]  }
 0x3e8   :  { %3194 = vmatmul.mubr.bf16.gmra.mrb[0].mxu0 %v10749_v7  ;;  %10086 = vrot.lane.b32.xlu1 %v10085_v33, %s11266_s29 }
 0x3e9   :  { %3201 = vmatprep.mubr.bf16.mxu0 %v10757_v10  ;;  %v10767_v10 = vld [vmem:[%s14453_s1 + $0x868] ss:$16 sps:$4 sm:$0xff]  }
 0x3ea   :  { %v10017_v11 = vpop.permute.xlu1 %10016 }
 0x3eb   :  { %v10019_v23 = vunpack.i.h.bf16 %v10017_v11  ;;  %v10018_v16 = vunpack.i.l.bf16 %v10017_v11  ;;  %v2987_v15 = vpop.f32.mrb[152].mxu0 }
 0x3ec   :  { %v2989_v25 = vpop.f32.mrb[153].mxu0 }
 0x3ed   :  { %v12511_v39 = vsel %vm3787_vm1, %v12389_v26, %v10019_v23  ;;  %v12515_v32 = vsel %vm3787_vm1, %v12393_v28, %v10018_v16  ;;  %v2990_v35 = vpop.f32.mrb[154].mxu0  ;;  %v12523_v26 = vpop.f32.mrb[12].mxu1 }
 0x3ee   :  { %v10090_v38 = vpack.i.bf16 %v2990_v35, %v2987_v15  ;;  %v2992_v40 = vpop.f32.mrb[155].mxu0  ;;  %v2516_v41 = vpop.f32.mrb[13].mxu1 }
 0x3ef   :  { %v12525_v50 = vpop.f32.mrb[14].mxu1  ;;  %v10773_v40 = vld [vmem:[%s14453_s1 + $0x888] ss:$16 sps:$4 sm:$0xff]  }
 0x3f0   :  { %3202 = vmatmul.mubr.bf16.gmra.mrb[4].mxu0 %v10755_v31  ;;  %10091 = vrot.lane.b32.xlu0 %v10090_v38, %s11266_s29  ;;  %v2519_v46 = vpop.f32.mrb[15].mxu1 }
 0x3f1   :  { %3209 = vmatprep.mubr.bf16.mxu0 %v10763_v37  ;;  %v12549_v62 = vpop.f32.mrb[16].mxu1 }
 0x3f2   :  { %v10022_v28 = vpop.permute.xlu0 %10021  ;;  %v2524_v1 = vpop.f32.mrb[17].mxu1 }
 0x3f3   :  { %v10024_v21 = vunpack.i.h.bf16 %v10022_v28  ;;  %v10023_v43 = vunpack.i.l.bf16 %v10022_v28  ;;  %v12527_v44 = vpop.f32.mrb[156].mxu0  ;;  %v12551_v2 = vpop.f32.mrb[18].mxu1  ;;  %v10781_v28 = vld [vmem:[%s14453_s1 + $0x8ac] ss:$16 sps:$4 sm:$0xff]  }
 0x3f4   :  { %v2997_v56 = vpop.f32.mrb[157].mxu0  ;;  %v2527_v7 = vpop.f32.mrb[19].mxu1 }
 0x3f5   :  { %v12537_v57 = vsel %vm3804_vm2, %v3789_v55, %v10024_v21  ;;  %v12540_v3 = vsel %vm3804_vm2, %v3788_v6, %v10023_v43  ;;  %v12542_v61 = vpop.f32.mrb[158].mxu0  ;;  %v12560_v23 = vpop.f32.mrb[20].mxu1 }
 0x3f6   :  { %14478 = vst [vmem:[#allocation4_spill] sm:$0xff] %v12537_v57  ;;  %14479 = vst [vmem:[#allocation5_spill] sm:$0xff] %v12540_v3  ;;  %v3000_v59 = vpop.f32.mrb[159].mxu0  ;;  %v2532_v16 = vpop.f32.mrb[21].mxu1 }
 0x3f7   :  { %v12562_v42 = vpop.f32.mrb[22].mxu1  ;;  %v10787_v59 = vld [vmem:[%s14453_s1 + $0x8cc] ss:$16 sps:$4 sm:$0xff]  }
 0x3f8   :  { %3210 = vmatmul.mubr.bf16.gmra.mrb[8].mxu0 %v10761_v30  ;;  %v2535_v37 = vpop.f32.mrb[23].mxu1  ;;  %v10779_v30 = vld [vmem:[%s14453_s1 + $0x8a8] ss:$16 sps:$4 sm:$0xff]  }
 0x3f9   :  { %3217 = vmatprep.mubr.bf16.mxu0 %v10769_v51  ;;  %v12579_v46 = vpop.f32.mrb[24].mxu1 }
 0x3fa   :  { %v2540_v55 = vpop.f32.mrb[25].mxu1 }
 0x3fb   :  { %v3003_v5 = vpop.f32.mrb[160].mxu0 }
 0x3fc   :  { %v3005_v8 = vpop.f32.mrb[161].mxu0 }
 0x3fd   :  { %v3006_v33 = vpop.f32.mrb[162].mxu0  ;;  %v12592_v8 = vpop.permute.xlu1 %10026 }
 0x3fe   :  { %v10095_v22 = vpack.i.bf16 %v3006_v33, %v3003_v5  ;;  %v3008_v11 = vpop.f32.mrb[163].mxu0  ;;  %14480 = vst [vmem:[#allocation6_spill] sm:$0xff] %v12592_v8 }
 0x400   :  { %3218 = vmatmul.mubr.bf16.gmra.mrb[12].mxu0 %v10767_v10  ;;  %10096 = vrot.lane.b32.xlu0 %v10095_v22, %s11267_s17 }
 0x401   :  { %3225 = vmatprep.mubr.bf16.mxu0 %v10775_v14 }
 0x402   :  { %v10032_v15 = vpop.permute.xlu0 %10031 }
 0x403   :  { %v10034_v25 = vunpack.i.h.bf16 %v10032_v15  ;;  %v10033_v31 = vunpack.i.l.bf16 %v10032_v15  ;;  %v3011_v35 = vpop.f32.mrb[164].mxu0 }
 0x404   :  { %v3013_v38 = vpop.f32.mrb[165].mxu0 }
 0x405   :  { %v12569_v24 = vsel %vm3804_vm2, %v12422_v60, %v10034_v25  ;;  %v12573_v49 = vsel %vm3804_vm2, %v12426_v63, %v10033_v31  ;;  %v3014_v41 = vpop.f32.mrb[166].mxu0  ;;  %v12581_v60 = vpop.f32.mrb[26].mxu1  ;;  %v10785_v31 = vld [vmem:[%s14453_s1 + $0x8c8] ss:$16 sps:$4 sm:$0xff]  }
 0x406   :  { %v10100_v21 = vpack.i.bf16 %v3014_v41, %v3011_v35  ;;  %v3016_v43 = vpop.f32.mrb[167].mxu0  ;;  %v2543_v56 = vpop.f32.mrb[27].mxu1 }
 0x407   :  { %v12590_v7 = vpop.f32.mrb[28].mxu1 }
 0x408   :  { %3226 = vmatmul.mubr.bf16.gmra.mrb[16].mxu0 %v10773_v40  ;;  %10101 = vrot.lane.b32.xlu1 %v10100_v21, %s11267_s17  ;;  %v2548_v10 = vpop.f32.mrb[29].mxu1  ;;  %v10793_v40 = vld [vmem:[%s14453_s1 + $0x8ec] ss:$16 sps:$4 sm:$0xff]  }
 0x409   :  { %3233 = vmatprep.mubr.bf16.mxu0 %v10781_v28  ;;  %v12594_v14 = vpop.f32.mrb[30].mxu1 }
 0x40a   :  { %v2551_v15 = vpop.f32.mrb[31].mxu1  ;;  %v12610_v41 = vpop.permute.xlu1 %10036 }
 0x40b   :  { %v3019_v6 = vpop.f32.mrb[168].mxu0  ;;  %14481 = vst [vmem:[#allocation7_spill] sm:$0xff] %v12610_v41  ;;  %v12613_v43 = vpop.f32.mrb[32].mxu1 }
 0x40c   :  { %v3021_v63 = vpop.f32.mrb[169].mxu0 }
 0x40d   :  { %v3022_v51 = vpop.f32.mrb[170].mxu0 }
 0x40e   :  { %v10105_v1 = vpack.i.bf16 %v3022_v51, %v3019_v6  ;;  %v3024_v5 = vpop.f32.mrb[171].mxu0 }
 0x410   :  { %3234 = vmatmul.mubr.bf16.gmra.mrb[20].mxu0 %v10779_v30  ;;  %10106 = vrot.lane.b32.xlu0 %v10105_v1, %s11267_s17 }
 0x411   :  { %3241 = vmatprep.mubr.bf16.mxu0 %v10787_v59  ;;  %v10791_v59 = vld [vmem:[%s14453_s1 + $0x8e8] ss:$16 sps:$4 sm:$0xff]   ;;  %s11268_s1 = smov 18  }
 0x412   :  { %v10042_v33 = vpop.permute.xlu0 %10041 }
 0x413   :  { %v10044_v22 = vunpack.i.h.bf16 %v10042_v33  ;;  %v10043_v11 = vunpack.i.l.bf16 %v10042_v33  ;;  %v3027_v16 = vpop.f32.mrb[172].mxu0 }
 0x414   :  { %v3029_v25 = vpop.f32.mrb[173].mxu0 }
 0x415   :  { %v12601_v35 = vsel %vm3804_vm2, %v12454_v29, %v10044_v22  ;;  %v12605_v37 = vsel %vm3804_vm2, %v12458_v34, %v10043_v11  ;;  %v3030_v38 = vpop.f32.mrb[174].mxu0  ;;  %v2556_v29 = vpop.f32.mrb[33].mxu1 }
 0x416   :  { %v10110_v28 = vpack.i.bf16 %v3030_v38, %v3027_v16  ;;  %v3032_v21 = vpop.f32.mrb[175].mxu0  ;;  %v12615_v6 = vpop.f32.mrb[34].mxu1 }
 0x417   :  { %v2559_v30 = vpop.f32.mrb[35].mxu1 }
 0x418   :  { %3242 = vmatmul.mubr.bf16.gmra.mrb[24].mxu0 %v10785_v31  ;;  %10111 = vrot.lane.b32.xlu1 %v10110_v28, %s11267_s17  ;;  %v12629_v11 = vpop.f32.mrb[36].mxu1 }
 0x419   :  { %3249 = vmatprep.mubr.bf16.mxu0 %v10793_v40  ;;  %v2564_v16 = vpop.f32.mrb[37].mxu1 }
 0x41a   :  { %v10047_v55 = vpop.permute.xlu1 %10046  ;;  %v12631_v25 = vpop.f32.mrb[38].mxu1 }
 0x41b   :  { %v10049_v34 = vunpack.i.h.bf16 %v10047_v55  ;;  %v10048_v56 = vunpack.i.l.bf16 %v10047_v55  ;;  %v3035_v63 = vpop.f32.mrb[176].mxu0  ;;  %v2567_v40 = vpop.f32.mrb[39].mxu1 }
 0x41c   :  { %v3037_v51 = vpop.f32.mrb[177].mxu0 }
 0x41d   :  { %v12622_v1 = vsel %vm3804_vm2, %v12473_v47, %v10049_v34  ;;  %v12626_v5 = vsel %vm3804_vm2, %v12477_v53, %v10048_v56  ;;  %v3038_v10 = vpop.f32.mrb[178].mxu0  ;;  %v12642_v56 = vpop.f32.mrb[40].mxu1 }
 0x41e   :  { %14482 = vst [vmem:[#allocation8_spill] sm:$0xff] %v12622_v1  ;;  %14483 = vst [vmem:[#allocation9_spill] sm:$0xff] %v12626_v5  ;;  %v10115_v33 = vpack.i.bf16 %v3038_v10, %v3035_v63  ;;  %v3040_v22 = vpop.f32.mrb[179].mxu0  ;;  %v2572_v63 = vpop.f32.mrb[41].mxu1 }
 0x41f   :  { %v12644_v51 = vpop.f32.mrb[42].mxu1 }
 0x420   :  { %3250 = vmatmul.mubr.bf16.gmra.mrb[28].mxu0 %v10791_v59  ;;  %10116 = vrot.lane.b32.xlu0 %v10115_v33, %s11267_s17 }
 0x422   :  { %v10052_v15 = vpop.permute.xlu0 %10051 }
 0x423   :  { %v10054_v31 = vunpack.i.h.bf16 %v10052_v15  ;;  %v10053_v38 = vunpack.i.l.bf16 %v10052_v15  ;;  %v3043_v47 = vpop.f32.mrb[180].mxu0 }
 0x424   :  { %v3045_v28 = vpop.f32.mrb[181].mxu0 }
 0x425   :  { %v12635_v53 = vsel %vm3804_vm2, %v12492_v36, %v10054_v31  ;;  %v12639_v21 = vsel %vm3804_vm2, %v12496_v13, %v10053_v38  ;;  %v3046_v29 = vpop.f32.mrb[182].mxu0  ;;  %v2575_v36 = vpop.f32.mrb[43].mxu1 }
 0x426   :  { %v10120_v55 = vpack.i.bf16 %v3046_v29, %v3043_v47  ;;  %v3048_v34 = vpop.f32.mrb[183].mxu0  ;;  %v12660_v47 = vpop.f32.mrb[44].mxu1 }
 0x427   :  { %v2580_v40 = vpop.f32.mrb[45].mxu1 }
 0x428   :  { %10121 = vrot.lane.b32.xlu1 %v10120_v55, %s11267_s17  ;;  %v12662_v28 = vpop.f32.mrb[46].mxu1 }
 0x429   :  { %v2583_v55 = vpop.f32.mrb[47].mxu1 }
 0x42a   :  { %v10057_v30 = vpop.permute.xlu1 %10056 }
 0x42b   :  { %v10059_v59 = vunpack.i.h.bf16 %v10057_v30  ;;  %v10058_v10 = vunpack.i.l.bf16 %v10057_v30  ;;  %v12646_v33 = vpop.f32.mrb[184].mxu0  ;;  %v12670_v30 = vpop.f32.mrb[48].mxu1 }
 0x42c   :  { %v3053_v22 = vpop.f32.mrb[185].mxu0 }
 0x42d   :  { %v12650_v13 = vsel %vm3804_vm2, %v12511_v39, %v10059_v59  ;;  %v12654_v16 = vsel %vm3804_vm2, %v12515_v32, %v10058_v10  ;;  %v12656_v15 = vpop.f32.mrb[186].mxu0  ;;  %v2588_v59 = vpop.f32.mrb[49].mxu1 }
 0x42e   :  { %14484 = vst [vmem:[#allocation10_spill] sm:$0xff] %v12650_v13  ;;  %14485 = vst [vmem:[#allocation11_spill] sm:$0xff] %v12654_v16  ;;  %v3056_v38 = vpop.f32.mrb[187].mxu0  ;;  %v12672_v10 = vpop.f32.mrb[50].mxu1 }
 0x42f   :  { %v2591_v22 = vpop.f32.mrb[51].mxu1 }
 0x432   :  { %v12674_v0 = vpop.permute.xlu0 %10061 }
 0x433   :  { %v12664_v29 = vpop.f32.mrb[188].mxu0 }
 0x434   :  { %v3061_v39 = vpop.f32.mrb[189].mxu0 }
 0x435   :  { %v12666_v34 = vpop.f32.mrb[190].mxu0  ;;  %v12677_v39 = vpop.f32.mrb[52].mxu1 }
 0x436   :  { %v3064_v63 = vpop.f32.mrb[191].mxu0  ;;  %v2596_v32 = vpop.f32.mrb[53].mxu1 }
 0x437   :  { %v12679_v31 = vpop.f32.mrb[54].mxu1 }
 0x438   :  { %v2599_v5 = vpop.f32.mrb[55].mxu1 }
 0x43b   :  { %v3067_v36 = vpop.f32.mrb[192].mxu0 }
 0x43c   :  { %v3069_v38 = vpop.f32.mrb[193].mxu0 }
 0x43d   :  { %v3070_v40 = vpop.f32.mrb[194].mxu0 }
 0x43e   :  { %v10125_v52 = vpack.i.bf16 %v3070_v40, %v3067_v36  ;;  %v3072_v55 = vpop.f32.mrb[195].mxu0 }
 0x43f   :  { %v12690_v55 = vpop.f32.mrb[56].mxu1 }
 0x440   :  { %10126 = vrot.lane.b32.xlu0 %v10125_v52, %s11268_s1 }
 0x442   :  { %v10072_v63 = vpop.permute.xlu0 %10071 }
 0x443   :  { %v10074_v59 = vunpack.i.h.bf16 %v10072_v63  ;;  %v10073_v16 = vunpack.i.l.bf16 %v10072_v63  ;;  %v3075_v13 = vpop.f32.mrb[196].mxu0  ;;  %v2604_v63 = vpop.f32.mrb[57].mxu1 }
 0x444   :  { %v3077_v22 = vpop.f32.mrb[197].mxu0  ;;  %v12692_v1 = vpop.f32.mrb[58].mxu1 }
 0x445   :  { %v12683_v38 = vsel %vm3821_vm3, %v12569_v24, %v10074_v59  ;;  %v12687_v36 = vsel %vm3821_vm3, %v12573_v49, %v10073_v16  ;;  %v3078_v52 = vpop.f32.mrb[198].mxu0  ;;  %v2607_v22 = vpop.f32.mrb[59].mxu1 }
 0x446   :  { %14486 = vst [vmem:[#allocation12_spill] sm:$0xff] %v12683_v38  ;;  %14487 = vst [vmem:[#allocation13_spill] sm:$0xff] %v12687_v36  ;;  %v10130_v40 = vpack.i.bf16 %v3078_v52, %v3075_v13  ;;  %v3080_v32 = vpop.f32.mrb[199].mxu0 }
 0x448   :  { %10131 = vrot.lane.b32.xlu1 %v10130_v40, %s11268_s1 }
 0x44a   :  { %v12695_v49 = vpop.f32.mrb[60].mxu1 }
 0x44b   :  { %v3083_v5 = vpop.f32.mrb[200].mxu0  ;;  %v2612_v16 = vpop.f32.mrb[61].mxu1 }
 0x44c   :  { %v3085_v19 = vpop.f32.mrb[201].mxu0  ;;  %v12697_v52 = vpop.f32.mrb[62].mxu1 }
 0x44d   :  { %v3086_v17 = vpop.f32.mrb[202].mxu0  ;;  %v2615_v63 = vpop.f32.mrb[63].mxu1 }
 0x44e   :  { %v10135_v24 = vpack.i.bf16 %v3086_v17, %v3083_v5  ;;  %v3088_v59 = vpop.f32.mrb[203].mxu0  ;;  %v10794_v5 = vld [vmem:[%s14454_s2] sm:$0xff]  }
 0x44f   :  { %9392 = vmatprep.subr.bf16.mxu1 %v10794_v5 }
 0x450   :  { %10136 = vrot.lane.b32.xlu0 %v10135_v24, %s11268_s1  ;;  %9393 = vmatpush3.bf16.msra.mxu1 %v10794_v5 }
 0x452   :  { %v10082_v13 = vpop.permute.xlu0 %10081 }
 0x453   :  { %v10084_v40 = vunpack.i.h.bf16 %v10082_v13  ;;  %v10083_v32 = vunpack.i.l.bf16 %v10082_v13  ;;  %v3091_v41 = vpop.f32.mrb[204].mxu0 }
 0x454   :  { %v3093_v36 = vpop.f32.mrb[205].mxu0 }
 0x455   :  { %v12701_v22 = vsel %vm3821_vm3, %v12601_v35, %v10084_v40  ;;  %v12705_v17 = vsel %vm3821_vm3, %v12605_v37, %v10083_v32  ;;  %v3094_v19 = vpop.f32.mrb[206].mxu0  ;;  %v12711_v36 = vpop.f32.mrb[64].mxu1 }
 0x456   :  { %v10140_v24 = vpack.i.bf16 %v3094_v19, %v3091_v41  ;;  %v3096_v59 = vpop.f32.mrb[207].mxu0  ;;  %v2620_v16 = vpop.f32.mrb[65].mxu1 }
 0x457   :  { %v12713_v35 = vpop.f32.mrb[66].mxu1 }
 0x458   :  { %10141 = vrot.lane.b32.xlu1 %v10140_v24, %s11268_s1  ;;  %v2623_v40 = vpop.f32.mrb[67].mxu1 }
 0x45a   :  { %v12717_v19 = vpop.f32.mrb[68].mxu1 }
 0x45b   :  { %v3099_v13 = vpop.f32.mrb[208].mxu0  ;;  %v2628_v59 = vpop.f32.mrb[69].mxu1 }
 0x45c   :  { %v3100_v37 = vadd.f32 %v3099_v13, %v12464_v48  ;;  %v3101_v32 = vpop.f32.mrb[209].mxu0  ;;  %v12720_v5 = vpop.f32.mrb[70].mxu1 }
 0x45d   :  { %v3102_v63 = vpop.f32.mrb[210].mxu0  ;;  %v2631_v40 = vpop.f32.mrb[71].mxu1 }
 0x45e   :  { %v3103_v38 = vadd.f32 %v3102_v63, %v12466_v45  ;;  %v3104_v3 = vpop.f32.mrb[211].mxu0 }
 0x460   :  { %v10145_v41 = vpack.i.bf16 %v3103_v38, %v3100_v37 }
 0x462   :  { %v10092_v24 = vpop.permute.xlu0 %10091  ;;  %10146 = vrot.lane.b32.xlu0 %v10145_v41, %s11268_s1  ;;  %v12732_v41 = vpop.f32.mrb[72].mxu1 }
 0x463   :  { %v10094_v16 = vunpack.i.h.bf16 %v10092_v24  ;;  %v10093_v57 = vunpack.i.l.bf16 %v10092_v24  ;;  %v3107_v8 = vpop.f32.mrb[212].mxu0  ;;  %v2636_v59 = vpop.f32.mrb[73].mxu1 }
 0x464   :  { %v3108_v48 = vadd.f32 %v3107_v8, %v12483_v27  ;;  %v3109_v13 = vpop.f32.mrb[213].mxu0  ;;  %v12735_v27 = vpop.f32.mrb[74].mxu1 }
 0x465   :  { %v12725_v45 = vsel %vm3821_vm3, %v12635_v53, %v10094_v16  ;;  %v12729_v3 = vsel %vm3821_vm3, %v12639_v21, %v10093_v57  ;;  %v3110_v38 = vpop.f32.mrb[214].mxu0  ;;  %v2639_v24 = vpop.f32.mrb[75].mxu1 }
 0x466   :  { %v3111_v37 = vadd.f32 %v3110_v38, %v12485_v58  ;;  %v3112_v32 = vpop.f32.mrb[215].mxu0 }
 0x468   :  { %v10150_v63 = vpack.i.bf16 %v3111_v37, %v3108_v48 }
 0x46a   :  { %10151 = vrot.lane.b32.xlu1 %v10150_v63, %s11268_s1  ;;  %v12739_v58 = vpop.f32.mrb[76].mxu1 }
 0x46b   :  { %v3115_v8 = vpop.f32.mrb[216].mxu0  ;;  %v2644_v48 = vpop.f32.mrb[77].mxu1 }
 0x46c   :  { %v3116_v53 = vadd.f32 %v3115_v8, %v12502_v20  ;;  %v3117_v16 = vpop.f32.mrb[217].mxu0  ;;  %v12741_v38 = vpop.f32.mrb[78].mxu1 }
 0x46d   :  { %v3118_v40 = vpop.f32.mrb[218].mxu0  ;;  %v2647_v32 = vpop.f32.mrb[79].mxu1 }
 0x46e   :  { %v3119_v57 = vadd.f32 %v3118_v40, %v12504_v18  ;;  %v3120_v21 = vpop.f32.mrb[219].mxu0 }
 0x470   :  { %v10190_v13 = vpack.i.bf16 %v3119_v57, %v3116_v53 }
 0x473   :  { %v3123_v37 = vpop.f32.mrb[220].mxu0 }
 0x474   :  { %v12744_v63 = vadd.f32 %v3123_v37, %v12523_v26  ;;  %v3125_v59 = vpop.f32.mrb[221].mxu0 }
 0x475   :  { %v3126_v24 = vpop.f32.mrb[222].mxu0 }
 0x476   :  { %v12747_v20 = vadd.f32 %v3126_v24, %v12525_v50  ;;  %v3128_v8 = vpop.f32.mrb[223].mxu0 }
 0x478   :  { %v10205_v18 = vpack.i.bf16 %v12747_v20, %v12744_v63 }
 0x47b   :  { %v3131_v53 = vpop.f32.mrb[224].mxu0 }
 0x47c   :  { %v3132_v16 = vadd.f32 %v3131_v53, %v12549_v62  ;;  %v3133_v40 = vpop.f32.mrb[225].mxu0  ;;  %v14488_v62 = vpack.i.bf16 %v12656_v15, %v12646_v33  ;;  %v14489_v33 = vpack.i.bf16 %v12542_v61, %v12527_v44 }
 0x47d   :  { %v3134_v57 = vpop.f32.mrb[226].mxu0 }
 0x47e   :  { %v3135_v21 = vadd.f32 %v3134_v57, %v12551_v2  ;;  %v3136_v48 = vpop.f32.mrb[227].mxu0  ;;  %v12760_v2 = vpop.permute.xlu0 %10096 }
 0x480   :  { %v10155_v32 = vpack.i.bf16 %v3135_v21, %v3132_v16 }
 0x482   :  { %10156 = vrot.lane.b32.xlu0 %v10155_v32, %s11269_s22  ;;  %v12764_v21 = vpop.permute.xlu0 %10106 }
 0x483   :  { %v3139_v26 = vpop.f32.mrb[228].mxu0 }
 0x484   :  { %v3140_v50 = vadd.f32 %v3139_v26, %v12560_v23  ;;  %v3141_v37 = vpop.f32.mrb[229].mxu0 }
 0x485   :  { %v3142_v59 = vpop.f32.mrb[230].mxu0 }
 0x486   :  { %v3143_v24 = vadd.f32 %v3142_v59, %v12562_v42  ;;  %v3144_v8 = vpop.f32.mrb[231].mxu0  ;;  %10171 = vrot.lane.b32.xlu0 %v14488_v62, %s11267_s17 }
 0x488   :  { %v10160_v53 = vpack.i.bf16 %v3143_v24, %v3140_v50 }
 0x48a   :  { %10161 = vrot.lane.b32.xlu1 %v10160_v53, %s11269_s22 }
 0x48b   :  { %v3147_v16 = vpop.f32.mrb[232].mxu0 }
 0x48c   :  { %v3148_v40 = vadd.f32 %v3147_v16, %v12579_v46  ;;  %v3149_v57 = vpop.f32.mrb[233].mxu0 }
 0x48d   :  { %v3150_v23 = vpop.f32.mrb[234].mxu0 }
 0x48e   :  { %v3151_v42 = vadd.f32 %v3150_v23, %v12581_v60  ;;  %v3152_v48 = vpop.f32.mrb[235].mxu0  ;;  %10166 = vrot.lane.b32.xlu1 %v14489_v33, %s11266_s29  ;;  %v10795_v23 = vld [vmem:[%s14454_s2 + $0x8] sm:$0xff]   ;;  %s11270_s2 = smov 24  }
 0x48f   :  { %9394 = vmatprep.subr.bf16.mxu1 %v10795_v23 }
 0x490   :  { %v10175_v15 = vpack.i.bf16 %v3151_v42, %v3148_v40  ;;  %9395 = vmatpush3.bf16.msra.mxu1 %v10795_v23 }
 0x492   :  { %v10117_v32 = vpop.permute.xlu0 %10116  ;;  %10176 = vrot.lane.b32.xlu0 %v10175_v15, %s11269_s22 }
 0x493   :  { %v10119_v26 = vunpack.i.h.bf16 %v10117_v32  ;;  %v10118_v50 = vunpack.i.l.bf16 %v10117_v32  ;;  %v3155_v37 = vpop.f32.mrb[236].mxu0 }
 0x494   :  { %v3156_v46 = vadd.f32 %v3155_v37, %v12590_v7  ;;  %v3157_v59 = vpop.f32.mrb[237].mxu0 }
 0x495   :  { %v12775_v60 = vsel %vm3838_vm4, %v12701_v22, %v10119_v26  ;;  %v12779_v24 = vsel %vm3838_vm4, %v12705_v17, %v10118_v50  ;;  %v3158_v44 = vpop.f32.mrb[238].mxu0  ;;  %v14490_v17 = vpack.i.bf16 %v12666_v34, %v12664_v29 }
 0x496   :  { %v3159_v61 = vadd.f32 %v3158_v44, %v12594_v14  ;;  %v3160_v8 = vpop.f32.mrb[239].mxu0  ;;  %10191 = vrot.lane.b32.xlu0 %v10190_v13, %s11268_s1 }
 0x498   :  { %v10180_v62 = vpack.i.bf16 %v3159_v61, %v3156_v46 }
 0x49a   :  { %10181 = vrot.lane.b32.xlu1 %v10180_v62, %s11269_s22 }
 0x49b   :  { %v3163_v53 = vpop.f32.mrb[240].mxu0 }
 0x49c   :  { %v3164_v7 = vadd.f32 %v3163_v53, %v12613_v43  ;;  %v3165_v16 = vpop.f32.mrb[241].mxu0 }
 0x49d   :  { %v3166_v40 = vpop.f32.mrb[242].mxu0 }
 0x49e   :  { %v3167_v22 = vadd.f32 %v3166_v40, %v12615_v6  ;;  %v3168_v57 = vpop.f32.mrb[243].mxu0  ;;  %10186 = vrot.lane.b32.xlu1 %v14490_v17, %s11267_s17 }
 0x4a0   :  { %v10195_v14 = vpack.i.bf16 %v3167_v22, %v3164_v7 }
 0x4a2   :  { %10196 = vrot.lane.b32.xlu0 %v10195_v14, %s11269_s22 }
 0x4a3   :  { %v3171_v13 = vpop.f32.mrb[244].mxu0 }
 0x4a4   :  { %v3172_v43 = vadd.f32 %v3171_v13, %v12629_v11  ;;  %v3173_v42 = vpop.f32.mrb[245].mxu0 }
 0x4a5   :  { %v3174_v48 = vpop.f32.mrb[246].mxu0 }
 0x4a6   :  { %v3175_v6 = vadd.f32 %v3174_v48, %v12631_v25  ;;  %v3176_v33 = vpop.f32.mrb[247].mxu0 }
 0x4a8   :  { %v10200_v15 = vpack.i.bf16 %v3175_v6, %v3172_v43 }
 0x4aa   :  { %10201 = vrot.lane.b32.xlu1 %v10200_v15, %s11269_s22 }
 0x4ab   :  { %v3179_v29 = vpop.f32.mrb[248].mxu0 }
 0x4ac   :  { %v12798_v34 = vadd.f32 %v3179_v29, %v12642_v56  ;;  %v3181_v32 = vpop.f32.mrb[249].mxu0 }
 0x4ad   :  { %v3182_v26 = vpop.f32.mrb[250].mxu0 }
 0x4ae   :  { %v12801_v50 = vadd.f32 %v3182_v26, %v12644_v51  ;;  %v3184_v11 = vpop.f32.mrb[251].mxu0  ;;  %10206 = vrot.lane.b32.xlu1 %v10205_v18, %s11268_s1  ;;  %s11272_s1 = smov 64  }
 0x4b0   :  { %v10240_v25 = vpack.i.bf16 %v12801_v50, %v12798_v34 }
 0x4b3   :  { %v3187_v37 = vpop.f32.mrb[252].mxu0 }
 0x4b4   :  { %v3188_v46 = vadd.f32 %v3187_v37, %v12660_v47  ;;  %v3189_v59 = vpop.f32.mrb[253].mxu0 }
 0x4b5   :  { %v3190_v56 = vpop.f32.mrb[254].mxu0 }
 0x4b6   :  { %v3191_v44 = vadd.f32 %v3190_v56, %v12662_v28  ;;  %v3192_v61 = vpop.f32.mrb[255].mxu0 }
 0x4b8   :  { %v10245_v8 = vpack.i.bf16 %v3191_v44, %v3188_v46 }
 0x4ba   :  { %10246 = vrot.lane.b32.xlu1 %v10245_v8, %s11269_s22 }
 0x4bb   :  { %v3195_v51 = vpop.f32.mrb[0].mxu0 }
 0x4bc   :  { %v3196_v62 = vadd.f32 %v3195_v51, %v12670_v30  ;;  %v3197_v53 = vpop.f32.mrb[1].mxu0 }
 0x4bd   :  { %v3198_v63 = vpop.f32.mrb[2].mxu0 }
 0x4be   :  { %v3199_v20 = vadd.f32 %v3198_v63, %v12672_v10  ;;  %v3200_v18 = vpop.f32.mrb[3].mxu0 }
 0x4c0   :  { %v10210_v7 = vpack.i.bf16 %v3199_v20, %v3196_v62 }
 0x4c2   :  { %10211 = vrot.lane.b32.xlu0 %v10210_v7, %s11270_s2 }
 0x4c3   :  { %v3203_v47 = vpop.f32.mrb[4].mxu0 }
 0x4c4   :  { %v3204_v16 = vadd.f32 %v3203_v47, %v12677_v39  ;;  %v3205_v28 = vpop.f32.mrb[5].mxu0 }
 0x4c5   :  { %v3206_v40 = vpop.f32.mrb[6].mxu0  ;;  %v12840_v28 = vpop.permute.xlu1 %10066 }
 0x4c6   :  { %v3207_v22 = vadd.f32 %v3206_v40, %v12679_v31  ;;  %v3208_v57 = vpop.f32.mrb[7].mxu0 }
 0x4c8   :  { %v10215_v17 = vpack.i.bf16 %v3207_v22, %v3204_v16 }
 0x4c9   :  { %v12844_v34 = vpop.permute.xlu1 %10076 }
 0x4ca   :  { %10216 = vrot.lane.b32.xlu0 %v10215_v17, %s11270_s2 }
 0x4cb   :  { %v3211_v30 = vpop.f32.mrb[8].mxu0 }
 0x4cc   :  { %v3212_v14 = vadd.f32 %v3211_v30, %v12690_v55  ;;  %v3213_v10 = vpop.f32.mrb[9].mxu0 }
 0x4cd   :  { %v3214_v13 = vpop.f32.mrb[10].mxu0  ;;  %v9949_v10 = vunpack.i.h.bf16 %v12412_v54 }
 0x4ce   :  { %v3215_v23 = vadd.f32 %v3214_v13, %v12692_v1  ;;  %v3216_v43 = vpop.f32.mrb[11].mxu0 }
 0x4cf   :  { %v9989_v43 = vunpack.i.h.bf16 %v12431_v4 }
 0x4d0   :  { %v10220_v42 = vpack.i.bf16 %v3215_v23, %v3212_v14  ;;  %v9948_v23 = vunpack.i.l.bf16 %v12412_v54 }
 0x4d2   :  { %10221 = vrot.lane.b32.xlu0 %v10220_v42, %s11270_s2  ;;  %v10064_v42 = vunpack.i.h.bf16 %v12674_v0  ;;  %v3773_v54 = vsel %vm3770_vm0, %v11992_v9, %v9948_v23 }
 0x4d3   :  { %v3219_v39 = vpop.f32.mrb[12].mxu0 }
 0x4d4   :  { %v3220_v48 = vadd.f32 %v3219_v39, %v12695_v49  ;;  %v3221_v6 = vpop.f32.mrb[13].mxu0  ;;  %v10063_v39 = vunpack.i.l.bf16 %v12674_v0 }
 0x4d5   :  { %v3222_v31 = vpop.f32.mrb[14].mxu0  ;;  %v3774_v6 = vsel %vm3770_vm0, %v11997_v12, %v9949_v10 }
 0x4d6   :  { %v3223_v33 = vadd.f32 %v3222_v31, %v12697_v52  ;;  %v3224_v15 = vpop.f32.mrb[15].mxu0  ;;  %v10099_v31 = vunpack.i.h.bf16 %v12760_v2  ;;  %v3791_v0 = vsel %vm3787_vm1, %v3774_v6, %v9989_v43 }
 0x4d8   :  { %v10225_v29 = vpack.i.bf16 %v3223_v33, %v3220_v48  ;;  %v10098_v33 = vunpack.i.l.bf16 %v12760_v2  ;;  %v14493_v2 = vld [vmem:[#allocation5_spill] sm:$0xff] }
 0x4da   :  { %10226 = vrot.lane.b32.xlu0 %v10225_v29, %s11270_s2  ;;  %v9988_v29 = vunpack.i.l.bf16 %v12431_v4 }
 0x4db   :  { %v3227_v55 = vpop.f32.mrb[16].mxu0 }
 0x4dc   :  { %v3228_v32 = vadd.f32 %v3227_v55, %v12711_v36  ;;  %v3229_v26 = vpop.f32.mrb[17].mxu0 }
 0x4dd   :  { %v3230_v1 = vpop.f32.mrb[18].mxu0 }
 0x4de   :  { %v3231_v11 = vadd.f32 %v3230_v1, %v12713_v35  ;;  %v3232_v37 = vpop.f32.mrb[19].mxu0 }
 0x4df   :  { %v14492_v37 = vld [vmem:[#allocation4_spill] sm:$0xff] }
 0x4e0   :  { %v10230_v46 = vpack.i.bf16 %v3231_v11, %v3228_v32  ;;  %v14491_v11 = vld [vmem:[#allocation6_spill] sm:$0xff] }
 0x4e1   :  { %v10029_v12 = vunpack.i.h.bf16 %v14491_v11 }
 0x4e2   :  { %10231 = vrot.lane.b32.xlu0 %v10230_v46, %s11270_s2  ;;  %v3823_v46 = vsel %vm3821_vm3, %v14492_v37, %v10064_v42 }
 0x4e3   :  { %v3235_v49 = vpop.f32.mrb[20].mxu0  ;;  %v3840_v9 = vsel %vm3838_vm4, %v3823_v46, %v10099_v31 }
 0x4e4   :  { %v3236_v59 = vadd.f32 %v3235_v49, %v12717_v19  ;;  %v3237_v56 = vpop.f32.mrb[21].mxu0  ;;  %v3822_v49 = vsel %vm3821_vm3, %v14493_v2, %v10063_v39 }
 0x4e5   :  { %v3238_v52 = vpop.f32.mrb[22].mxu0  ;;  %v3839_v4 = vsel %vm3838_vm4, %v3822_v49, %v10098_v33 }
 0x4e6   :  { %v3239_v44 = vadd.f32 %v3238_v52, %v12720_v5  ;;  %v3240_v61 = vpop.f32.mrb[23].mxu0 }
 0x4e8   :  { %v10235_v8 = vpack.i.bf16 %v3239_v44, %v3236_v59 }
 0x4ea   :  { %10236 = vrot.lane.b32.xlu0 %v10235_v8, %s11270_s2 }
 0x4eb   :  { %v3243_v36 = vpop.f32.mrb[24].mxu0 }
 0x4ec   :  { %v3244_v51 = vadd.f32 %v3243_v36, %v12732_v41  ;;  %v3245_v62 = vpop.f32.mrb[25].mxu0  ;;  %v10028_v36 = vunpack.i.l.bf16 %v14491_v11  ;;  %v10108_v11 = vunpack.i.l.bf16 %v12764_v21 }
 0x4ed   :  { %v3246_v35 = vpop.f32.mrb[26].mxu0 }
 0x4ee   :  { %v3247_v53 = vadd.f32 %v3246_v35, %v12735_v27  ;;  %v3248_v63 = vpop.f32.mrb[27].mxu0  ;;  %10241 = vrot.lane.b32.xlu0 %v10240_v25, %s11269_s22  ;;  %v10127_v27 = vpop.permute.xlu0 %10126 }
 0x4ef   :  { %v12848_v25 = vpop.permute.xlu1 %10086  ;;  %v10129_v55 = vunpack.i.h.bf16 %v10127_v27  ;;  %v10128_v32 = vunpack.i.l.bf16 %v10127_v27 }
 0x4f0   :  { %v10250_v19 = vpack.i.bf16 %v3247_v53, %v3244_v51  ;;  %v10069_v51 = vunpack.i.h.bf16 %v12840_v28  ;;  %v10068_v53 = vunpack.i.l.bf16 %v12840_v28 }
 0x4f1   :  { %v3857_v52 = vsel %vm3855_vm5, %v3840_v9, %v10129_v55  ;;  %v3856_v44 = vsel %vm3855_vm5, %v3839_v4, %v10128_v32 }
 0x4f2   :  { %10251 = vrot.lane.b32.xlu0 %v10250_v19, %s11270_s2  ;;  %v12842_v40 = vpop.permute.xlu0 %10136 }
 0x4f3   :  { %v3251_v5 = vpop.f32.mrb[28].mxu0  ;;  %v12850_v22 = vpop.permute.xlu1 %10101  ;;  %v10139_v46 = vunpack.i.h.bf16 %v12842_v40  ;;  %v10138_v2 = vunpack.i.l.bf16 %v12842_v40 }
 0x4f4   :  { %v3252_v20 = vadd.f32 %v3251_v5, %v12739_v58  ;;  %v3253_v18 = vpop.f32.mrb[29].mxu0  ;;  %v10104_v63 = vunpack.i.h.bf16 %v12850_v22 }
 0x4f5   :  { %v3254_v7 = vpop.f32.mrb[30].mxu0  ;;  %v10103_v18 = vunpack.i.l.bf16 %v12850_v22 }
 0x4f6   :  { %v3255_v41 = vadd.f32 %v3254_v7, %v12741_v38  ;;  %v3256_v47 = vpop.f32.mrb[31].mxu0  ;;  %v12846_v50 = vpop.permute.xlu0 %10146 }
 0x4f7   :  { %v12854_v38 = vpop.permute.xlu1 %10111  ;;  %v3790_v47 = vsel %vm3787_vm1, %v3773_v54, %v9988_v29 }
 0x4f8   :  { %v10255_v16 = vpack.i.bf16 %v3255_v41, %v3252_v20  ;;  %v3807_v10 = vsel %vm3804_vm2, %v3790_v47, %v10028_v36  ;;  %v10114_v47 = vunpack.i.h.bf16 %v12854_v38 }
 0x4f9   :  { %v3824_v42 = vsel %vm3821_vm3, %v3807_v10, %v10068_v53 }
 0x4fa   :  { %10256 = vrot.lane.b32.xlu1 %v10255_v16, %s11270_s2  ;;  %v10157_v58 = vpop.permute.xlu0 %10156  ;;  %v3841_v6 = vsel %vm3838_vm4, %v3824_v42, %v10103_v18 }
 0x4fb   :  { %v12858_v30 = vpop.permute.xlu1 %10121  ;;  %v10159_v26 = vunpack.i.h.bf16 %v10157_v58  ;;  %v10158_v1 = vunpack.i.l.bf16 %v10157_v58  ;;  %v3808_v58 = vsel %vm3804_vm2, %v3791_v0, %v10029_v12 }
 0x4fc   :  { %v3825_v22 = vsel %vm3821_vm3, %v3808_v58, %v10069_v51 }
 0x4fd   :  { %v3874_v62 = vsel %vm3872_vm6, %v3857_v52, %v10159_v26  ;;  %v3873_v35 = vsel %vm3872_vm6, %v3856_v44, %v10158_v1  ;;  %v3842_v39 = vsel %vm3838_vm4, %v3825_v22, %v10104_v63  ;;  %v10109_v1 = vunpack.i.h.bf16 %v12764_v21  ;;  %v14494_v52 = vld [vmem:[#allocation12_spill] sm:$0xff]  ;;  %v14495_v44 = vld [vmem:[#allocation13_spill] sm:$0xff]  ;;  %v14498_v22 = vld [vmem:[#allocation3_spill] sm:$0xff] }
 0x4fe   :  { %v12852_v57 = vpop.permute.xlu0 %10171 }
 0x4ff   :  { %v12860_v14 = vpop.permute.xlu1 %10131  ;;  %v3844_v21 = vsel %vm3838_vm4, %v14494_v52, %v10109_v1 }
 0x500   :  { %v10134_v16 = vunpack.i.h.bf16 %v12860_v14  ;;  %v10133_v27 = vunpack.i.l.bf16 %v12860_v14  ;;  %v3861_v36 = vsel %vm3855_vm5, %v3844_v21, %v10139_v46  ;;  %v10149_v46 = vunpack.i.h.bf16 %v12846_v50 }
 0x502   :  { %v3859_v14 = vsel %vm3855_vm5, %v3842_v39, %v10134_v16  ;;  %v3858_v33 = vsel %vm3855_vm5, %v3841_v6, %v10133_v27  ;;  %v10113_v16 = vunpack.i.l.bf16 %v12854_v38 }
 0x503   :  { %v12869_v48 = vpop.permute.xlu1 %10141 }
 0x504   :  { %v12856_v17 = vpop.permute.xlu0 %10176  ;;  %v10144_v58 = vunpack.i.h.bf16 %v12869_v48  ;;  %v10143_v10 = vunpack.i.l.bf16 %v12869_v48 }
 0x505   :  { %v10179_v9 = vunpack.i.h.bf16 %v12856_v17  ;;  %v10178_v4 = vunpack.i.l.bf16 %v12856_v17 }
 0x507   :  { %v12886_v59 = vpop.permute.xlu1 %10151  ;;  %v3878_v63 = vsel %vm3872_vm6, %v3861_v36, %v10179_v9 }
 0x508   :  { %v12863_v13 = vpop.permute.xlu0 %10191 }
 0x50b   :  { %v10162_v19 = vpop.permute.xlu1 %10161 }
 0x50c   :  { %v10164_v23 = vunpack.i.h.bf16 %v10162_v19  ;;  %v10163_v43 = vunpack.i.l.bf16 %v10162_v19 }
 0x50e   :  { %v3876_v55 = vsel %vm3872_vm6, %v3859_v14, %v10164_v23  ;;  %v3875_v32 = vsel %vm3872_vm6, %v3858_v33, %v10163_v43  ;;  %v14497_v43 = vld [vmem:[#allocation2_spill] sm:$0xff] }
 0x514   :  { %v12875_v15 = vpop.permute.xlu0 %10196 }
 0x515   :  { %v10199_v9 = vunpack.i.h.bf16 %v12875_v15 }
 0x534   :  { %v10212_v56 = vpop.permute.xlu0 %10211 }
 0x535   :  { %v10214_v61 = vunpack.i.h.bf16 %v10212_v56  ;;  %v10213_v8 = vunpack.i.l.bf16 %v10212_v56  ;;  %v12927_v56 = vpop.permute.xlu1 %10166 }
 0x537   :  { %v3890_v5 = vsel %vm3889_vm7, %v3873_v35, %v10213_v8  ;;  %v3891_v20 = vsel %vm3889_vm7, %v3874_v62, %v10214_v61  ;;  %v3843_v61 = vsel %vm3838_vm4, %v14495_v44, %v10108_v11  ;;  %v14496_v35 = vld [vmem:[#allocation7_spill] sm:$0xff]  ;;  %v3865_v44 = vsel %vm3855_vm5, %v12775_v60, %v10149_v46 }
 0x538   :  { %v3907_v7 = vsel %vm3906_vm8, %v3890_v5, 0.0  ;;  %v3908_v41 = vsel %vm3906_vm8, %v3891_v20, 0.0  ;;  %v3860_v40 = vsel %vm3855_vm5, %v3843_v61, %v10138_v2  ;;  %v10039_v53 = vunpack.i.h.bf16 %v14496_v35 }
 0x539   :  { %v3923_v28 = vpack.c.bf16 %v3908_v41, %v3907_v7  ;;  %v10038_v17 = vunpack.i.l.bf16 %v14496_v35  ;;  %v3877_v19 = vsel %vm3872_vm6, %v3860_v40, %v10178_v4  ;;  %v10079_v5 = vunpack.i.h.bf16 %v12844_v34  ;;  %v10182_v18 = vpop.permute.xlu1 %10181 }
 0x53a   :  { %v10078_v20 = vunpack.i.l.bf16 %v12844_v34  ;;  %v3812_v34 = vsel %vm3804_vm2, %v14497_v43, %v10039_v53  ;;  %v10184_v39 = vunpack.i.h.bf16 %v10182_v18  ;;  %v10183_v6 = vunpack.i.l.bf16 %v10182_v18 }
 0x53b   :  { %9396 = vmatprep.mubr.msk.bf16.mxu1 %vm3947_vm9, %v3923_v28  ;;  %v3811_v42 = vsel %vm3804_vm2, %v14498_v22, %v10038_v17  ;;  %v10148_v2 = vunpack.i.l.bf16 %v12846_v50  ;;  %v10198_v4 = vunpack.i.l.bf16 %v12875_v15  ;;  %v3882_v40 = vsel %vm3872_vm6, %v3865_v44, %v10199_v9 }
 0x53c   :  { %v10217_v31 = vpop.permute.xlu0 %10216  ;;  %v3828_v38 = vsel %vm3821_vm3, %v3811_v42, %v10078_v20  ;;  %v10088_v15 = vunpack.i.l.bf16 %v12848_v25  ;;  %v10124_v60 = vunpack.i.h.bf16 %v12858_v30  ;;  %v10123_v17 = vunpack.i.l.bf16 %v12858_v30 }
 0x53d   :  { %v10219_v54 = vunpack.i.h.bf16 %v10217_v31  ;;  %v10218_v29 = vunpack.i.l.bf16 %v10217_v31  ;;  %v3829_v31 = vsel %vm3821_vm3, %v3812_v34, %v10079_v5  ;;  %v3845_v33 = vsel %vm3838_vm4, %v3828_v38, %v10113_v16  ;;  %v12971_v52 = vpop.permute.xlu1 %10186 }
 0x53e   :  { %v3846_v14 = vsel %vm3838_vm4, %v3829_v31, %v10114_v47  ;;  %v3864_v61 = vsel %vm3855_vm5, %v12779_v24, %v10148_v2  ;;  %v10153_v5 = vunpack.i.l.bf16 %v12886_v59  ;;  %v14500_v47 = vld [vmem:[#allocation9_spill] sm:$0xff]  ;;  %v10169_v2 = vunpack.i.h.bf16 %v12927_v56 }
 0x53f   :  { %v3893_v0 = vsel %vm3889_vm7, %v3876_v55, %v10219_v54  ;;  %v3892_v26 = vsel %vm3889_vm7, %v3875_v32, %v10218_v29  ;;  %v3863_v54 = vsel %vm3855_vm5, %v3846_v14, %v10144_v58  ;;  %v3862_v29 = vsel %vm3855_vm5, %v3845_v33, %v10143_v10 }
 0x540   :  { %v3910_v12 = vsel %vm3906_vm8, %v3893_v0, 0.0  ;;  %v3909_v37 = vsel %vm3906_vm8, %v3892_v26, 0.0  ;;  %v3880_v0 = vsel %vm3872_vm6, %v3863_v54, %v10184_v39  ;;  %v3879_v26 = vsel %vm3872_vm6, %v3862_v29, %v10183_v6 }
 0x541   :  { %v3924_v49 = vpack.c.bf16 %v3910_v12, %v3909_v37  ;;  %v3881_v50 = vsel %vm3872_vm6, %v3864_v61, %v10198_v4  ;;  %v3832_v16 = vsel %vm3821_vm3, %v14500_v47, %v10088_v15  ;;  %v10174_v39 = vunpack.i.h.bf16 %v12852_v57  ;;  %v14501_v15 = vld [vmem:[#allocation10_spill] sm:$0xff] }
 0x542   :  { %v10173_v6 = vunpack.i.l.bf16 %v12852_v57  ;;  %v10194_v33 = vunpack.i.h.bf16 %v12863_v13  ;;  %v10189_v4 = vunpack.i.h.bf16 %v12971_v52 }
 0x543   :  { %9397 = vmatmul.mubr.msk.bf16.vlgmr.msra.gmra.mrb[80].mxu1 %vm3947_vm9, %v3924_v49 }
 0x544   :  { %v10222_v8 = vpop.permute.xlu0 %10221  ;;  %v3851_v57 = vsel %vm3838_vm4, %v12729_v3, %v10173_v6 }
 0x545   :  { %v10224_v51 = vunpack.i.h.bf16 %v10222_v8  ;;  %v10223_v62 = vunpack.i.l.bf16 %v10222_v8 }
 0x547   :  { %v3894_v7 = vsel %vm3889_vm7, %v3877_v19, %v10223_v62  ;;  %v3895_v41 = vsel %vm3889_vm7, %v3878_v63, %v10224_v51  ;;  %v10089_v51 = vunpack.i.h.bf16 %v12848_v25  ;;  %v10202_v62 = vpop.permute.xlu1 %10201  ;;  %v10154_v19 = vunpack.i.h.bf16 %v12886_v59 }
 0x548   :  { %v3911_v27 = vsel %vm3906_vm8, %v3894_v7, 0.0  ;;  %v3912_v28 = vsel %vm3906_vm8, %v3895_v41, 0.0  ;;  %v10204_v18 = vunpack.i.h.bf16 %v10202_v62  ;;  %v10203_v25 = vunpack.i.l.bf16 %v10202_v62  ;;  %v14499_v7 = vld [vmem:[#allocation8_spill] sm:$0xff]  ;;  %v14502_v62 = vld [vmem:[#allocation11_spill] sm:$0xff] }
 0x549   :  { %v3925_v23 = vpack.c.bf16 %v3912_v28, %v3911_v27  ;;  %v3833_v41 = vsel %vm3821_vm3, %v14499_v7, %v10089_v51  ;;  %v3849_v27 = vsel %vm3838_vm4, %v3832_v16, %v10123_v17  ;;  %v10796_v16 = vld [vmem:[%s14455_s3] sm:$0xff]  }
 0x54a   :  { %v3850_v30 = vsel %vm3838_vm4, %v3833_v41, %v10124_v60  ;;  %v3866_v59 = vsel %vm3855_vm5, %v3849_v27, %v10153_v5  ;;  %v13053_v27 = vld [vmem:[%s14456_s15 + $0x1] ss:$0 sm:$0xff] }
 0x54b   :  { %9400 = vmatprep.mubr.msk.bf16.mxu1 %vm3947_vm9, %v3925_v23  ;;  %v3867_v58 = vsel %vm3855_vm5, %v3850_v30, %v10154_v19  ;;  %v3883_v43 = vsel %vm3872_vm6, %v3866_v59, %v10203_v25  ;;  %v13048_v30 = vld [vmem:[%s14456_s15] ss:$0 sm:$0xff] }
 0x54c   :  { %v10227_v48 = vpop.permute.xlu0 %10226  ;;  %v3884_v34 = vsel %vm3872_vm6, %v3867_v58, %v10204_v18 }
 0x54d   :  { %v10229_v55 = vunpack.i.h.bf16 %v10227_v48  ;;  %v10228_v32 = vunpack.i.l.bf16 %v10227_v48  ;;  %v10193_v48 = vunpack.i.l.bf16 %v12863_v13 }
 0x54f   :  { %v3897_v1 = vsel %vm3889_vm7, %v3880_v0, %v10229_v55  ;;  %v3896_v11 = vsel %vm3889_vm7, %v3879_v26, %v10228_v32  ;;  %v10207_v32 = vpop.permute.xlu1 %10206  ;;  %v3852_v0 = vsel %vm3838_vm4, %v12725_v45, %v10174_v39 }
 0x550   :  { %v3914_v12 = vsel %vm3906_vm8, %v3897_v1, 0.0  ;;  %v3913_v37 = vsel %vm3906_vm8, %v3896_v11, 0.0  ;;  %v3868_v1 = vsel %vm3855_vm5, %v3851_v57, %v10193_v48  ;;  %v3869_v11 = vsel %vm3855_vm5, %v3852_v0, %v10194_v33 }
 0x551   :  { %v3926_v49 = vpack.c.bf16 %v3914_v12, %v3913_v37 }
 0x553   :  { %9401 = vmatmul.mubr.msk.bf16.gmra.mrb[84].mxu1 %vm3947_vm9, %v3926_v49  ;;  %v10168_v49 = vunpack.i.l.bf16 %v12927_v56  ;;  %v10247_v9 = vpop.permute.xlu1 %10246  ;;  %v3837_v56 = vsel %vm3821_vm3, %v14501_v15, %v10169_v2 }
 0x554   :  { %v10232_v21 = vpop.permute.xlu0 %10231  ;;  %v10248_v51 = vunpack.i.l.bf16 %v10247_v9 }
 0x555   :  { %v10234_v8 = vunpack.i.h.bf16 %v10232_v21  ;;  %v10233_v36 = vunpack.i.l.bf16 %v10232_v21  ;;  %v10188_v21 = vunpack.i.l.bf16 %v12971_v52  ;;  %v3854_v52 = vsel %vm3838_vm4, %v3837_v56, %v10189_v4 }
 0x557   :  { %v3898_v35 = vsel %vm3889_vm7, %v3881_v50, %v10233_v36  ;;  %v3899_v53 = vsel %vm3889_vm7, %v3882_v40, %v10234_v8  ;;  %v10209_v8 = vunpack.i.h.bf16 %v10207_v32  ;;  %v10208_v36 = vunpack.i.l.bf16 %v10207_v32 }
 0x558   :  { %v3915_v24 = vsel %vm3906_vm8, %v3898_v35, 0.0  ;;  %v3916_v63 = vsel %vm3906_vm8, %v3899_v53, 0.0  ;;  %v10249_v40 = vunpack.i.h.bf16 %v10247_v9  ;;  %v3836_v35 = vsel %vm3821_vm3, %v14502_v62, %v10168_v49 }
 0x559   :  { %v3927_v20 = vpack.c.bf16 %v3916_v63, %v3915_v24  ;;  %v3853_v53 = vsel %vm3838_vm4, %v3836_v35, %v10188_v21  ;;  %v3871_v24 = vsel %vm3855_vm5, %v3854_v52, %v10209_v8 }
 0x55a   :  { %v3870_v17 = vsel %vm3855_vm5, %v3853_v53, %v10208_v36 }
 0x55b   :  { %9404 = vmatprep.mubr.msk.bf16.mxu1 %vm3947_vm9, %v3927_v20  ;;  %v3887_v5 = vsel %vm3872_vm6, %v3870_v17, %v10248_v51  ;;  %v3888_v20 = vsel %vm3872_vm6, %v3871_v24, %v10249_v40 }
 0x55c   :  { %v10237_v28 = vpop.permute.xlu0 %10236 }
 0x55d   :  { %v10239_v10 = vunpack.i.h.bf16 %v10237_v28  ;;  %v10238_v23 = vunpack.i.l.bf16 %v10237_v28 }
 0x55f   :  { %v3901_v22 = vsel %vm3889_vm7, %v3884_v34, %v10239_v10  ;;  %v3900_v42 = vsel %vm3889_vm7, %v3883_v43, %v10238_v23 }
 0x560   :  { %v3918_v31 = vsel %vm3906_vm8, %v3901_v22, 0.0  ;;  %v3917_v38 = vsel %vm3906_vm8, %v3900_v42, 0.0  ;;  %v10242_v14 = vpop.permute.xlu0 %10241 }
 0x561   :  { %v3928_v54 = vpack.c.bf16 %v3918_v31, %v3917_v38  ;;  %v10244_v29 = vunpack.i.h.bf16 %v10242_v14  ;;  %v10243_v55 = vunpack.i.l.bf16 %v10242_v14 }
 0x563   :  { %9405 = vmatmul.mubr.msk.bf16.gmra.mrb[88].mxu1 %vm3947_vm9, %v3928_v54  ;;  %v3885_v13 = vsel %vm3872_vm6, %v3868_v1, %v10243_v55  ;;  %v3886_v46 = vsel %vm3872_vm6, %v3869_v11, %v10244_v29 }
 0x564   :  { %v10252_v26 = vpop.permute.xlu0 %10251 }
 0x565   :  { %v10254_v12 = vunpack.i.h.bf16 %v10252_v26  ;;  %v10253_v37 = vunpack.i.l.bf16 %v10252_v26 }
 0x567   :  { %v3902_v45 = vsel %vm3889_vm7, %v3885_v13, %v10253_v37  ;;  %v3903_v3 = vsel %vm3889_vm7, %v3886_v46, %v10254_v12 }
 0x568   :  { %v3919_v44 = vsel %vm3906_vm8, %v3902_v45, 0.0  ;;  %v3920_v61 = vsel %vm3906_vm8, %v3903_v3, 0.0 }
 0x569   :  { %v3929_v50 = vpack.c.bf16 %v3920_v61, %v3919_v44 }
 0x56b   :  { %9408 = vmatprep.mubr.msk.bf16.mxu1 %vm3947_vm9, %v3929_v50 }
 0x56c   :  { %v10257_v60 = vpop.permute.xlu1 %10256 }
 0x56d   :  { %v10259_v63 = vunpack.i.h.bf16 %v10257_v60  ;;  %v10258_v19 = vunpack.i.l.bf16 %v10257_v60 }
 0x56f   :  { %v3904_v18 = vsel %vm3889_vm7, %v3887_v5, %v10258_v19  ;;  %v3905_v25 = vsel %vm3889_vm7, %v3888_v20, %v10259_v63 }
 0x570   :  { %v3921_v7 = vsel %vm3906_vm8, %v3904_v18, 0.0  ;;  %v3922_v41 = vsel %vm3906_vm8, %v3905_v25, 0.0 }
 0x571   :  { %v3930_v47 = vpack.c.bf16 %v3922_v41, %v3921_v7 }
 0x573   :  { %9409 = vmatmul.mubr.msk.bf16.gmra.mrb[92].mxu1 %vm3947_vm9, %v3930_v47 }
 0x574   :  { %9428 = vmatprep.mubr.bf16.mxu1 %v10796_v16 }
 0x616   :  { %v9398_v28 = vpop.f32.mrb[80].mxu1 }
 0x617   :  { %v4071_v58 = vmul.f32 %v9398_v28, %v13048_v30  ;;  %v4006_v59 = vpop.f32.mrb[81].mxu1 }
 0x618   :  { %v4069_v10 = vmul.f32 %v4006_v59, %v13048_v30  ;;  %v9399_v23 = vpop.f32.mrb[82].mxu1 }
 0x619   :  { %v4087_v43 = vadd.f32 %v4071_v58, %v13053_v27  ;;  %v4072_v34 = vmul.f32 %v9399_v23, %v13048_v30  ;;  %v4009_v22 = vpop.f32.mrb[83].mxu1 }
 0x61a   :  { %v4085_v42 = vadd.f32 %v4069_v10, %v13053_v27  ;;  %v4070_v39 = vmul.f32 %v4009_v22, %v13048_v30 }
 0x61b   :  { %v4119_v6 = vmul.f32 0.044715, %v4087_v43  ;;  %v4088_v31 = vadd.f32 %v4072_v34, %v13053_v27  ;;  %v4103_v20 = vmul.f32 0.5, %v4087_v43 }
 0x61c   :  { %v4117_v38 = vmul.f32 0.044715, %v4085_v42  ;;  %v4086_v14 = vadd.f32 %v4070_v39, %v13053_v27  ;;  %v4101_v41 = vmul.f32 0.5, %v4085_v42 }
 0x61d   :  { %v4135_v33 = vmul.f32 %v4119_v6, %v4087_v43  ;;  %v4120_v48 = vmul.f32 0.044715, %v4088_v31  ;;  %v4104_v59 = vmul.f32 0.5, %v4088_v31 }
 0x61e   :  { %v4133_v54 = vmul.f32 %v4117_v38, %v4085_v42  ;;  %v4118_v29 = vmul.f32 0.044715, %v4086_v14  ;;  %v4102_v22 = vmul.f32 0.5, %v4086_v14 }
 0x61f   :  { %v4136_v55 = vmul.f32 %v4120_v48, %v4088_v31  ;;  %v4151_v32 = vmul.f32 %v4135_v33, %v4087_v43 }
 0x620   :  { %v4134_v0 = vmul.f32 %v4118_v29, %v4086_v14  ;;  %v4149_v57 = vmul.f32 %v4133_v54, %v4085_v42 }
 0x621   :  { %v4152_v26 = vmul.f32 %v4136_v55, %v4088_v31  ;;  %v4167_v1 = vadd.f32 %v4151_v32, %v4087_v43 }
 0x622   :  { %v4150_v11 = vmul.f32 %v4134_v0, %v4086_v14  ;;  %v4165_v12 = vadd.f32 %v4149_v57, %v4085_v42 }
 0x623   :  { %v4168_v37 = vadd.f32 %v4152_v26, %v4088_v31  ;;  %v4183_v13 = vmul.f32 0.7978846, %v4167_v1 }
 0x624   :  { %v4166_v46 = vadd.f32 %v4150_v11, %v4086_v14  ;;  %v4181_v2 = vmul.f32 0.7978846, %v4165_v12 }
 0x625   :  { %v4184_v49 = vmul.f32 0.7978846, %v4168_v37  ;;  %11201 = vtanh.f32 %v4183_v13 }
 0x626   :  { %v9402_v9 = vpop.f32.mrb[84].mxu1  ;;  %v4182_v45 = vmul.f32 0.7978846, %v4166_v46  ;;  %11203 = vtanh.f32 %v4181_v2 }
 0x627   :  { %v4075_v3 = vmul.f32 %v9402_v9, %v13048_v30  ;;  %v4022_v4 = vpop.f32.mrb[85].mxu1  ;;  %11205 = vtanh.f32 %v4184_v49 }
 0x628   :  { %v4073_v21 = vmul.f32 %v4022_v4, %v13048_v30  ;;  %v9403_v44 = vpop.f32.mrb[86].mxu1  ;;  %11207 = vtanh.f32 %v4182_v45 }
 0x629   :  { %v13066_v61 = vadd.f32 %v4075_v3, %v13053_v27  ;;  %v4076_v8 = vmul.f32 %v9403_v44, %v13048_v30  ;;  %v4025_v36 = vpop.f32.mrb[87].mxu1 }
 0x62a   :  { %v13070_v50 = vadd.f32 %v4073_v21, %v13053_v27  ;;  %v4074_v40 = vmul.f32 %v4025_v36, %v13048_v30 }
 0x62b   :  { %v4123_v51 = vmul.f32 0.044715, %v13066_v61  ;;  %v13075_v15 = vadd.f32 %v4076_v8, %v13053_v27 }
 0x62c   :  { %v4121_v56 = vmul.f32 0.044715, %v13070_v50  ;;  %v13079_v62 = vadd.f32 %v4074_v40, %v13053_v27 }
 0x62d   :  { %v4139_v35 = vmul.f32 %v4123_v51, %v13066_v61  ;;  %v4124_v53 = vmul.f32 0.044715, %v13075_v15 }
 0x62e   :  { %v4137_v52 = vmul.f32 %v4121_v56, %v13070_v50  ;;  %v4122_v60 = vmul.f32 0.044715, %v13079_v62 }
 0x62f   :  { %v11202_v17 = vpop.eup %11201  ;;  %v4140_v24 = vmul.f32 %v4124_v53, %v13075_v15  ;;  %v4155_v63 = vmul.f32 %v4139_v35, %v13066_v61  ;;  %v4107_v53 = vmul.f32 0.5, %v13066_v61 }
 0x630   :  { %v11204_v19 = vpop.eup %11203  ;;  %v4138_v5 = vmul.f32 %v4122_v60, %v13079_v62  ;;  %v4215_v18 = vadd.f32 1.0, %v11202_v17  ;;  %v4153_v25 = vmul.f32 %v4137_v52, %v13070_v50 }
 0x631   :  { %v11206_v7 = vpop.eup %11205  ;;  %v4213_v47 = vadd.f32 1.0, %v11204_v19  ;;  %v4156_v16 = vmul.f32 %v4140_v24, %v13075_v15  ;;  %v4171_v28 = vadd.f32 %v4155_v63, %v13066_v61  ;;  %v4105_v24 = vmul.f32 0.5, %v13070_v50 }
 0x632   :  { %v11208_v58 = vpop.eup %11207  ;;  %v4216_v10 = vadd.f32 1.0, %v11206_v7  ;;  %v4154_v23 = vmul.f32 %v4138_v5, %v13079_v62  ;;  %v4169_v34 = vadd.f32 %v4153_v25, %v13070_v50  ;;  %v4231_v38 = vmul.f32 %v4215_v18, %v4103_v20 }
 0x633   :  { %v4214_v39 = vadd.f32 1.0, %v11208_v58  ;;  %v4172_v43 = vadd.f32 %v4156_v16, %v13075_v15  ;;  %v4187_v6 = vmul.f32 0.7978846, %v4171_v28  ;;  %v4229_v54 = vmul.f32 %v4213_v47, %v4101_v41 }
 0x634   :  { %v4232_v33 = vmul.f32 %v4216_v10, %v4104_v59  ;;  %v4170_v42 = vadd.f32 %v4154_v23, %v13079_v62  ;;  %v4185_v48 = vmul.f32 0.7978846, %v4169_v34  ;;  %v4108_v18 = vmul.f32 0.5, %v13075_v15 }
 0x635   :  { %v4230_v29 = vmul.f32 %v4214_v39, %v4102_v22  ;;  %v4188_v55 = vmul.f32 0.7978846, %v4172_v43  ;;  %11209 = vtanh.f32 %v4187_v6  ;;  %v4106_v61 = vmul.f32 0.5, %v13079_v62 }
 0x636   :  { %v9406_v31 = vpop.f32.mrb[88].mxu1  ;;  %v4246_v32 = vpack.c.bf16 %v4232_v33, %v4231_v38  ;;  %v4186_v0 = vmul.f32 0.7978846, %v4170_v42  ;;  %11211 = vtanh.f32 %v4185_v48 }
 0x637   :  { %v4079_v57 = vmul.f32 %v9406_v31, %v13048_v30  ;;  %v4038_v14 = vpop.f32.mrb[89].mxu1  ;;  %v4245_v26 = vpack.c.bf16 %v4230_v29, %v4229_v54  ;;  %11213 = vtanh.f32 %v4188_v55 }
 0x638   :  { %v4077_v1 = vmul.f32 %v4038_v14, %v13048_v30  ;;  %v9407_v11 = vpop.f32.mrb[90].mxu1  ;;  %11215 = vtanh.f32 %v4186_v0 }
 0x639   :  { %v13098_v12 = vadd.f32 %v4079_v57, %v13053_v27  ;;  %v4080_v37 = vmul.f32 %v9407_v11, %v13048_v30  ;;  %v4041_v13 = vpop.f32.mrb[91].mxu1  ;;  %9412 = vmatprep.subr.bf16.mxu1 %v4245_v26 }
 0x63a   :  { %v13102_v46 = vadd.f32 %v4077_v1, %v13053_v27  ;;  %v4078_v2 = vmul.f32 %v4041_v13, %v13048_v30  ;;  %9413 = vmatpush3.bf16.msra.mxu1 %v4245_v26 }
 0x63b   :  { %v4127_v49 = vmul.f32 0.044715, %v13098_v12  ;;  %v13107_v9 = vadd.f32 %v4080_v37, %v13053_v27  ;;  %9414 = vmatprep.subr.bf16.mxu1 %v4246_v32 }
 0x63c   :  { %v4125_v45 = vmul.f32 0.044715, %v13102_v46  ;;  %v13111_v3 = vadd.f32 %v4078_v2, %v13053_v27 }
 0x63d   :  { %v4143_v4 = vmul.f32 %v4127_v49, %v13098_v12  ;;  %v4128_v21 = vmul.f32 0.044715, %v13107_v9 }
 0x63e   :  { %v4141_v44 = vmul.f32 %v4125_v45, %v13102_v46  ;;  %v4126_v8 = vmul.f32 0.044715, %v13111_v3  ;;  %9415 = vmatpush3.bf16.msra.mxu1 %v4246_v32 }
 0x63f   :  { %v11210_v36 = vpop.eup %11209  ;;  %v4144_v40 = vmul.f32 %v4128_v21, %v13107_v9  ;;  %v4159_v51 = vmul.f32 %v4143_v4, %v13098_v12 }
 0x640   :  { %v11212_v56 = vpop.eup %11211  ;;  %v4142_v35 = vmul.f32 %v4126_v8, %v13111_v3  ;;  %v4219_v52 = vadd.f32 1.0, %v11210_v36  ;;  %v4157_v60 = vmul.f32 %v4141_v44, %v13102_v46  ;;  %v4109_v36 = vmul.f32 0.5, %v13102_v46 }
 0x641   :  { %v11214_v17 = vpop.eup %11213  ;;  %v4217_v63 = vadd.f32 1.0, %v11212_v56  ;;  %v4160_v19 = vmul.f32 %v4144_v40, %v13107_v9  ;;  %v4175_v5 = vadd.f32 %v4159_v51, %v13098_v12 }
 0x642   :  { %v11216_v20 = vpop.eup %11215  ;;  %v4220_v25 = vadd.f32 1.0, %v11214_v17  ;;  %v4158_v7 = vmul.f32 %v4142_v35, %v13111_v3  ;;  %v4173_v41 = vadd.f32 %v4157_v60, %v13102_v46  ;;  %v4235_v50 = vmul.f32 %v4219_v52, %v4107_v53 }
 0x643   :  { %v4218_v47 = vadd.f32 1.0, %v11216_v20  ;;  %v4176_v16 = vadd.f32 %v4160_v19, %v13107_v9  ;;  %v4191_v28 = vmul.f32 0.7978846, %v4175_v5  ;;  %v4233_v23 = vmul.f32 %v4217_v63, %v4105_v24 }
 0x644   :  { %v4236_v58 = vmul.f32 %v4220_v25, %v4108_v18  ;;  %v4174_v59 = vadd.f32 %v4158_v7, %v13111_v3  ;;  %v4189_v10 = vmul.f32 0.7978846, %v4173_v41  ;;  %v4112_v35 = vmul.f32 0.5, %v13107_v9 }
 0x645   :  { %v4234_v34 = vmul.f32 %v4218_v47, %v4106_v61  ;;  %v4192_v22 = vmul.f32 0.7978846, %v4176_v16  ;;  %11217 = vtanh.f32 %v4191_v28  ;;  %v4110_v17 = vmul.f32 0.5, %v13111_v3 }
 0x646   :  { %v9410_v15 = vpop.f32.mrb[92].mxu1  ;;  %v4248_v39 = vpack.c.bf16 %v4236_v58, %v4235_v50  ;;  %v4190_v43 = vmul.f32 0.7978846, %v4174_v59  ;;  %11219 = vtanh.f32 %v4189_v10 }
 0x647   :  { %v4083_v6 = vmul.f32 %v9410_v15, %v13048_v30  ;;  %v4054_v62 = vpop.f32.mrb[93].mxu1  ;;  %v4247_v38 = vpack.c.bf16 %v4234_v34, %v4233_v23  ;;  %11221 = vtanh.f32 %v4192_v22 }
 0x648   :  { %v4081_v33 = vmul.f32 %v4054_v62, %v13048_v30  ;;  %v9411_v42 = vpop.f32.mrb[94].mxu1  ;;  %11223 = vtanh.f32 %v4190_v43 }
 0x649   :  { %v4099_v48 = vadd.f32 %v4083_v6, %v13053_v27  ;;  %v4084_v54 = vmul.f32 %v9411_v42, %v13048_v30  ;;  %v4057_v29 = vpop.f32.mrb[95].mxu1  ;;  %9416 = vmatprep.subr.bf16.mxu1 %v4247_v38  ;;  %v10797_v42 = vld [vmem:[%s14455_s3 + $0x8] sm:$0xff]  }
 0x64a   :  { %v4097_v55 = vadd.f32 %v4081_v33, %v13053_v27  ;;  %v4082_v31 = vmul.f32 %v4057_v29, %v13048_v30  ;;  %9417 = vmatpush3.bf16.msra.mxu1 %v4247_v38  ;;  %v4111_v30 = vmul.f32 0.5, %v13098_v12  ;;  %v10800_v29 = vld [vmem:[%s14455_s3 + $0x20] sm:$0xff]  }
 0x64b   :  { %v4131_v32 = vmul.f32 0.044715, %v4099_v48  ;;  %v4100_v0 = vadd.f32 %v4084_v54, %v13053_v27  ;;  %9418 = vmatprep.subr.bf16.mxu1 %v4248_v39  ;;  %v4115_v59 = vmul.f32 0.5, %v4099_v48  ;;  %v10799_v54 = vld [vmem:[%s14455_s3 + $0x18] sm:$0xff]  }
 0x64c   :  { %v4129_v57 = vmul.f32 0.044715, %v4097_v55  ;;  %v4098_v14 = vadd.f32 %v4082_v31, %v13053_v27  ;;  %v4113_v34 = vmul.f32 0.5, %v4097_v55  ;;  %v10802_v31 = vld [vmem:[%s14455_s3 + $0x30] sm:$0xff]  }
 0x64d   :  { %v4147_v26 = vmul.f32 %v4131_v32, %v4099_v48  ;;  %v4132_v1 = vmul.f32 0.044715, %v4100_v0  ;;  %v4116_v10 = vmul.f32 0.5, %v4100_v0  ;;  %v10803_v32 = vld [vmem:[%s14455_s3 + $0x38] sm:$0xff]  }
 0x64e   :  { %v4145_v11 = vmul.f32 %v4129_v57, %v4097_v55  ;;  %v4130_v37 = vmul.f32 0.044715, %v4098_v14  ;;  %9419 = vmatpush3.bf16.msra.mxu1 %v4248_v39  ;;  %v4114_v22 = vmul.f32 0.5, %v4098_v14 }
 0x64f   :  { %v11218_v13 = vpop.eup %11217  ;;  %v4148_v2 = vmul.f32 %v4132_v1, %v4100_v0  ;;  %v4163_v49 = vmul.f32 %v4147_v26, %v4099_v48 }
 0x650   :  { %v11220_v45 = vpop.eup %11219  ;;  %v4146_v4 = vmul.f32 %v4130_v37, %v4098_v14  ;;  %v4223_v21 = vadd.f32 1.0, %v11218_v13  ;;  %v4161_v44 = vmul.f32 %v4145_v11, %v4097_v55 }
 0x651   :  { %v11222_v8 = vpop.eup %11221  ;;  %v4221_v40 = vadd.f32 1.0, %v11220_v45  ;;  %v4164_v51 = vmul.f32 %v4148_v2, %v4100_v0  ;;  %v4179_v27 = vadd.f32 %v4163_v49, %v4099_v48  ;;  %v10798_v48 = vld [vmem:[%s14455_s3 + $0x10] sm:$0xff]  }
 0x652   :  { %v11224_v56 = vpop.eup %11223  ;;  %v4224_v53 = vadd.f32 1.0, %v11222_v8  ;;  %v4162_v52 = vmul.f32 %v4146_v4, %v4098_v14  ;;  %v4177_v60 = vadd.f32 %v4161_v44, %v4097_v55  ;;  %v4239_v12 = vmul.f32 %v4223_v21, %v4111_v30  ;;  %v10801_v55 = vld [vmem:[%s14455_s3 + $0x28] sm:$0xff]  }
 0x653   :  { %v4222_v24 = vadd.f32 1.0, %v11224_v56  ;;  %v4180_v63 = vadd.f32 %v4164_v51, %v4100_v0  ;;  %v4195_v19 = vmul.f32 0.7978846, %v4179_v27  ;;  %v4237_v25 = vmul.f32 %v4221_v40, %v4109_v36  ;;  %v10804_v0 = vld [vmem:[%s14457_s4] sm:$0xff]  }
 0x654   :  { %v4240_v5 = vmul.f32 %v4224_v53, %v4112_v35  ;;  %v4178_v20 = vadd.f32 %v4162_v52, %v4098_v14  ;;  %v4193_v18 = vmul.f32 0.7978846, %v4177_v60 }
 0x655   :  { %v4238_v46 = vmul.f32 %v4222_v24, %v4110_v17  ;;  %v4196_v7 = vmul.f32 0.7978846, %v4180_v63  ;;  %11225 = vtanh.f32 %v4195_v19 }
 0x656   :  { %v4250_v41 = vpack.c.bf16 %v4240_v5, %v4239_v12  ;;  %v4194_v61 = vmul.f32 0.7978846, %v4178_v20  ;;  %11227 = vtanh.f32 %v4193_v18  ;;  %v10805_v20 = vld [vmem:[%s14457_s4 + $0x8] sm:$0xff]   ;;  %v10806_v18 = vld [vmem:[%s14457_s4 + $0x10] sm:$0xff]  }
 0x657   :  { %v4249_v9 = vpack.c.bf16 %v4238_v46, %v4237_v25  ;;  %11229 = vtanh.f32 %v4196_v7  ;;  %v10807_v25 = vld [vmem:[%s14457_s4 + $0x18] sm:$0xff]   ;;  %v10808_v46 = vld [vmem:[%s14457_s4 + $0x20] sm:$0xff]   ;;  %v10809_v7 = vld [vmem:[%s14457_s4 + $0x28] sm:$0xff]  }
 0x658   :  { %11231 = vtanh.f32 %v4194_v61  ;;  %v10811_v61 = vld [vmem:[%s14457_s4 + $0x38] sm:$0xff]  }
 0x659   :  { %9420 = vmatprep.subr.bf16.mxu1 %v4249_v9 }
 0x65a   :  { %9421 = vmatpush3.bf16.msra.mxu1 %v4249_v9  ;;  %v10812_v9 = vld [vmem:[%s14457_s4 + $0x40] sm:$0xff]  }
 0x65b   :  { %9422 = vmatprep.subr.bf16.mxu1 %v4250_v41 }
 0x65e   :  { %9423 = vmatpush3.bf16.msra.mxu1 %v4250_v41  ;;  %v10810_v41 = vld [vmem:[%s14457_s4 + $0x30] sm:$0xff]  }
 0x65f   :  { %v11226_v3 = vpop.eup %11225 }
 0x660   :  { %v11228_v47 = vpop.eup %11227  ;;  %v4227_v16 = vadd.f32 1.0, %v11226_v3  ;;  %v10813_v3 = vld [vmem:[%s14457_s4 + $0x48] sm:$0xff]  }
 0x661   :  { %v11230_v28 = vpop.eup %11229  ;;  %v4225_v50 = vadd.f32 1.0, %v11228_v47  ;;  %v10814_v47 = vld [vmem:[%s14457_s4 + $0x50] sm:$0xff]  }
 0x662   :  { %v11232_v58 = vpop.eup %11231  ;;  %v4228_v23 = vadd.f32 1.0, %v11230_v28  ;;  %v4243_v39 = vmul.f32 %v4227_v16, %v4115_v59  ;;  %v10815_v16 = vld [vmem:[%s14457_s4 + $0x58] sm:$0xff]   ;;  %v10816_v28 = vld [vmem:[%s14457_s4 + $0x60] sm:$0xff]  }
 0x663   :  { %v4226_v15 = vadd.f32 1.0, %v11232_v58  ;;  %v4241_v6 = vmul.f32 %v4225_v50, %v4113_v34  ;;  %v10817_v50 = vld [vmem:[%s14457_s4 + $0x68] sm:$0xff]   ;;  %v10818_v58 = vld [vmem:[%s14457_s4 + $0x70] sm:$0xff]   ;;  %v10819_v59 = vld [vmem:[%s14457_s4 + $0x78] sm:$0xff]  }
 0x664   :  { %v4244_v43 = vmul.f32 %v4228_v23, %v4116_v10  ;;  %v10820_v10 = vld [vmem:[%s14457_s4 + $0x80] sm:$0xff]   ;;  %v10821_v23 = vld [vmem:[%s14457_s4 + $0x88] sm:$0xff]  }
 0x665   :  { %v4242_v62 = vmul.f32 %v4226_v15, %v4114_v22 }
 0x666   :  { %v4252_v38 = vpack.c.bf16 %v4244_v43, %v4243_v39  ;;  %v10822_v43 = vld [vmem:[%s14458_s5 + $0x40] sm:$0xff]  }
 0x667   :  { %v4251_v33 = vpack.c.bf16 %v4242_v62, %v4241_v6  ;;  %v10823_v62 = vld [vmem:[%s14458_s5] sm:$0xff]  }
 0x669   :  { %9424 = vmatprep.subr.bf16.mxu1 %v4251_v33 }
 0x66a   :  { %9425 = vmatpush3.bf16.msra.mxu1 %v4251_v33 }
 0x66b   :  { %9426 = vmatprep.subr.bf16.mxu1 %v4252_v38 }
 0x66e   :  { %9427 = vmatpush3.bf16.msra.mxu1 %v4252_v38 }
 0x671   :  { %9429 = vmatmul.mubr.bf16.vlgmr.msra.gmra.mrb[96].mxu1 %v10797_v42 }
 0x672   :  { %9432 = vmatprep.mubr.bf16.mxu1 %v10798_v48 }
 0x679   :  { %9433 = vmatmul.mubr.bf16.gmra.mrb[100].mxu1 %v10799_v54  ;;  %v10824_v54 = vld [vmem:[%s14458_s5 + $0x48] sm:$0xff]  }
 0x67a   :  { %9436 = vmatprep.mubr.bf16.mxu1 %v10800_v29 }
 0x681   :  { %9437 = vmatmul.mubr.bf16.gmra.mrb[104].mxu1 %v10801_v55 }
 0x682   :  { %9440 = vmatprep.mubr.bf16.mxu1 %v10802_v31 }
 0x689   :  { %9441 = vmatmul.mubr.bf16.gmra.mrb[108].mxu1 %v10803_v32 }
 0x68a   :  { %9448 = vmatprep.mubr.msk.bf16.mxu1 %vm3947_vm9, %v10804_v0 }
 0x744   :  { %v9430_v57 = vpop.f32.mrb[96].mxu1 }
 0x745   :  { %v4351_v14 = vpop.f32.mrb[97].mxu1 }
 0x746   :  { %v9431_v26 = vpop.f32.mrb[98].mxu1 }
 0x747   :  { %v4354_v1 = vpop.f32.mrb[99].mxu1 }
 0x74c   :  { %v9434_v11 = vpop.f32.mrb[100].mxu1 }
 0x74d   :  { %v4416_v37 = vmax.f32 %v9430_v57, %v9434_v11  ;;  %v4367_v13 = vpop.f32.mrb[101].mxu1 }
 0x74e   :  { %v4414_v2 = vmax.f32 %v4351_v14, %v4367_v13  ;;  %v9435_v49 = vpop.f32.mrb[102].mxu1  ;;  %v10827_v13 = vld [vmem:[%s14458_s5 + $0x10] sm:$0xff]  }
 0x74f   :  { %v4417_v45 = vmax.f32 %v9431_v26, %v9435_v49  ;;  %v4370_v4 = vpop.f32.mrb[103].mxu1  ;;  %v10825_v26 = vld [vmem:[%s14458_s5 + $0x8] sm:$0xff]  }
 0x750   :  { %v4415_v30 = vmax.f32 %v4354_v1, %v4370_v4 }
 0x754   :  { %v9438_v21 = vpop.f32.mrb[104].mxu1 }
 0x755   :  { %v4383_v44 = vpop.f32.mrb[105].mxu1 }
 0x756   :  { %v9439_v8 = vpop.f32.mrb[106].mxu1 }
 0x757   :  { %v4386_v36 = vpop.f32.mrb[107].mxu1 }
 0x75c   :  { %v9442_v40 = vpop.f32.mrb[108].mxu1 }
 0x75d   :  { %v4420_v51 = vmax.f32 %v9438_v21, %v9442_v40  ;;  %v4399_v27 = vpop.f32.mrb[109].mxu1 }
 0x75e   :  { %v4418_v56 = vmax.f32 %v4383_v44, %v4399_v27  ;;  %v9443_v35 = vpop.f32.mrb[110].mxu1  ;;  %v10828_v44 = vld [vmem:[%s14458_s5 + $0x58] sm:$0xff]   ;;  %v10831_v27 = vld [vmem:[%s14458_s5 + $0x20] sm:$0xff]  }
 0x75f   :  { %v4424_v53 = vmax.f32 %v4416_v37, %v4420_v51  ;;  %v4421_v52 = vmax.f32 %v9439_v8, %v9443_v35  ;;  %v4402_v60 = vpop.f32.mrb[111].mxu1  ;;  %v10826_v37 = vld [vmem:[%s14458_s5 + $0x50] sm:$0xff]   ;;  %v10830_v51 = vld [vmem:[%s14458_s5 + $0x60] sm:$0xff]  }
 0x760   :  { %v4422_v17 = vmax.f32 %v4414_v2, %v4418_v56  ;;  %v4419_v24 = vmax.f32 %v4386_v36, %v4402_v60  ;;  %v10829_v36 = vld [vmem:[%s14458_s5 + $0x18] sm:$0xff]   ;;  %v10833_v60 = vld [vmem:[%s14458_s5 + $0x28] sm:$0xff]  }
 0x761   :  { %v4425_v63 = vmax.f32 %v4417_v45, %v4421_v52 }
 0x762   :  { %v4423_v19 = vmax.f32 %v4415_v30, %v4419_v24 }
 0x763   :  { %v4427_v12 = vpack.c.bf16 %v4425_v63, %v4424_v53  ;;  %v10832_v53 = vld [vmem:[%s14458_s5 + $0x68] sm:$0xff]   ;;  %v10834_v63 = vld [vmem:[%s14458_s5 + $0x70] sm:$0xff]  }
 0x764   :  { %v4426_v5 = vpack.c.bf16 %v4423_v19, %v4422_v17 }
 0x766   :  { %9444 = vmatprep.subr.bf16.mxu1 %v4426_v5 }
 0x767   :  { %9445 = vmatpush3.bf16.msra.mxu1 %v4426_v5 }
 0x768   :  { %9446 = vmatprep.subr.bf16.mxu1 %v4427_v12 }
 0x76b   :  { %9447 = vmatpush3.bf16.msra.mxu1 %v4427_v12  ;;  %v10835_v12 = vld [vmem:[%s14458_s5 + $0x30] sm:$0xff]  }
 0x76c   :  { %9156 = vmatprep.subr.bf16.mxu1 %v10822_v43 }
 0x76e   :  { %9449 = vmatmul.mubr.msk.bf16.vlgmr.msra.gmra.mrb[112].mxu1 %vm3947_vm9, %v10805_v20 }
 0x76f   :  { %9452 = vmatprep.mubr.msk.bf16.mxu1 %vm3947_vm9, %v10806_v18  ;;  %9157 = vmatpush3.bf16.msra.mxu1 %v10823_v62  ;;  %v10836_v18 = vld [vmem:[%s14458_s5 + $0x78] sm:$0xff]  }
 0x770   :  { %9158 = vmatprep.subr.bf16.mxu1 %v10824_v54 }
 0x773   :  { %9159 = vmatpush3.bf16.msra.mxu1 %v10825_v26 }
 0x774   :  { %9160 = vmatprep.subr.bf16.mxu1 %v10826_v37 }
 0x776   :  { %9453 = vmatmul.mubr.msk.bf16.gmra.mrb[116].mxu1 %vm3947_vm9, %v10807_v25  ;;  %v10837_v25 = vld [vmem:[%s14458_s5 + $0x38] sm:$0xff]  }
 0x777   :  { %9456 = vmatprep.mubr.msk.bf16.mxu1 %vm3947_vm9, %v10808_v46  ;;  %9161 = vmatpush3.bf16.msra.mxu1 %v10827_v13 }
 0x778   :  { %9162 = vmatprep.subr.bf16.mxu1 %v10828_v44 }
 0x77b   :  { %9163 = vmatpush3.bf16.msra.mxu1 %v10829_v36 }
 0x77c   :  { %9164 = vmatprep.subr.bf16.mxu1 %v10830_v51 }
 0x77e   :  { %9457 = vmatmul.mubr.msk.bf16.gmra.mrb[120].mxu1 %vm3947_vm9, %v10809_v7 }
 0x77f   :  { %9460 = vmatprep.mubr.msk.bf16.mxu1 %vm3947_vm9, %v10810_v41  ;;  %9165 = vmatpush3.bf16.msra.mxu1 %v10831_v27 }
 0x780   :  { %9166 = vmatprep.subr.bf16.mxu1 %v10832_v53 }
 0x783   :  { %9167 = vmatpush3.bf16.msra.mxu1 %v10833_v60 }
 0x784   :  { %9168 = vmatprep.subr.bf16.mxu1 %v10834_v63 }
 0x786   :  { %9461 = vmatmul.mubr.msk.bf16.gmra.mrb[124].mxu1 %vm3947_vm9, %v10811_v61 }
 0x787   :  { %9464 = vmatprep.mubr.msk.bf16.mxu1 %vm3947_vm9, %v10812_v9  ;;  %9169 = vmatpush3.bf16.msra.mxu1 %v10835_v12 }
 0x788   :  { %9170 = vmatprep.subr.bf16.mxu1 %v10836_v18 }
 0x78b   :  { %9171 = vmatpush3.bf16.msra.mxu1 %v10837_v25 }
 0x78e   :  { %9465 = vmatmul.mubr.msk.bf16.gmra.mrb[128].mxu1 %vm3947_vm9, %v10813_v3 }
 0x78f   :  { %9468 = vmatprep.mubr.msk.bf16.mxu1 %vm3947_vm9, %v10814_v47 }
 0x796   :  { %9469 = vmatmul.mubr.msk.bf16.gmra.mrb[132].mxu1 %vm3947_vm9, %v10815_v16 }
 0x797   :  { %9472 = vmatprep.mubr.msk.bf16.mxu1 %vm3947_vm9, %v10816_v28 }
 0x79e   :  { %9473 = vmatmul.mubr.msk.bf16.gmra.mrb[136].mxu1 %vm3947_vm9, %v10817_v50 }
 0x79f   :  { %9476 = vmatprep.mubr.msk.bf16.mxu1 %vm3947_vm9, %v10818_v58  ;;  %v13312_v58 = vld [vmem:[%s14458_s5 + $0x80] sm:$0xff]  }
 0x7a0   :  { %9484 = vmatprep.subr.bf16.mxu1 %v13312_v58 }
 0x7a6   :  { %9477 = vmatmul.mubr.msk.bf16.gmra.mrb[140].mxu1 %vm3947_vm9, %v10819_v59 }
 0x7a7   :  { %9480 = vmatprep.mubr.msk.bf16.mxu1 %vm3947_vm9, %v10820_v10 }
 0x7ae   :  { %9481 = vmatmul.mubr.msk.bf16.gmra.mrb[144].mxu1 %vm3947_vm9, %v10821_v23 }
 0x841   :  { %v13236_v34 = vpop.f32.mrb[112].mxu1 }
 0x842   :  { %v13238_v22 = vpop.f32.mrb[113].mxu1 }
 0x843   :  { %v13240_v15 = vpop.f32.mrb[114].mxu1 }
 0x844   :  { %v13242_v39 = vpop.f32.mrb[115].mxu1 }
 0x849   :  { %v9454_v6 = vpop.f32.mrb[116].mxu1 }
 0x84a   :  { %v4660_v38 = vpop.f32.mrb[117].mxu1 }
 0x84b   :  { %v9455_v33 = vpop.f32.mrb[118].mxu1 }
 0x84c   :  { %v10260_v42 = vpack.i.bf16 %v9455_v33, %v9454_v6  ;;  %v4663_v48 = vpop.f32.mrb[119].mxu1 }
 0x84d   :  { %v10265_v29 = vpack.i.bf16 %v4663_v48, %v4660_v38 }
 0x84e   :  { %10261 = vrot.lane.b32.xlu1 %v10260_v42, %s11271_s30 }
 0x851   :  { %v9458_v55 = vpop.f32.mrb[120].mxu1 }
 0x852   :  { %10266 = vrot.lane.b32.xlu1 %v10265_v29, %s11271_s30  ;;  %v4676_v31 = vpop.f32.mrb[121].mxu1 }
 0x853   :  { %v9459_v32 = vpop.f32.mrb[122].mxu1 }
 0x854   :  { %v10305_v0 = vpack.i.bf16 %v9459_v32, %v9458_v55  ;;  %v4679_v57 = vpop.f32.mrb[123].mxu1 }
 0x855   :  { %v10270_v14 = vpack.i.bf16 %v4679_v57, %v4676_v31 }
 0x857   :  { %10271 = vrot.lane.b32.xlu1 %v10270_v14, %s11272_s1 }
 0x859   :  { %v9462_v1 = vpop.f32.mrb[124].mxu1 }
 0x85a   :  { %v4692_v11 = vpop.f32.mrb[125].mxu1 }
 0x85b   :  { %v9463_v2 = vpop.f32.mrb[126].mxu1 }
 0x85c   :  { %v10315_v49 = vpack.i.bf16 %v9463_v2, %v9462_v1  ;;  %v4695_v45 = vpop.f32.mrb[127].mxu1 }
 0x85d   :  { %v10275_v4 = vpack.i.bf16 %v4695_v45, %v4692_v11 }
 0x85f   :  { %10276 = vrot.lane.b32.xlu1 %v10275_v4, %s11273_s24 }
 0x861   :  { %v13266_v30 = vpop.f32.mrb[128].mxu1 }
 0x862   :  { %v13268_v21 = vpop.f32.mrb[129].mxu1 }
 0x863   :  { %10306 = vrot.lane.b32.xlu1 %v10305_v0, %s11272_s1  ;;  %v13274_v8 = vpop.f32.mrb[130].mxu1 }
 0x864   :  { %v13279_v40 = vpop.f32.mrb[131].mxu1 }
 0x867   :  { %10316 = vrot.lane.b32.xlu1 %v10315_v49, %s11273_s24 }
 0x869   :  { %v9470_v56 = vpop.f32.mrb[132].mxu1 }
 0x86a   :  { %v4724_v35 = vpop.f32.mrb[133].mxu1 }
 0x86b   :  { %v9471_v52 = vpop.f32.mrb[134].mxu1 }
 0x86c   :  { %v10280_v17 = vpack.i.bf16 %v9471_v52, %v9470_v56  ;;  %v4727_v24 = vpop.f32.mrb[135].mxu1 }
 0x86d   :  { %v10285_v19 = vpack.i.bf16 %v4727_v24, %v4724_v35 }
 0x86e   :  { %10281 = vrot.lane.b32.xlu0 %v10280_v17, %s11271_s30 }
 0x871   :  { %v9474_v5 = vpop.f32.mrb[136].mxu1 }
 0x872   :  { %10286 = vrot.lane.b32.xlu0 %v10285_v19, %s11271_s30  ;;  %v4740_v20 = vpop.f32.mrb[137].mxu1 }
 0x873   :  { %v9475_v46 = vpop.f32.mrb[138].mxu1 }
 0x874   :  { %v10300_v7 = vpack.i.bf16 %v9475_v46, %v9474_v5  ;;  %v4743_v41 = vpop.f32.mrb[139].mxu1 }
 0x875   :  { %v10290_v61 = vpack.i.bf16 %v4743_v41, %v4740_v20 }
 0x877   :  { %10291 = vrot.lane.b32.xlu0 %v10290_v61, %s11272_s1 }
 0x879   :  { %v9478_v9 = vpop.f32.mrb[140].mxu1 }
 0x87a   :  { %v4756_v3 = vpop.f32.mrb[141].mxu1 }
 0x87b   :  { %v9479_v47 = vpop.f32.mrb[142].mxu1 }
 0x87c   :  { %v10310_v16 = vpack.i.bf16 %v9479_v47, %v9478_v9  ;;  %v4759_v28 = vpop.f32.mrb[143].mxu1 }
 0x87d   :  { %v10295_v50 = vpack.i.bf16 %v4759_v28, %v4756_v3 }
 0x87f   :  { %10296 = vrot.lane.b32.xlu0 %v10295_v50, %s11273_s24 }
 0x881   :  { %v13316_v59 = vpop.f32.mrb[144].mxu1 }
 0x882   :  { %v13318_v10 = vpop.f32.mrb[145].mxu1 }
 0x883   :  { %10301 = vrot.lane.b32.xlu0 %v10300_v7, %s11272_s1  ;;  %v13321_v23 = vpop.f32.mrb[146].mxu1 }
 0x884   :  { %v4914_v43 = vpack.c.bf16 %v13321_v23, %v13316_v59  ;;  %v13325_v6 = vpop.f32.mrb[147].mxu1  ;;  %v4428_v23 = vld [vmem:[%s14456_s15 + $0x2] ss:$0 sm:$0xff] }
 0x885   :  { %v4911_v62 = vpack.c.bf16 %v13325_v6, %v13318_v10 }
 0x887   :  { %10311 = vrot.lane.b32.xlu0 %v10310_v16, %s11273_s24 }
 0x8c0   :  { %v10262_v38 = vpop.permute.xlu1 %10261 }
 0x8c1   :  { %v10264_v49 = vunpack.i.h.bf16 %v10262_v38  ;;  %v10263_v45 = vunpack.i.l.bf16 %v10262_v38 }
 0x8c3   :  { %v4885_v36 = vsel %vm3947_vm9, %v13236_v34, %v10263_v45 }
 0x8c4   :  { %v10267_v33 = vpop.permute.xlu1 %10266 }
 0x8c5   :  { %v10269_v48 = vunpack.i.h.bf16 %v10267_v33  ;;  %v10268_v54 = vunpack.i.l.bf16 %v10267_v33 }
 0x8c7   :  { %v4884_v32 = vsel %vm3947_vm9, %v13242_v39, %v10269_v48  ;;  %v4883_v0 = vsel %vm3947_vm9, %v13238_v22, %v10268_v54  ;;  %v4886_v22 = vsel %vm3947_vm9, %v13240_v15, %v10264_v49  ;;  %v4429_v49 = vld [vmem:[%s14456_s15 + $0x3] ss:$0 sm:$0xff] }
 0x8c9   :  { %v10272_v42 = vpop.permute.xlu1 %10271 }
 0x8ca   :  { %v10274_v29 = vunpack.i.h.bf16 %v10272_v42  ;;  %v10273_v55 = vunpack.i.l.bf16 %v10272_v42 }
 0x8cc   :  { %v4889_v26 = vsel %vm4887_vm10, %v4884_v32, %v10274_v29  ;;  %v4888_v1 = vsel %vm4887_vm10, %v4883_v0, %v10273_v55 }
 0x8d1   :  { %v10277_v31 = vpop.permute.xlu1 %10276 }
 0x8d2   :  { %v10279_v57 = vunpack.i.h.bf16 %v10277_v31  ;;  %v10278_v14 = vunpack.i.l.bf16 %v10277_v31 }
 0x8d4   :  { %v4894_v11 = vsel %vm4892_vm11, %v4889_v26, %v10279_v57  ;;  %v4893_v37 = vsel %vm4892_vm11, %v4888_v1, %v10278_v14 }
 0x8d5   :  { %v4909_v13 = vpack.c.bf16 %v4894_v11, %v4893_v37  ;;  %v10307_v2 = vpop.permute.xlu1 %10306 }
 0x8d6   :  { %v10309_v4 = vunpack.i.h.bf16 %v10307_v2  ;;  %v10308_v44 = vunpack.i.l.bf16 %v10307_v2 }
 0x8d8   :  { %v4891_v56 = vsel %vm4887_vm10, %v4886_v22, %v10309_v4  ;;  %v4890_v35 = vsel %vm4887_vm10, %v4885_v36, %v10308_v44 }
 0x8d9   :  { %v10317_v39 = vpop.permute.xlu1 %10316 }
 0x8da   :  { %v10319_v51 = vunpack.i.h.bf16 %v10317_v39  ;;  %v10318_v27 = vunpack.i.l.bf16 %v10317_v39 }
 0x8dc   :  { %v4895_v53 = vsel %vm4892_vm11, %v4890_v35, %v10318_v27  ;;  %v4896_v52 = vsel %vm4892_vm11, %v4891_v56, %v10319_v51 }
 0x8dd   :  { %v4912_v60 = vpack.c.bf16 %v4896_v52, %v4895_v53 }
 0x8e0   :  { %v10282_v17 = vpop.permute.xlu0 %10281 }
 0x8e1   :  { %v10284_v16 = vunpack.i.h.bf16 %v10282_v17  ;;  %v10283_v28 = vunpack.i.l.bf16 %v10282_v17 }
 0x8e3   :  { %v4900_v33 = vsel %vm3947_vm9, %v13274_v8, %v10284_v16  ;;  %v4899_v42 = vsel %vm3947_vm9, %v13266_v30, %v10283_v28  ;;  %v10840_v30 = vld [vmem:[%s14459_s6] sm:$0xff]  }
 0x8e4   :  { %v10287_v24 = vpop.permute.xlu0 %10286 }
 0x8e5   :  { %v10289_v19 = vunpack.i.h.bf16 %v10287_v24  ;;  %v10288_v12 = vunpack.i.l.bf16 %v10287_v24 }
 0x8e7   :  { %v4898_v34 = vsel %vm3947_vm9, %v13279_v40, %v10289_v19  ;;  %v4897_v18 = vsel %vm3947_vm9, %v13268_v21, %v10288_v12  ;;  %v10839_v40 = vld [vmem:[%s14458_s5 + $0x88] sm:$0xff]  }
 0x8e9   :  { %v10292_v63 = vpop.permute.xlu0 %10291 }
 0x8ea   :  { %v10294_v15 = vunpack.i.h.bf16 %v10292_v63  ;;  %v10293_v5 = vunpack.i.l.bf16 %v10292_v63 }
 0x8ec   :  { %v4902_v7 = vsel %vm4887_vm10, %v4898_v34, %v10294_v15  ;;  %v4901_v41 = vsel %vm4887_vm10, %v4897_v18, %v10293_v5 }
 0x8f1   :  { %v10297_v20 = vpop.permute.xlu0 %10296 }
 0x8f2   :  { %v10299_v25 = vunpack.i.h.bf16 %v10297_v20  ;;  %v10298_v46 = vunpack.i.l.bf16 %v10297_v20 }
 0x8f4   :  { %v4905_v61 = vsel %vm4892_vm11, %v4901_v41, %v10298_v46  ;;  %v4906_v9 = vsel %vm4892_vm11, %v4902_v7, %v10299_v25 }
 0x8f5   :  { %v10302_v3 = vpop.permute.xlu0 %10301  ;;  %v4910_v47 = vpack.c.bf16 %v4906_v9, %v4905_v61 }
 0x8f6   :  { %v10304_v50 = vunpack.i.h.bf16 %v10302_v3  ;;  %v10303_v21 = vunpack.i.l.bf16 %v10302_v3 }
 0x8f7   :  { %5097 = vmatprep.mubr.bf16.mxu1 %v4910_v47 }
 0x8f8   :  { %5098 = vmatmul.mubr.bf16.vlgmr.msra.gmra.mrb[148].mxu1 %v4909_v13  ;;  %v4904_v29 = vsel %vm4887_vm10, %v4900_v33, %v10304_v50  ;;  %v4903_v55 = vsel %vm4887_vm10, %v4899_v42, %v10303_v21 }
 0x8f9   :  { %v10312_v38 = vpop.permute.xlu0 %10311  ;;  %9485 = vmatpush3.bf16.msra.mxu1 %v13312_v58 }
 0x8fa   :  { %v10314_v48 = vunpack.i.h.bf16 %v10312_v38  ;;  %v10313_v54 = vunpack.i.l.bf16 %v10312_v38  ;;  %9486 = vmatprep.subr.bf16.mxu1 %v10839_v40 }
 0x8fc   :  { %v4907_v31 = vsel %vm4892_vm11, %v4903_v55, %v10313_v54  ;;  %v4908_v32 = vsel %vm4892_vm11, %v4904_v29, %v10314_v48 }
 0x8fd   :  { %v4913_v0 = vpack.c.bf16 %v4908_v32, %v4907_v31  ;;  %9487 = vmatpush3.bf16.msra.mxu1 %v10839_v40 }
 0x8ff   :  { %5105 = vmatprep.mubr.bf16.mxu1 %v4913_v0 }
 0x900   :  { %5106 = vmatmul.mubr.bf16.gmra.mrb[152].mxu1 %v4912_v60 }
 0x901   :  { %9488 = vmatprep.mubr.msk.bf16.mxu1 %vm3947_vm9, %v4911_v62 }
 0x908   :  { %9489 = vmatmul.mubr.msk.bf16.vlgmr.msra.gmra.mrb[156].mxu1 %vm3947_vm9, %v4914_v43 }
 0x909   :  { %9496 = vmatprep.mubr.msk.bf16.mxu1 %vm3947_vm9, %v10840_v30 }
 0x9cb   :  { %v9172_v8 = vpop.f32.mrb[148].mxu1 }
 0x9cc   :  { %v9173_v58 = vpop.f32.mrb[149].mxu1 }
 0x9cd   :  { %v9174_v57 = vadd.f32 %v9173_v58, %v9172_v8  ;;  %v9175_v14 = vpop.f32.mrb[150].mxu1 }
 0x9ce   :  { %v9176_v26 = vpop.f32.mrb[151].mxu1 }
 0x9cf   :  { %v9177_v1 = vadd.f32 %v9176_v26, %v9175_v14  ;;  %v10841_v26 = vld [vmem:[%s14459_s6 + $0x8] sm:$0xff]  }
 0x9d3   :  { %v9178_v10 = vpop.f32.mrb[152].mxu1 }
 0x9d4   :  { %v9179_v6 = vpop.f32.mrb[153].mxu1 }
 0x9d5   :  { %v9180_v62 = vadd.f32 %v9179_v6, %v9178_v10  ;;  %v9181_v11 = vpop.f32.mrb[154].mxu1 }
 0x9d6   :  { %v9182_v37 = vpop.f32.mrb[155].mxu1 }
 0x9d7   :  { %v9183_v59 = vadd.f32 %v9182_v37, %v9181_v11 }
 0x9db   :  { %v9490_v43 = vpop.f32.mrb[156].mxu1 }
 0x9dc   :  { %v5157_v13 = vadd.f32 %v9490_v43, %v9180_v62  ;;  %v5148_v2 = vpop.f32.mrb[157].mxu1 }
 0x9dd   :  { %v5149_v45 = vadd.f32 %v9174_v57, %v5148_v2  ;;  %v9491_v4 = vpop.f32.mrb[158].mxu1  ;;  %v13395_v2 = vld [vmem:[%s14460_s7] sm:$0xff]  }
 0x9de   :  { %v5165_v44 = vmul.f32 %v5157_v13, %v4428_v23  ;;  %v5160_v39 = vadd.f32 %v9491_v4, %v9183_v59  ;;  %v5151_v22 = vpop.f32.mrb[159].mxu1  ;;  %v13422_v4 = vld [vmem:[%s14460_s7 + $0x18] sm:$0xff]  }
 0x9df   :  { %v5163_v36 = vmul.f32 %v5149_v45, %v4428_v23  ;;  %v5152_v51 = vadd.f32 %v9177_v1, %v5151_v22  ;;  %v11274_v1 = vmov 0.0   ;;  %v13413_v45 = vld [vmem:[%s14460_s7 + $0x10] sm:$0xff]   ;;  %v10848_v22 = vld [vmem:[%s14461_s8] sm:$0xff]  }
 0x9e0   :  { %v5169_v27 = vadd.f32 %v5165_v44, %v4429_v49  ;;  %v5166_v56 = vmul.f32 %v5160_v39, %v4428_v23  ;;  %v13431_v44 = vld [vmem:[%s14460_s7 + $0x20] ss:$0 sps:$4 sm:$0xff]  }
 0x9e1   :  { %v5167_v35 = vadd.f32 %v5163_v36, %v4429_v49  ;;  %v5164_v53 = vmul.f32 %v5152_v51, %v4428_v23  ;;  %v10847_v39 = vld [vmem:[%s14461_s8 + $0x40] sm:$0xff]   ;;  %v10849_v36 = vld [vmem:[%s14461_s8 + $0x48] sm:$0xff]  }
 0x9e2   :  { %v5177_v52 = vmul.f32 0.044715, %v5169_v27  ;;  %v5170_v60 = vadd.f32 %v5166_v56, %v4429_v49  ;;  %v5173_v48 = vmul.f32 0.5, %v5169_v27  ;;  %v10850_v51 = vld [vmem:[%s14461_s8 + $0x8] sm:$0xff]   ;;  %v10852_v56 = vld [vmem:[%s14461_s8 + $0x10] sm:$0xff]  }
 0x9e3   :  { %v5175_v17 = vmul.f32 0.044715, %v5167_v35  ;;  %v5168_v24 = vadd.f32 %v5164_v53, %v4429_v49  ;;  %v5171_v55 = vmul.f32 0.5, %v5167_v35  ;;  %v13404_v49 = vld [vmem:[%s14460_s7 + $0x8] sm:$0xff]   ;;  %v10854_v53 = vld [vmem:[%s14461_s8 + $0x18] sm:$0xff]  }
 0x9e4   :  { %v5178_v63 = vmul.f32 0.044715, %v5170_v60  ;;  %v5181_v19 = vmul.f32 %v5177_v52, %v5169_v27  ;;  %v5174_v54 = vmul.f32 0.5, %v5170_v60  ;;  %v10855_v52 = vld [vmem:[%s14461_s8 + $0x60] sm:$0xff]  }
 0x9e5   :  { %v5176_v12 = vmul.f32 0.044715, %v5168_v24  ;;  %v5179_v15 = vmul.f32 %v5175_v17, %v5167_v35  ;;  %v5172_v31 = vmul.f32 0.5, %v5168_v24  ;;  %v10857_v17 = vld [vmem:[%s14461_s8 + $0x68] sm:$0xff]  }
 0x9e6   :  { %v5182_v5 = vmul.f32 %v5178_v63, %v5170_v60  ;;  %v5185_v20 = vmul.f32 %v5181_v19, %v5169_v27  ;;  %v10859_v63 = vld [vmem:[%s14461_s8 + $0x70] sm:$0xff]  }
 0x9e7   :  { %v5180_v34 = vmul.f32 %v5176_v12, %v5168_v24  ;;  %v5183_v18 = vmul.f32 %v5179_v15, %v5167_v35  ;;  %v10860_v19 = vld [vmem:[%s14461_s8 + $0x30] sm:$0xff]   ;;  %v10861_v12 = vld [vmem:[%s14461_s8 + $0x78] sm:$0xff]  }
 0x9e8   :  { %v5186_v25 = vmul.f32 %v5182_v5, %v5170_v60  ;;  %v5189_v46 = vadd.f32 %v5185_v20, %v5169_v27  ;;  %v10851_v27 = vld [vmem:[%s14461_s8 + $0x50] sm:$0xff]   ;;  %v10862_v5 = vld [vmem:[%s14461_s8 + $0x38] sm:$0xff]  }
 0x9e9   :  { %v5184_v7 = vmul.f32 %v5180_v34, %v5168_v24  ;;  %v5187_v41 = vadd.f32 %v5183_v18, %v5167_v35  ;;  %v10853_v35 = vld [vmem:[%s14461_s8 + $0x58] sm:$0xff]  }
 0x9ea   :  { %v5190_v61 = vadd.f32 %v5186_v25, %v5170_v60  ;;  %v5193_v9 = vmul.f32 0.7978846, %v5189_v46  ;;  %v10856_v60 = vld [vmem:[%s14461_s8 + $0x20] sm:$0xff]  }
 0x9eb   :  { %v5188_v3 = vadd.f32 %v5184_v7, %v5168_v24  ;;  %v5191_v47 = vmul.f32 0.7978846, %v5187_v41  ;;  %v10858_v24 = vld [vmem:[%s14461_s8 + $0x28] sm:$0xff]   ;;  %v10863_v25 = vld [vmem:[%s14461_s8 + $0xc0] sm:$0xff]  }
 0x9ec   :  { %v5194_v16 = vmul.f32 0.7978846, %v5190_v61  ;;  %11233 = vtanh.f32 %v5193_v9 }
 0x9ed   :  { %v5192_v28 = vmul.f32 0.7978846, %v5188_v3  ;;  %11235 = vtanh.f32 %v5191_v47 }
 0x9ee   :  { %11237 = vtanh.f32 %v5194_v16 }
 0x9ef   :  { %11239 = vtanh.f32 %v5192_v28 }
 0x9f6   :  { %v11234_v40 = vpop.eup %11233 }
 0x9f7   :  { %v11236_v50 = vpop.eup %11235  ;;  %v5201_v21 = vadd.f32 1.0, %v11234_v40 }
 0x9f8   :  { %v11238_v38 = vpop.eup %11237  ;;  %v5199_v33 = vadd.f32 1.0, %v11236_v50 }
 0x9f9   :  { %v11240_v42 = vpop.eup %11239  ;;  %v5202_v29 = vadd.f32 1.0, %v11238_v38  ;;  %v5205_v0 = vmul.f32 %v5201_v21, %v5173_v48 }
 0x9fa   :  { %v5200_v32 = vadd.f32 1.0, %v11240_v42  ;;  %v5203_v8 = vmul.f32 %v5199_v33, %v5171_v55 }
 0x9fb   :  { %v5206_v30 = vmul.f32 %v5202_v29, %v5174_v54 }
 0x9fc   :  { %v5204_v58 = vmul.f32 %v5200_v32, %v5172_v31 }
 0x9fd   :  { %v5208_v57 = vpack.c.bf16 %v5206_v30, %v5205_v0 }
 0x9fe   :  { %v5207_v14 = vpack.c.bf16 %v5204_v58, %v5203_v8 }
 0xa00   :  { %9492 = vmatprep.subr.bf16.mxu1 %v5207_v14 }
 0xa01   :  { %9493 = vmatpush3.bf16.msra.mxu1 %v5207_v14  ;;  %v10865_v14 = vld [vmem:[%s14461_s8 + $0xc8] sm:$0xff]  }
 0xa02   :  { %9494 = vmatprep.subr.bf16.mxu1 %v5208_v57 }
 0xa05   :  { %9495 = vmatpush3.bf16.msra.mxu1 %v5208_v57  ;;  %v10864_v57 = vld [vmem:[%s14461_s8 + $0x80] sm:$0xff]  }
 0xa06   :  { %9500 = vmatprep.subr.bf16.mxu1 %v11274_v1 }
 0xa08   :  { %9497 = vmatmul.mubr.msk.bf16.vlgmr.msra.gmra.mrb[160].mxu1 %vm3947_vm9, %v10841_v26  ;;  %v10866_v26 = vld [vmem:[%s14461_s8 + $0x88] sm:$0xff]  }
 0xa09   :  { %9502 = vmatprep.mubr.msk.bf16.mxu1 %vm11275_vm12, %v11274_v1 }
 0xadb   :  { %v9498_v10 = vpop.f32.mrb[160].mxu1 }
 0xadc   :  { %v5263_v6 = vpop.f32.mrb[161].mxu1 }
 0xadd   :  { %v9499_v62 = vpop.f32.mrb[162].mxu1 }
 0xade   :  { %v5279_v11 = vmax.f32 %v9498_v10, %v9499_v62  ;;  %v5266_v37 = vpop.f32.mrb[163].mxu1  ;;  %v10867_v10 = vld [vmem:[%s14461_s8 + $0xd0] sm:$0xff]   ;;  %v10869_v62 = vld [vmem:[%s14461_s8 + $0xd8] sm:$0xff]  }
 0xadf   :  { %v5278_v59 = vmax.f32 %v5263_v6, %v5266_v37  ;;  %v10868_v6 = vld [vmem:[%s14461_s8 + $0x90] sm:$0xff]   ;;  %v10870_v37 = vld [vmem:[%s14461_s8 + $0x98] sm:$0xff]  }
 0xae1   :  { %v5280_v23 = vmax.f32 %v5278_v59, %v5279_v11 }
 0xae3   :  { %v5281_v43 = vpack.c.bf16 %v5280_v23, %v5280_v23  ;;  %v10871_v23 = vld [vmem:[%s14461_s8 + $0xe0] sm:$0xff]  }
 0xae5   :  { %v5334_v13 = vsel %vm5332_vm13, %v5281_v43, 0 }
 0xae6   :  { %9501 = vmatpush3.bf16.msra.mxu1 %v5334_v13 }
 0xae7   :  { %9198 = vmatprep.subr.bf16.mxu1 %v10847_v39  ;;  %v10872_v39 = vld [vmem:[%s14461_s8 + $0xa0] sm:$0xff]  }
 0xae9   :  { %9503 = vmatmul.mubr.msk.bf16.vlgmr.msra.gmra.mrb[164].mxu1 %vm5316_vm14, %v13395_v2 }
 0xaea   :  { %9506 = vmatprep.mubr.msk.bf16.mxu1 %vm11275_vm12, %v11274_v1  ;;  %9199 = vmatpush3.bf16.msra.mxu1 %v10848_v22  ;;  %v10873_v22 = vld [vmem:[%s14461_s8 + $0xe8] sm:$0xff]  }
 0xaeb   :  { %9200 = vmatprep.subr.bf16.mxu1 %v10849_v36  ;;  %v10874_v36 = vld [vmem:[%s14461_s8 + $0xa8] sm:$0xff]  }
 0xaee   :  { %9201 = vmatpush3.bf16.msra.mxu1 %v10850_v51  ;;  %v10875_v51 = vld [vmem:[%s14461_s8 + $0xf0] sm:$0xff]  }
 0xaef   :  { %9202 = vmatprep.subr.bf16.mxu1 %v10851_v27  ;;  %v10876_v27 = vld [vmem:[%s14461_s8 + $0xb0] sm:$0xff]  }
 0xaf1   :  { %9507 = vmatmul.mubr.msk.bf16.gmra.mrb[168].mxu1 %vm5316_vm14, %v13404_v49 }
 0xaf2   :  { %9510 = vmatprep.mubr.msk.bf16.mxu1 %vm11275_vm12, %v11274_v1  ;;  %9203 = vmatpush3.bf16.msra.mxu1 %v10852_v56  ;;  %v10877_v56 = vld [vmem:[%s14461_s8 + $0xf8] sm:$0xff]  }
 0xaf3   :  { %9204 = vmatprep.subr.bf16.mxu1 %v10853_v35 }
 0xaf6   :  { %9205 = vmatpush3.bf16.msra.mxu1 %v10854_v53  ;;  %v10878_v53 = vld [vmem:[%s14461_s8 + $0xb8] sm:$0xff]  }
 0xaf7   :  { %9206 = vmatprep.subr.bf16.mxu1 %v10855_v52 }
 0xaf9   :  { %9511 = vmatmul.mubr.msk.bf16.gmra.mrb[172].mxu1 %vm5316_vm14, %v13413_v45 }
 0xafa   :  { %9514 = vmatprep.mubr.msk.bf16.mxu1 %vm11275_vm12, %v11274_v1  ;;  %9207 = vmatpush3.bf16.msra.mxu1 %v10856_v60  ;;  %v10879_v60 = vld [vmem:[%s14461_s8 + $0x100] sm:$0xff]  }
 0xafb   :  { %9208 = vmatprep.subr.bf16.mxu1 %v10857_v17 }
 0xafe   :  { %9209 = vmatpush3.bf16.msra.mxu1 %v10858_v24  ;;  %v10880_v24 = vld [vmem:[%s14461_s8 + $0x108] sm:$0xff]  }
 0xaff   :  { %9210 = vmatprep.subr.bf16.mxu1 %v10859_v63  ;;  %v10881_v63 = vld [vmem:[%s14461_s8 + $0x110] sm:$0xff]  }
 0xb01   :  { %9515 = vmatmul.mubr.msk.bf16.gmra.mrb[176].mxu1 %vm5316_vm14, %v13422_v4 }
 0xb02   :  { %9518 = vmatprep.mubr.msk.bf16.mxu1 %vm11275_vm12, %v11274_v1  ;;  %9211 = vmatpush3.bf16.msra.mxu1 %v10860_v19  ;;  %v10882_v19 = vld [vmem:[%s14461_s8 + $0x118] sm:$0xff]  }
 0xb03   :  { %9212 = vmatprep.subr.bf16.mxu1 %v10861_v12 }
 0xb06   :  { %9213 = vmatpush3.bf16.msra.mxu1 %v10862_v5 }
 0xb07   :  { %9220 = vmatprep.subr.bf16.mxu1 %v10863_v25 }
 0xb09   :  { %9519 = vmatmul.mubr.msk.bf16.gmra.mrb[180].mxu1 %vm5316_vm14, %v13431_v44 }
 0xbbc   :  { %v5370_v15 = vpop.f32.mrb[164].mxu1 }
 0xbbd   :  { %v9504_v20 = vpop.f32.mrb[165].mxu1 }
 0xbbe   :  { %v5373_v34 = vpop.f32.mrb[166].mxu1 }
 0xbbf   :  { %v9505_v18 = vpop.f32.mrb[167].mxu1 }
 0xbc4   :  { %v5378_v46 = vpop.f32.mrb[168].mxu1 }
 0xbc5   :  { %v9508_v7 = vpop.f32.mrb[169].mxu1 }
 0xbc6   :  { %v5381_v41 = vpop.f32.mrb[170].mxu1 }
 0xbc7   :  { %v10320_v61 = vpack.i.bf16 %v5373_v34, %v5381_v41  ;;  %v9509_v9 = vpop.f32.mrb[171].mxu1 }
 0xbc9   :  { %10321 = vrot.lane.b32.xlu0 %v10320_v61, %s11272_s1 }
 0xbcc   :  { %v5386_v3 = vpop.f32.mrb[172].mxu1 }
 0xbcd   :  { %v9512_v47 = vpop.f32.mrb[173].mxu1 }
 0xbce   :  { %v5389_v16 = vpop.f32.mrb[174].mxu1 }
 0xbcf   :  { %v9513_v28 = vpop.f32.mrb[175].mxu1 }
 0xbd4   :  { %v5394_v40 = vpop.f32.mrb[176].mxu1 }
 0xbd5   :  { %v9516_v50 = vpop.f32.mrb[177].mxu1 }
 0xbd6   :  { %v5397_v21 = vpop.f32.mrb[178].mxu1 }
 0xbd7   :  { %v10325_v38 = vpack.i.bf16 %v5389_v16, %v5397_v21  ;;  %v9517_v33 = vpop.f32.mrb[179].mxu1 }
 0xbd9   :  { %10326 = vrot.lane.b32.xlu1 %v10325_v38, %s11272_s1 }
 0xbdc   :  { %v13488_v42 = vpop.f32.mrb[180].mxu1 }
 0xbdd   :  { %v9520_v48 = vpop.f32.mrb[181].mxu1  ;;  %v5432_v12 = vpack.c.bf16 %v13488_v42, %v13488_v42 }
 0xbde   :  { %v5405_v54 = vpop.f32.mrb[182].mxu1 }
 0xbdf   :  { %v9521_v29 = vpop.f32.mrb[183].mxu1 }
 0xc3b   :  { %v10322_v55 = vpop.permute.xlu0 %10321 }
 0xc3c   :  { %v10324_v31 = vunpack.i.h.bf16 %v10322_v55  ;;  %v10323_v32 = vunpack.i.l.bf16 %v10322_v55 }
 0xc3e   :  { %v5424_v0 = vsel %vm4887_vm10, %v5370_v15, %v10324_v31  ;;  %v5425_v30 = vsel %vm4887_vm10, %v5378_v46, %v10323_v32 }
 0xc3f   :  { %v5428_v8 = vpack.c.bf16 %v5424_v0, %v5424_v0  ;;  %v5429_v58 = vpack.c.bf16 %v5425_v30, %v5425_v30 }
 0xc41   :  { %5756 = vmatprep.mubr.bf16.mxu1 %v5429_v58  ;;  %v10883_v58 = vld [vmem:[%s14462_s9 + $0x40] sm:$0xff]  }
 0xc42   :  { %5757 = vmatmul.mubr.bf16.vlgmr.msra.gmra.mrb[184].mxu1 %v5428_v8 }
 0xc43   :  { %9221 = vmatpush3.bf16.msra.mxu1 %v10864_v57 }
 0xc44   :  { %9222 = vmatprep.subr.bf16.mxu1 %v10865_v14  ;;  %v10884_v14 = vld [vmem:[%s14462_s9] sm:$0xff]  }
 0xc47   :  { %9223 = vmatpush3.bf16.msra.mxu1 %v10866_v26  ;;  %v10885_v26 = vld [vmem:[%s14462_s9 + $0x48] sm:$0xff]  }
 0xc48   :  { %9224 = vmatprep.subr.bf16.mxu1 %v10867_v10  ;;  %v10886_v10 = vld [vmem:[%s14462_s9 + $0x8] sm:$0xff]  }
 0xc4b   :  { %9225 = vmatpush3.bf16.msra.mxu1 %v10868_v6  ;;  %v10327_v11 = vpop.permute.xlu1 %10326  ;;  %v10887_v6 = vld [vmem:[%s14462_s9 + $0x50] sm:$0xff]  }
 0xc4c   :  { %v10328_v59 = vunpack.i.l.bf16 %v10327_v11  ;;  %9226 = vmatprep.subr.bf16.mxu1 %v10869_v62  ;;  %v10329_v35 = vunpack.i.h.bf16 %v10327_v11  ;;  %v10888_v62 = vld [vmem:[%s14462_s9 + $0x10] sm:$0xff]   ;;  %v10890_v11 = vld [vmem:[%s14462_s9 + $0x18] sm:$0xff]  }
 0xc4e   :  { %v5427_v43 = vsel %vm4887_vm10, %v5394_v40, %v10328_v59  ;;  %v5426_v52 = vsel %vm4887_vm10, %v5386_v3, %v10329_v35  ;;  %v5282_v3 = vld [vmem:[%s14456_s15 + $0x4] ss:$0 sm:$0xff]  ;;  %v5283_v40 = vld [vmem:[%s14456_s15 + $0x5] ss:$0 sm:$0xff] }
 0xc4f   :  { %9227 = vmatpush3.bf16.msra.mxu1 %v10870_v37  ;;  %v5431_v13 = vpack.c.bf16 %v5427_v43, %v5427_v43  ;;  %v5430_v17 = vpack.c.bf16 %v5426_v52, %v5426_v52  ;;  %v10891_v37 = vld [vmem:[%s14462_s9 + $0x60] sm:$0xff]   ;;  %v10895_v43 = vld [vmem:[%s14462_s9 + $0x70] sm:$0xff]   ;;  %v10902_v52 = vld [vmem:[%s14462_s9 + $0x88] sm:$0xff]  }
 0xc50   :  { %9228 = vmatprep.subr.bf16.mxu1 %v10871_v23  ;;  %v10892_v59 = vld [vmem:[%s14462_s9 + $0x20] sm:$0xff]   ;;  %v10894_v23 = vld [vmem:[%s14462_s9 + $0x28] sm:$0xff]  }
 0xc51   :  { %5796 = vmatprep.mubr.bf16.mxu1 %v5431_v13  ;;  %v10896_v13 = vld [vmem:[%s14462_s9 + $0x30] sm:$0xff]  }
 0xc53   :  { %9229 = vmatpush3.bf16.msra.mxu1 %v10872_v39  ;;  %v10898_v39 = vld [vmem:[%s14462_s9 + $0x38] sm:$0xff]  }
 0xc54   :  { %9230 = vmatprep.subr.bf16.mxu1 %v10873_v22 }
 0xc57   :  { %9231 = vmatpush3.bf16.msra.mxu1 %v10874_v36 }
 0xc58   :  { %9232 = vmatprep.subr.bf16.mxu1 %v10875_v51 }
 0xc5b   :  { %9233 = vmatpush3.bf16.msra.mxu1 %v10876_v27 }
 0xc5c   :  { %9234 = vmatprep.subr.bf16.mxu1 %v10877_v56 }
 0xc5f   :  { %9235 = vmatpush3.bf16.msra.mxu1 %v10878_v53  ;;  %v10901_v53 = vld [vmem:[%s14462_s9 + $0xc8] sm:$0xff]  }
 0xc60   :  { %9522 = vmatprep.subr.bf16.mxu1 %v11274_v1 }
 0xc62   :  { %5797 = vmatmul.mubr.bf16.vlgmr.msra.gmra.mrb[188].mxu1 %v5430_v17 }
 0xc63   :  { %9523 = vmatpush3.bf16.msra.mxu1 %v10879_v60  ;;  %9530 = vmatprep.mubr.msk.bf16.mxu1 %vm11275_vm12, %v11274_v1  ;;  %v10903_v60 = vld [vmem:[%s14462_s9 + $0xd0] sm:$0xff]  }
 0xc64   :  { %9524 = vmatprep.subr.bf16.mxu1 %v11274_v1 }
 0xc67   :  { %9525 = vmatpush3.bf16.msra.mxu1 %v10880_v24 }
 0xc68   :  { %9526 = vmatprep.subr.bf16.mxu1 %v11274_v1 }
 0xc6b   :  { %9527 = vmatpush3.bf16.msra.mxu1 %v10881_v63 }
 0xc6c   :  { %9528 = vmatprep.subr.bf16.mxu1 %v11274_v1 }
 0xc6f   :  { %9529 = vmatpush3.bf16.msra.mxu1 %v10882_v19  ;;  %v10904_v19 = vld [vmem:[%s14462_s9 + $0x90] sm:$0xff]  }
 0xc70   :  { %9534 = vmatprep.subr.bf16.mxu1 %v11274_v1 }
 0xc72   :  { %9531 = vmatmul.mubr.msk.bf16.vlgmr.msra.gmra.mrb[192].mxu1 %vm4887_vm10, %v5432_v12 }
 0xc73   :  { %9536 = vmatprep.mubr.msk.bf16.mxu1 %vm11275_vm12, %v11274_v1 }
 0xd15   :  { %v9214_v15 = vpop.f32.mrb[184].mxu1 }
 0xd16   :  { %v9215_v5 = vpop.f32.mrb[185].mxu1 }
 0xd17   :  { %v9216_v20 = vadd.f32 %v9215_v5, %v9214_v15  ;;  %v9217_v34 = vpop.f32.mrb[186].mxu1  ;;  %v10905_v5 = vld [vmem:[%s14462_s9 + $0xd8] sm:$0xff]  }
 0xd18   :  { %v9218_v18 = vpop.f32.mrb[187].mxu1  ;;  %v10907_v34 = vld [vmem:[%s14462_s9 + $0xe0] sm:$0xff]  }
 0xd35   :  { %v9236_v25 = vpop.f32.mrb[188].mxu1 }
 0xd36   :  { %v9237_v46 = vpop.f32.mrb[189].mxu1 }
 0xd37   :  { %v9238_v7 = vadd.f32 %v9237_v46, %v9236_v25  ;;  %v9239_v41 = vpop.f32.mrb[190].mxu1 }
 0xd38   :  { %v9240_v61 = vpop.f32.mrb[191].mxu1 }
 0xd39   :  { %v5799_v9 = vadd.f32 %v9238_v7, %v9216_v20  ;;  %v10906_v20 = vld [vmem:[%s14462_s9 + $0x98] sm:$0xff]   ;;  %v10908_v7 = vld [vmem:[%s14462_s9 + $0xa0] sm:$0xff]   ;;  %v10909_v61 = vld [vmem:[%s14462_s9 + $0xe8] sm:$0xff]  }
 0xd45   :  { %v5838_v47 = vpop.f32.mrb[192].mxu1 }
 0xd46   :  { %v5839_v16 = vadd.f32 %v5838_v47, %v5799_v9  ;;  %v9532_v28 = vpop.f32.mrb[193].mxu1  ;;  %v10910_v9 = vld [vmem:[%s14462_s9 + $0xa8] sm:$0xff]  }
 0xd47   :  { %v5841_v50 = vpop.f32.mrb[194].mxu1 }
 0xd48   :  { %v5844_v21 = vmul.f32 %v5839_v16, %v5282_v3  ;;  %v9533_v38 = vpop.f32.mrb[195].mxu1  ;;  %v10911_v3 = vld [vmem:[%s14462_s9 + $0xf0] sm:$0xff]  }
 0xd49   :  { %v10914_v38 = vld [vmem:[%s14462_s9 + $0xb8] sm:$0xff]  }
 0xd4a   :  { %v5845_v33 = vadd.f32 %v5844_v21, %v5283_v40  ;;  %v10912_v40 = vld [vmem:[%s14462_s9 + $0xb0] sm:$0xff]   ;;  %v10913_v21 = vld [vmem:[%s14462_s9 + $0xf8] sm:$0xff]  }
 0xd4c   :  { %v5847_v42 = vmul.f32 0.044715, %v5845_v33  ;;  %v5846_v32 = vmul.f32 0.5, %v5845_v33 }
 0xd4e   :  { %v5848_v48 = vmul.f32 %v5847_v42, %v5845_v33 }
 0xd50   :  { %v5849_v54 = vmul.f32 %v5848_v48, %v5845_v33 }
 0xd52   :  { %v5850_v29 = vadd.f32 %v5849_v54, %v5845_v33  ;;  %v10915_v33 = vld [vmem:[%s14462_s9 + $0x140] sm:$0xff]  }
 0xd54   :  { %v5851_v55 = vmul.f32 0.7978846, %v5850_v29  ;;  %v10916_v29 = vld [vmem:[%s14462_s9 + $0x100] sm:$0xff]  }
 0xd56   :  { %11241 = vtanh.f32 %v5851_v55 }
 0xd60   :  { %v11242_v31 = vpop.eup %11241 }
 0xd61   :  { %v5853_v0 = vadd.f32 1.0, %v11242_v31 }
 0xd63   :  { %v5854_v30 = vmul.f32 %v5853_v0, %v5846_v32  ;;  %v10917_v0 = vld [vmem:[%s14462_s9 + $0x148] sm:$0xff]  }
 0xd65   :  { %v5855_v8 = vpack.c.bf16 %v5854_v30, %v5854_v30  ;;  %v10918_v30 = vld [vmem:[%s14462_s9 + $0x108] sm:$0xff]  }
 0xd67   :  { %v5859_v57 = vsel %vm5332_vm13, %v5855_v8, 0  ;;  %v10919_v8 = vld [vmem:[%s14462_s9 + $0x150] sm:$0xff]  }
 0xd68   :  { %9535 = vmatpush3.bf16.msra.mxu1 %v5859_v57  ;;  %v10921_v57 = vld [vmem:[%s14462_s9 + $0x158] sm:$0xff]  }
 0xd69   :  { %9253 = vmatprep.subr.bf16.mxu1 %v10883_v58  ;;  %v10920_v58 = vld [vmem:[%s14462_s9 + $0x110] sm:$0xff]  }
 0xd6b   :  { %9537 = vmatmul.mubr.msk.bf16.vlgmr.msra.gmra.mrb[196].mxu1 %vm5316_vm14, %v13395_v2  ;;  %v10889_v2 = vld [vmem:[%s14462_s9 + $0x58] sm:$0xff]  }
 0xd6c   :  { %9540 = vmatprep.mubr.msk.bf16.mxu1 %vm11275_vm12, %v11274_v1  ;;  %9254 = vmatpush3.bf16.msra.mxu1 %v10884_v14  ;;  %v10922_v14 = vld [vmem:[%s14462_s9 + $0x118] sm:$0xff]  }
 0xd6d   :  { %9255 = vmatprep.subr.bf16.mxu1 %v10885_v26  ;;  %v10923_v26 = vld [vmem:[%s14462_s9 + $0x160] sm:$0xff]  }
 0xd70   :  { %9256 = vmatpush3.bf16.msra.mxu1 %v10886_v10  ;;  %v10924_v10 = vld [vmem:[%s14462_s9 + $0x120] sm:$0xff]  }
 0xd71   :  { %9257 = vmatprep.subr.bf16.mxu1 %v10887_v6  ;;  %v10925_v6 = vld [vmem:[%s14462_s9 + $0x168] sm:$0xff]  }
 0xd73   :  { %9541 = vmatmul.mubr.msk.bf16.gmra.mrb[200].mxu1 %vm5316_vm14, %v13404_v49  ;;  %v10893_v49 = vld [vmem:[%s14462_s9 + $0x68] sm:$0xff]  }
 0xd74   :  { %9544 = vmatprep.mubr.msk.bf16.mxu1 %vm11275_vm12, %v11274_v1  ;;  %9258 = vmatpush3.bf16.msra.mxu1 %v10888_v62  ;;  %v10926_v62 = vld [vmem:[%s14462_s9 + $0x128] sm:$0xff]  }
 0xd75   :  { %9259 = vmatprep.subr.bf16.mxu1 %v10889_v2  ;;  %v10927_v2 = vld [vmem:[%s14462_s9 + $0x170] sm:$0xff]  }
 0xd78   :  { %9260 = vmatpush3.bf16.msra.mxu1 %v10890_v11  ;;  %v10928_v11 = vld [vmem:[%s14462_s9 + $0x130] sm:$0xff]  }
 0xd79   :  { %9261 = vmatprep.subr.bf16.mxu1 %v10891_v37  ;;  %v10929_v37 = vld [vmem:[%s14462_s9 + $0x178] sm:$0xff]  }
 0xd7b   :  { %9545 = vmatmul.mubr.msk.bf16.gmra.mrb[204].mxu1 %vm5316_vm14, %v13413_v45  ;;  %v10897_v45 = vld [vmem:[%s14462_s9 + $0x78] sm:$0xff]  }
 0xd7c   :  { %9548 = vmatprep.mubr.msk.bf16.mxu1 %vm11275_vm12, %v11274_v1  ;;  %9262 = vmatpush3.bf16.msra.mxu1 %v10892_v59  ;;  %v10930_v59 = vld [vmem:[%s14462_s9 + $0x138] sm:$0xff]  }
 0xd7d   :  { %9263 = vmatprep.subr.bf16.mxu1 %v10893_v49  ;;  %v10931_v49 = vld [vmem:[%s14462_s9 + $0x1c0] sm:$0xff]  }
 0xd80   :  { %9264 = vmatpush3.bf16.msra.mxu1 %v10894_v23  ;;  %v10932_v23 = vld [vmem:[%s14462_s9 + $0x180] sm:$0xff]  }
 0xd81   :  { %9265 = vmatprep.subr.bf16.mxu1 %v10895_v43 }
 0xd83   :  { %9549 = vmatmul.mubr.msk.bf16.gmra.mrb[208].mxu1 %vm5316_vm14, %v13422_v4  ;;  %v10899_v4 = vld [vmem:[%s14462_s9 + $0xc0] sm:$0xff]  }
 0xd84   :  { %9552 = vmatprep.mubr.msk.bf16.mxu1 %vm11275_vm12, %v11274_v1  ;;  %9266 = vmatpush3.bf16.msra.mxu1 %v10896_v13 }
 0xd85   :  { %9267 = vmatprep.subr.bf16.mxu1 %v10897_v45  ;;  %v10933_v45 = vld [vmem:[%s14462_s9 + $0x1c8] sm:$0xff]  }
 0xd88   :  { %9268 = vmatpush3.bf16.msra.mxu1 %v10898_v39  ;;  %v10934_v39 = vld [vmem:[%s14462_s9 + $0x188] sm:$0xff]  }
 0xd89   :  { %9275 = vmatprep.subr.bf16.mxu1 %v10899_v4  ;;  %v10935_v4 = vld [vmem:[%s14462_s9 + $0x1d0] sm:$0xff]  }
 0xd8b   :  { %9553 = vmatmul.mubr.msk.bf16.gmra.mrb[212].mxu1 %vm5316_vm14, %v13431_v44  ;;  %v10900_v44 = vld [vmem:[%s14462_s9 + $0x80] sm:$0xff]  }
 0xe3e   :  { %v5895_v22 = vpop.f32.mrb[196].mxu1 }
 0xe3f   :  { %v9538_v36 = vpop.f32.mrb[197].mxu1  ;;  %v5933_v35 = vpack.c.bf16 %v5895_v22, %v5895_v22  ;;  %v10936_v22 = vld [vmem:[%s14462_s9 + $0x190] sm:$0xff]  }
 0xe40   :  { %v5898_v51 = vpop.f32.mrb[198].mxu1  ;;  %v10937_v36 = vld [vmem:[%s14462_s9 + $0x1d8] sm:$0xff]  }
 0xe41   :  { %v5934_v27 = vpack.c.bf16 %v5898_v51, %v5898_v51  ;;  %v9539_v56 = vpop.f32.mrb[199].mxu1  ;;  %v10938_v51 = vld [vmem:[%s14462_s9 + $0x198] sm:$0xff]  }
 0xe42   :  { %v10941_v56 = vld [vmem:[%s14462_s9 + $0x1e8] sm:$0xff]  }
 0xe43   :  { %6550 = vmatprep.mubr.bf16.mxu1 %v5934_v27  ;;  %v10939_v27 = vld [vmem:[%s14462_s9 + $0x1e0] sm:$0xff]  }
 0xe44   :  { %6551 = vmatmul.mubr.bf16.vlgmr.msra.gmra.mrb[216].mxu1 %v5933_v35  ;;  %v10942_v35 = vld [vmem:[%s14462_s9 + $0x1a8] sm:$0xff]  }
 0xe45   :  { %9276 = vmatpush3.bf16.msra.mxu1 %v10900_v44  ;;  %v10940_v44 = vld [vmem:[%s14462_s9 + $0x1a0] sm:$0xff]  }
 0xe46   :  { %9277 = vmatprep.subr.bf16.mxu1 %v10901_v53  ;;  %v5903_v17 = vpop.f32.mrb[200].mxu1  ;;  %v10943_v53 = vld [vmem:[%s14462_s9 + $0x1f0] sm:$0xff]  }
 0xe47   :  { %v9542_v24 = vpop.f32.mrb[201].mxu1  ;;  %v5935_v32 = vpack.c.bf16 %v5903_v17, %v5903_v17  ;;  %v10946_v17 = vld [vmem:[%s14462_s9 + $0x1b8] sm:$0xff]  }
 0xe48   :  { %v5906_v63 = vpop.f32.mrb[202].mxu1  ;;  %v10947_v24 = vld [vmem:[%s14462_s9 + $0x200] sm:$0xff]  }
 0xe49   :  { %9278 = vmatpush3.bf16.msra.mxu1 %v10902_v52  ;;  %v5936_v12 = vpack.c.bf16 %v5906_v63, %v5906_v63  ;;  %v9543_v15 = vpop.f32.mrb[203].mxu1  ;;  %v10944_v52 = vld [vmem:[%s14462_s9 + $0x1b0] sm:$0xff]  }
 0xe4a   :  { %9279 = vmatprep.subr.bf16.mxu1 %v10903_v60  ;;  %v10945_v60 = vld [vmem:[%s14462_s9 + $0x1f8] sm:$0xff]  }
 0xe4b   :  { %6590 = vmatprep.mubr.bf16.mxu1 %v5936_v12  ;;  %v10949_v12 = vld [vmem:[%s14462_s9 + $0x210] sm:$0xff]   ;;  %v10950_v15 = vld [vmem:[%s14462_s9 + $0x218] sm:$0xff]  }
 0xe4d   :  { %9280 = vmatpush3.bf16.msra.mxu1 %v10904_v19  ;;  %v10948_v19 = vld [vmem:[%s14462_s9 + $0x208] sm:$0xff]  }
 0xe4e   :  { %9281 = vmatprep.subr.bf16.mxu1 %v10905_v5  ;;  %v13663_v18 = vpop.f32.mrb[204].mxu1  ;;  %v10951_v5 = vld [vmem:[%s14462_s9 + $0x220] sm:$0xff]  }
 0xe4f   :  { %v9546_v25 = vpop.f32.mrb[205].mxu1  ;;  %v5937_v13 = vpack.c.bf16 %v13663_v18, %v13663_v18  ;;  %v10954_v18 = vld [vmem:[%s14462_s9 + $0x238] sm:$0xff]  }
 0xe50   :  { %v5914_v46 = vpop.f32.mrb[206].mxu1 }
 0xe51   :  { %9282 = vmatpush3.bf16.msra.mxu1 %v10906_v20  ;;  %v9547_v41 = vpop.f32.mrb[207].mxu1  ;;  %v5938_v55 = vpack.c.bf16 %v5914_v46, %v5914_v46  ;;  %v10952_v20 = vld [vmem:[%s14462_s9 + $0x228] sm:$0xff]  }
 0xe52   :  { %9283 = vmatprep.subr.bf16.mxu1 %v10907_v34  ;;  %v10953_v34 = vld [vmem:[%s14462_s9 + $0x230] sm:$0xff]  }
 0xe55   :  { %9284 = vmatpush3.bf16.msra.mxu1 %v10908_v7 }
 0xe56   :  { %9285 = vmatprep.subr.bf16.mxu1 %v10909_v61  ;;  %v13677_v47 = vpop.f32.mrb[208].mxu1 }
 0xe57   :  { %v9550_v16 = vpop.f32.mrb[209].mxu1  ;;  %v5939_v63 = vpack.c.bf16 %v13677_v47, %v13677_v47 }
 0xe58   :  { %v5922_v28 = vpop.f32.mrb[210].mxu1 }
 0xe59   :  { %9286 = vmatpush3.bf16.msra.mxu1 %v10910_v9  ;;  %v9551_v50 = vpop.f32.mrb[211].mxu1  ;;  %v5940_v43 = vpack.c.bf16 %v5922_v28, %v5922_v28 }
 0xe5a   :  { %9287 = vmatprep.subr.bf16.mxu1 %v10911_v3 }
 0xe5d   :  { %9288 = vmatpush3.bf16.msra.mxu1 %v10912_v40 }
 0xe5e   :  { %9289 = vmatprep.subr.bf16.mxu1 %v10913_v21  ;;  %v13691_v42 = vpop.f32.mrb[212].mxu1 }
 0xe5f   :  { %v9554_v48 = vpop.f32.mrb[213].mxu1  ;;  %v5941_v25 = vpack.c.bf16 %v13691_v42, %v13691_v42 }
 0xe60   :  { %v5930_v54 = vpop.f32.mrb[214].mxu1 }
 0xe61   :  { %9290 = vmatpush3.bf16.msra.mxu1 %v10914_v38  ;;  %v9555_v31 = vpop.f32.mrb[215].mxu1 }
 0xe62   :  { %9297 = vmatprep.subr.bf16.mxu1 %v10915_v33 }
 0xe64   :  { %6591 = vmatmul.mubr.bf16.vlgmr.msra.gmra.mrb[220].mxu1 %v5935_v32 }
 0xe65   :  { %9298 = vmatpush3.bf16.msra.mxu1 %v10916_v29  ;;  %6630 = vmatprep.mubr.bf16.mxu1 %v5938_v55 }
 0xe66   :  { %9299 = vmatprep.subr.bf16.mxu1 %v10917_v0 }
 0xe69   :  { %9300 = vmatpush3.bf16.msra.mxu1 %v10918_v30 }
 0xe6a   :  { %9301 = vmatprep.subr.bf16.mxu1 %v10919_v8  ;;  %v5856_v8 = vld [vmem:[%s14456_s15 + $0x6] ss:$0 sm:$0xff] }
 0xe6d   :  { %9302 = vmatpush3.bf16.msra.mxu1 %v10920_v58 }
 0xe6e   :  { %9303 = vmatprep.subr.bf16.mxu1 %v10921_v57 }
 0xe71   :  { %9304 = vmatpush3.bf16.msra.mxu1 %v10922_v14 }
 0xe72   :  { %9305 = vmatprep.subr.bf16.mxu1 %v10923_v26  ;;  %v5857_v26 = vld [vmem:[%s14456_s15 + $0x7] ss:$0 sm:$0xff] }
 0xe75   :  { %9306 = vmatpush3.bf16.msra.mxu1 %v10924_v10 }
 0xe76   :  { %9307 = vmatprep.subr.bf16.mxu1 %v10925_v6 }
 0xe79   :  { %9308 = vmatpush3.bf16.msra.mxu1 %v10926_v62 }
 0xe7a   :  { %9309 = vmatprep.subr.bf16.mxu1 %v10927_v2 }
 0xe7d   :  { %9310 = vmatpush3.bf16.msra.mxu1 %v10928_v11 }
 0xe7e   :  { %9311 = vmatprep.subr.bf16.mxu1 %v10929_v37 }
 0xe81   :  { %9312 = vmatpush3.bf16.msra.mxu1 %v10930_v59 }
 0xe82   :  { %9319 = vmatprep.subr.bf16.mxu1 %v10931_v49 }
 0xe84   :  { %6631 = vmatmul.mubr.bf16.vlgmr.msra.gmra.mrb[224].mxu1 %v5937_v13 }
 0xe85   :  { %9320 = vmatpush3.bf16.msra.mxu1 %v10932_v23  ;;  %6670 = vmatprep.mubr.bf16.mxu1 %v5940_v43 }
 0xe86   :  { %9321 = vmatprep.subr.bf16.mxu1 %v10933_v45 }
 0xe89   :  { %9322 = vmatpush3.bf16.msra.mxu1 %v10934_v39 }
 0xe8a   :  { %9323 = vmatprep.subr.bf16.mxu1 %v10935_v4 }
 0xe8d   :  { %9324 = vmatpush3.bf16.msra.mxu1 %v10936_v22  ;;  %v10957_v22 = vld [vmem:[%s14463_s10 + $0x4] ss:$8 sps:$4 sm:$0xff]  }
 0xe8e   :  { %9325 = vmatprep.subr.bf16.mxu1 %v10937_v36 }
 0xe91   :  { %9326 = vmatpush3.bf16.msra.mxu1 %v10938_v51  ;;  %v10955_v51 = vld [vmem:[%s14463_s10] ss:$8 sps:$4 sm:$0xff]  }
 0xe92   :  { %9327 = vmatprep.subr.bf16.mxu1 %v10939_v27  ;;  %v10960_v27 = vld [vmem:[%s14463_s10 + $0x14] ss:$8 sps:$4 sm:$0xff]  }
 0xe95   :  { %9328 = vmatpush3.bf16.msra.mxu1 %v10940_v44  ;;  %v11257_v44 = vld [vmem:[%s14460_s7] sm:$0xff]  }
 0xe96   :  { %9329 = vmatprep.subr.bf16.mxu1 %v10941_v56  ;;  %v10958_v56 = vld [vmem:[%s14463_s10 + $0x10] ss:$8 sps:$4 sm:$0xff]  }
 0xe99   :  { %9330 = vmatpush3.bf16.msra.mxu1 %v10942_v35  ;;  %v10963_v35 = vld [vmem:[%s14463_s10 + $0x24] ss:$8 sps:$4 sm:$0xff]  }
 0xe9a   :  { %9331 = vmatprep.subr.bf16.mxu1 %v10943_v53  ;;  %v10961_v53 = vld [vmem:[%s14463_s10 + $0x20] ss:$8 sps:$4 sm:$0xff]  }
 0xe9d   :  { %9332 = vmatpush3.bf16.msra.mxu1 %v10944_v52  ;;  %v10966_v52 = vld [vmem:[%s14463_s10 + $0x34] ss:$8 sps:$4 sm:$0xff]  }
 0xe9e   :  { %9333 = vmatprep.subr.bf16.mxu1 %v10945_v60  ;;  %v11258_v60 = vld [vmem:[%s14460_s7 + $0x8] sm:$0xff]  }
 0xea1   :  { %9334 = vmatpush3.bf16.msra.mxu1 %v10946_v17  ;;  %v10964_v17 = vld [vmem:[%s14463_s10 + $0x30] ss:$8 sps:$4 sm:$0xff]  }
 0xea2   :  { %9556 = vmatprep.subr.bf16.mxu1 %v11274_v1 }
 0xea4   :  { %6671 = vmatmul.mubr.bf16.vlgmr.msra.gmra.mrb[228].mxu1 %v5939_v63  ;;  %v10967_v63 = vld [vmem:[%s14463_s10 + $0x40] ss:$8 sps:$4 sm:$0xff]  }
 0xea5   :  { %9557 = vmatpush3.bf16.msra.mxu1 %v10947_v24  ;;  %9572 = vmatprep.mubr.msk.bf16.mxu1 %vm11275_vm12, %v11274_v1  ;;  %v10969_v24 = vld [vmem:[%s14463_s10 + $0x44] ss:$8 sps:$4 sm:$0xff]  }
 0xea6   :  { %9558 = vmatprep.subr.bf16.mxu1 %v11274_v1 }
 0xea9   :  { %9559 = vmatpush3.bf16.msra.mxu1 %v10948_v19  ;;  %v10972_v19 = vld [vmem:[%s14463_s10 + $0x54] ss:$8 sps:$4 sm:$0xff]  }
 0xeaa   :  { %9560 = vmatprep.subr.bf16.mxu1 %v11274_v1 }
 0xead   :  { %9561 = vmatpush3.bf16.msra.mxu1 %v10949_v12  ;;  %v11259_v12 = vld [vmem:[%s14460_s7 + $0x10] sm:$0xff]  }
 0xeae   :  { %9562 = vmatprep.subr.bf16.mxu1 %v11274_v1 }
 0xeb1   :  { %9563 = vmatpush3.bf16.msra.mxu1 %v10950_v15  ;;  %v10970_v15 = vld [vmem:[%s14463_s10 + $0x50] ss:$8 sps:$4 sm:$0xff]  }
 0xeb2   :  { %9564 = vmatprep.subr.bf16.mxu1 %v11274_v1 }
 0xeb5   :  { %9565 = vmatpush3.bf16.msra.mxu1 %v10951_v5  ;;  %v10975_v5 = vld [vmem:[%s14463_s10 + $0x64] ss:$8 sps:$4 sm:$0xff]  }
 0xeb6   :  { %9566 = vmatprep.subr.bf16.mxu1 %v11274_v1 }
 0xeb9   :  { %9567 = vmatpush3.bf16.msra.mxu1 %v10952_v20  ;;  %v10973_v20 = vld [vmem:[%s14463_s10 + $0x60] ss:$8 sps:$4 sm:$0xff]  }
 0xeba   :  { %9568 = vmatprep.subr.bf16.mxu1 %v11274_v1 }
 0xebd   :  { %9569 = vmatpush3.bf16.msra.mxu1 %v10953_v34  ;;  %v10978_v34 = vld [vmem:[%s14463_s10 + $0x74] ss:$8 sps:$4 sm:$0xff]  }
 0xebe   :  { %9570 = vmatprep.subr.bf16.mxu1 %v11274_v1 }
 0xec1   :  { %9571 = vmatpush3.bf16.msra.mxu1 %v10954_v18  ;;  %v11260_v18 = vld [vmem:[%s14460_s7 + $0x18] sm:$0xff]  }
 0xec2   :  { %9576 = vmatprep.subr.bf16.mxu1 %v11274_v1 }
 0xec4   :  { %9573 = vmatmul.mubr.bf16.vlgmr.msra.gmra.mrb[232].mxu1 %v5941_v25  ;;  %v10976_v25 = vld [vmem:[%s14463_s10 + $0x70] ss:$8 sps:$4 sm:$0xff]  }
 0xec5   :  { %9578 = vmatprep.mubr.msk.bf16.mxu1 %vm11275_vm12, %v11274_v1 }
 0xf17   :  { %v9269_v46 = vpop.f32.mrb[216].mxu1 }
 0xf18   :  { %v9270_v7 = vpop.f32.mrb[217].mxu1 }
 0xf19   :  { %v9271_v41 = vadd.f32 %v9270_v7, %v9269_v46  ;;  %v9272_v61 = vpop.f32.mrb[218].mxu1  ;;  %v10981_v46 = vld [vmem:[%s14463_s10 + $0x84] ss:$8 sps:$4 sm:$0xff]   ;;  %v10979_v7 = vld [vmem:[%s14463_s10 + $0x80] ss:$8 sps:$4 sm:$0xff]  }
 0xf1a   :  { %v9273_v9 = vpop.f32.mrb[219].mxu1  ;;  %v11261_v61 = vld [vmem:[%s14460_s7 + $0x20] ss:$0 sps:$4 sm:$0xff]  }
 0xf1b   :  { %v10982_v9 = vld [vmem:[%s14463_s10 + $0x90] ss:$8 sps:$4 sm:$0xff]  }
 0xf37   :  { %v9291_v3 = vpop.f32.mrb[220].mxu1 }
 0xf38   :  { %v9292_v47 = vpop.f32.mrb[221].mxu1 }
 0xf39   :  { %v9293_v16 = vadd.f32 %v9292_v47, %v9291_v3  ;;  %v9294_v28 = vpop.f32.mrb[222].mxu1  ;;  %v10987_v3 = vld [vmem:[%s14463_s10 + $0xa4] ss:$8 sps:$4 sm:$0xff]   ;;  %v10985_v47 = vld [vmem:[%s14463_s10 + $0xa0] ss:$8 sps:$4 sm:$0xff]  }
 0xf3a   :  { %v9295_v40 = vpop.f32.mrb[223].mxu1  ;;  %v10988_v28 = vld [vmem:[%s14463_s10 + $0xb0] ss:$8 sps:$4 sm:$0xff]  }
 0xf3b   :  { %v6593_v50 = vadd.f32 %v9293_v16, %v9271_v41  ;;  %v10984_v41 = vld [vmem:[%s14463_s10 + $0x94] ss:$8 sps:$4 sm:$0xff]   ;;  %v10993_v40 = vld [vmem:[%s14463_s10 + $0xc4] ss:$8 sps:$4 sm:$0xff]  }
 0xf3c   :  { %v10990_v16 = vld [vmem:[%s14463_s10 + $0xb4] ss:$8 sps:$4 sm:$0xff]  }
 0xf57   :  { %v9313_v21 = vpop.f32.mrb[224].mxu1 }
 0xf58   :  { %v9314_v38 = vpop.f32.mrb[225].mxu1 }
 0xf59   :  { %v9315_v33 = vadd.f32 %v9314_v38, %v9313_v21  ;;  %v9316_v42 = vpop.f32.mrb[226].mxu1  ;;  %v10996_v21 = vld [vmem:[%s14463_s10 + $0xd4] ss:$8 sps:$4 sm:$0xff]   ;;  %v10994_v38 = vld [vmem:[%s14463_s10 + $0xd0] ss:$8 sps:$4 sm:$0xff]  }
 0xf5a   :  { %v9317_v48 = vpop.f32.mrb[227].mxu1  ;;  %v10997_v42 = vld [vmem:[%s14463_s10 + $0xe0] ss:$8 sps:$4 sm:$0xff]  }
 0xf5b   :  { %v6633_v54 = vadd.f32 %v9315_v33, %v6593_v50  ;;  %v10991_v50 = vld [vmem:[%s14463_s10 + $0xc0] ss:$8 sps:$4 sm:$0xff]   ;;  %v10999_v33 = vld [vmem:[%s14463_s10 + $0xe4] ss:$8 sps:$4 sm:$0xff]   ;;  %v11002_v48 = vld [vmem:[%s14463_s10 + $0xf4] ss:$8 sps:$4 sm:$0xff]  }
 0xf77   :  { %v9335_v29 = vpop.f32.mrb[228].mxu1 }
 0xf78   :  { %v9336_v55 = vpop.f32.mrb[229].mxu1 }
 0xf79   :  { %v9337_v31 = vadd.f32 %v9336_v55, %v9335_v29  ;;  %v9338_v32 = vpop.f32.mrb[230].mxu1  ;;  %v11005_v29 = vld [vmem:[%s14463_s10 + $0x104] ss:$8 sps:$4 sm:$0xff]  }
 0xf7a   :  { %v9339_v0 = vpop.f32.mrb[231].mxu1 }
 0xf7b   :  { %v6673_v30 = vadd.f32 %v9337_v31, %v6633_v54  ;;  %v11000_v54 = vld [vmem:[%s14463_s10 + $0xf0] ss:$8 sps:$4 sm:$0xff]  }
 0xf97   :  { %v6712_v58 = vpop.f32.mrb[232].mxu1 }
 0xf98   :  { %v6713_v57 = vadd.f32 %v6712_v58, %v6673_v30  ;;  %v9574_v14 = vpop.f32.mrb[233].mxu1  ;;  %v11003_v30 = vld [vmem:[%s14463_s10 + $0x100] ss:$8 sps:$4 sm:$0xff]  }
 0xf99   :  { %v6715_v10 = vpop.f32.mrb[234].mxu1  ;;  %v11006_v14 = vld [vmem:[%s14463_s10 + $0x110] ss:$8 sps:$4 sm:$0xff]  }
 0xf9a   :  { %v6718_v6 = vmul.f32 %v6713_v57, %v5856_v8  ;;  %v9575_v62 = vpop.f32.mrb[235].mxu1  ;;  %v11008_v57 = vld [vmem:[%s14463_s10 + $0x114] ss:$8 sps:$4 sm:$0xff]  }
 0xf9c   :  { %v6719_v2 = vadd.f32 %v6718_v6, %v5857_v26  ;;  %v11011_v26 = vld [vmem:[%s14463_s10 + $0x124] ss:$8 sps:$4 sm:$0xff]  }
 0xf9e   :  { %v6721_v11 = vmul.f32 0.044715, %v6719_v2  ;;  %v6720_v13 = vmul.f32 0.5, %v6719_v2 }
 0xfa0   :  { %v6722_v37 = vmul.f32 %v6721_v11, %v6719_v2 }
 0xfa2   :  { %v6723_v59 = vmul.f32 %v6722_v37, %v6719_v2 }
 0xfa4   :  { %v6724_v49 = vadd.f32 %v6723_v59, %v6719_v2  ;;  %v11009_v2 = vld [vmem:[%s14463_s10 + $0x120] ss:$8 sps:$4 sm:$0xff]   ;;  %v11014_v59 = vld [vmem:[%s14463_s10 + $0x134] ss:$8 sps:$4 sm:$0xff]  }
 0xfa6   :  { %v6725_v23 = vmul.f32 0.7978846, %v6724_v49  ;;  %v11012_v49 = vld [vmem:[%s14463_s10 + $0x130] ss:$8 sps:$4 sm:$0xff]  }
 0xfa8   :  { %11243 = vtanh.f32 %v6725_v23  ;;  %v11017_v23 = vld [vmem:[%s14463_s10 + $0x144] ss:$8 sps:$4 sm:$0xff]  }
 0xfb2   :  { %v11244_v43 = vpop.eup %11243 }
 0xfb3   :  { %v6727_v45 = vadd.f32 1.0, %v11244_v43 }
 0xfb5   :  { %v6728_v39 = vmul.f32 %v6727_v45, %v6720_v13 }
 0xfb7   :  { %v6729_v4 = vpack.c.bf16 %v6728_v39, %v6728_v39  ;;  %v11015_v39 = vld [vmem:[%s14463_s10 + $0x140] ss:$8 sps:$4 sm:$0xff]  }
 0xfb9   :  { %v6735_v36 = vsel %vm5332_vm13, %v6729_v4, 0 }
 0xfba   :  { %9577 = vmatpush3.bf16.msra.mxu1 %v6735_v36  ;;  %v11018_v36 = vld [vmem:[%s14463_s10 + $0x150] ss:$8 sps:$4 sm:$0xff]  }
 0xfbb   :  { %7682 = vmatprep.subr.bf16.mxu1 %v10957_v22  ;;  %v11020_v22 = vld [vmem:[%s14463_s10 + $0x154] ss:$8 sps:$4 sm:$0xff]  }
 0xfbd   :  { %9579 = vmatmul.mubr.msk.bf16.vlgmr.msra.gmra.mrb[236].mxu1 %vm5316_vm14, %v11257_v44  ;;  %v11026_v44 = vld [vmem:[%s14463_s10 + $0x174] ss:$8 sps:$4 sm:$0xff]  }
 0xfbe   :  { %9582 = vmatprep.mubr.msk.bf16.mxu1 %vm11275_vm12, %v11274_v1  ;;  %7683 = vmatpush1.bf16.msra.mxu1 %v10955_v51  ;;  %v11023_v51 = vld [vmem:[%s14463_s10 + $0x164] ss:$8 sps:$4 sm:$0xff]  }
 0xfbf   :  { %7684 = vmatprep.subr.bf16.mxu1 %v10960_v27  ;;  %v11021_v27 = vld [vmem:[%s14463_s10 + $0x160] ss:$8 sps:$4 sm:$0xff]  }
 0xfc2   :  { %7685 = vmatpush1.bf16.msra.mxu1 %v10958_v56  ;;  %v11024_v56 = vld [vmem:[%s14463_s10 + $0x170] ss:$8 sps:$4 sm:$0xff]  }
 0xfc3   :  { %7686 = vmatprep.subr.bf16.mxu1 %v10963_v35  ;;  %v11029_v35 = vld [vmem:[%s14463_s10 + $0x184] ss:$8 sps:$4 sm:$0xff]  }
 0xfc5   :  { %9583 = vmatmul.mubr.msk.bf16.gmra.mrb[240].mxu1 %vm5316_vm14, %v11258_v60  ;;  %v11030_v60 = vld [vmem:[%s14463_s10 + $0x190] ss:$8 sps:$4 sm:$0xff]  }
 0xfc6   :  { %9586 = vmatprep.mubr.msk.bf16.mxu1 %vm11275_vm12, %v11274_v1  ;;  %7687 = vmatpush1.bf16.msra.mxu1 %v10961_v53  ;;  %v11027_v53 = vld [vmem:[%s14463_s10 + $0x180] ss:$8 sps:$4 sm:$0xff]  }
 0xfc7   :  { %7688 = vmatprep.subr.bf16.mxu1 %v10966_v52  ;;  %v11032_v52 = vld [vmem:[%s14463_s10 + $0x194] ss:$8 sps:$4 sm:$0xff]  }
 0xfca   :  { %7689 = vmatpush1.bf16.msra.mxu1 %v10964_v17  ;;  %v11035_v17 = vld [vmem:[%s14463_s10 + $0x1a4] ss:$8 sps:$4 sm:$0xff]  }
 0xfcb   :  { %7690 = vmatprep.subr.bf16.mxu1 %v10969_v24  ;;  %v11033_v24 = vld [vmem:[%s14463_s10 + $0x1a0] ss:$8 sps:$4 sm:$0xff]  }
 0xfcd   :  { %9587 = vmatmul.mubr.msk.bf16.gmra.mrb[244].mxu1 %vm5316_vm14, %v11259_v12  ;;  %v11041_v12 = vld [vmem:[%s14463_s10 + $0x1c4] ss:$8 sps:$4 sm:$0xff]  }
 0xfce   :  { %7691 = vmatpush1.bf16.msra.mxu1 %v10967_v63  ;;  %9590 = vmatprep.mubr.msk.bf16.mxu1 %vm11275_vm12, %v11274_v1  ;;  %v11038_v63 = vld [vmem:[%s14463_s10 + $0x1b4] ss:$8 sps:$4 sm:$0xff]  }
 0xfcf   :  { %7692 = vmatprep.subr.bf16.mxu1 %v10972_v19  ;;  %v11036_v19 = vld [vmem:[%s14463_s10 + $0x1b0] ss:$8 sps:$4 sm:$0xff]  }
 0xfd2   :  { %7693 = vmatpush1.bf16.msra.mxu1 %v10970_v15  ;;  %v11039_v15 = vld [vmem:[%s14463_s10 + $0x1c0] ss:$8 sps:$4 sm:$0xff]  }
 0xfd3   :  { %7694 = vmatprep.subr.bf16.mxu1 %v10975_v5  ;;  %v11044_v5 = vld [vmem:[%s14463_s10 + $0x1d4] ss:$8 sps:$4 sm:$0xff]  }
 0xfd5   :  { %9591 = vmatmul.mubr.msk.bf16.gmra.mrb[248].mxu1 %vm5316_vm14, %v11260_v18  ;;  %v11045_v18 = vld [vmem:[%s14463_s10 + $0x1e0] ss:$8 sps:$4 sm:$0xff]  }
 0xfd6   :  { %7695 = vmatpush1.bf16.msra.mxu1 %v10973_v20  ;;  %9594 = vmatprep.mubr.msk.bf16.mxu1 %vm11275_vm12, %v11274_v1  ;;  %v11042_v20 = vld [vmem:[%s14463_s10 + $0x1d0] ss:$8 sps:$4 sm:$0xff]  }
 0xfd7   :  { %7696 = vmatprep.subr.bf16.mxu1 %v10978_v34  ;;  %v11047_v34 = vld [vmem:[%s14463_s10 + $0x1e4] ss:$8 sps:$4 sm:$0xff]  }
 0xfda   :  { %7697 = vmatpush1.bf16.msra.mxu1 %v10976_v25  ;;  %v11050_v25 = vld [vmem:[%s14463_s10 + $0x1f4] ss:$8 sps:$4 sm:$0xff]  }
 0xfdb   :  { %7698 = vmatprep.subr.bf16.mxu1 %v10981_v46 }
 0xfdd   :  { %9595 = vmatmul.mubr.msk.bf16.gmra.mrb[252].mxu1 %vm5316_vm14, %v11261_v61  ;;  %v11053_v61 = vld [vmem:[%s14463_s10 + $0x204] ss:$8 sps:$4 sm:$0xff]  }
 0xfde   :  { %7699 = vmatpush1.bf16.msra.mxu1 %v10979_v7  ;;  %v11048_v7 = vld [vmem:[%s14463_s10 + $0x1f0] ss:$8 sps:$4 sm:$0xff]  }
 0xfdf   :  { %7700 = vmatprep.subr.bf16.mxu1 %v10984_v41 }
 0xfe2   :  { %7701 = vmatpush1.bf16.msra.mxu1 %v10982_v9 }
 0xfe3   :  { %7702 = vmatprep.subr.bf16.mxu1 %v10987_v3 }
 0xfe6   :  { %7703 = vmatpush1.bf16.msra.mxu1 %v10985_v47  ;;  %v11051_v47 = vld [vmem:[%s14463_s10 + $0x200] ss:$8 sps:$4 sm:$0xff]  }
 0xfe7   :  { %7704 = vmatprep.subr.bf16.mxu1 %v10990_v16 }
 0xfea   :  { %7705 = vmatpush1.bf16.msra.mxu1 %v10988_v28 }
 0xfeb   :  { %7706 = vmatprep.subr.bf16.mxu1 %v10993_v40  ;;  %v11056_v40 = vld [vmem:[%s14463_s10 + $0x214] ss:$8 sps:$4 sm:$0xff]  }
 0xfee   :  { %7707 = vmatpush1.bf16.msra.mxu1 %v10991_v50  ;;  %v11054_v50 = vld [vmem:[%s14463_s10 + $0x210] ss:$8 sps:$4 sm:$0xff]  }
 0xfef   :  { %7708 = vmatprep.subr.bf16.mxu1 %v10996_v21  ;;  %v11059_v21 = vld [vmem:[%s14463_s10 + $0x224] ss:$8 sps:$4 sm:$0xff]  }
 0xff2   :  { %7709 = vmatpush1.bf16.msra.mxu1 %v10994_v38  ;;  %v11057_v38 = vld [vmem:[%s14463_s10 + $0x220] ss:$8 sps:$4 sm:$0xff]  }
 0xff3   :  { %7710 = vmatprep.subr.bf16.mxu1 %v10999_v33  ;;  %v11062_v33 = vld [vmem:[%s14463_s10 + $0x234] ss:$8 sps:$4 sm:$0xff]  }
 0xff6   :  { %7711 = vmatpush1.bf16.msra.mxu1 %v10997_v42  ;;  %v11060_v42 = vld [vmem:[%s14463_s10 + $0x230] ss:$8 sps:$4 sm:$0xff]  }
 0xff7   :  { %7712 = vmatprep.subr.bf16.mxu1 %v11002_v48 }
 0xffa   :  { %7713 = vmatpush1.bf16.msra.mxu1 %v11000_v54  ;;  %v11065_v54 = vld [vmem:[%s14463_s10 + $0x244] ss:$8 sps:$4 sm:$0xff]  }
 0xffb   :  { %7723 = vmatprep.subr.bf16.mxu1 %v11005_v29 }
0x1090   :  { %v6771_v55 = vpop.f32.mrb[236].mxu1 }
0x1091   :  { %v9580_v31 = vpop.f32.mrb[237].mxu1  ;;  %v6809_v58 = vpack.c.bf16 %v6771_v55, %v6771_v55 }
0x1092   :  { %v6774_v32 = vpop.f32.mrb[238].mxu1 }
0x1093   :  { %v6810_v0 = vpack.c.bf16 %v6774_v32, %v6774_v32  ;;  %v9581_v8 = vpop.f32.mrb[239].mxu1  ;;  %v11063_v32 = vld [vmem:[%s14463_s10 + $0x240] ss:$8 sps:$4 sm:$0xff]  }
0x1094   :  { %v11071_v8 = vld [vmem:[%s14463_s10 + $0x264] ss:$8 sps:$4 sm:$0xff]  }
0x1095   :  { %7714 = vmatprep.mubr.bf16.mxu1 %v6810_v0  ;;  %v11068_v0 = vld [vmem:[%s14463_s10 + $0x254] ss:$8 sps:$4 sm:$0xff]  }
0x1096   :  { %7715 = vmatmul.mubr.bf16.vlgmr.msra.gmra.mrb[0].mxu1 %v6809_v58  ;;  %v11069_v58 = vld [vmem:[%s14463_s10 + $0x260] ss:$8 sps:$4 sm:$0xff]  }
0x1097   :  { %7724 = vmatpush1.bf16.msra.mxu1 %v11003_v30  ;;  %v11066_v30 = vld [vmem:[%s14463_s10 + $0x250] ss:$8 sps:$4 sm:$0xff]  }
0x1098   :  { %7725 = vmatprep.subr.bf16.mxu1 %v11008_v57  ;;  %v13975_v10 = vpop.f32.mrb[240].mxu1  ;;  %v11074_v57 = vld [vmem:[%s14463_s10 + $0x274] ss:$8 sps:$4 sm:$0xff]  }
0x1099   :  { %v9584_v6 = vpop.f32.mrb[241].mxu1  ;;  %v6811_v28 = vpack.c.bf16 %v13975_v10, %v13975_v10  ;;  %v11075_v10 = vld [vmem:[%s14463_s10 + $0x280] ss:$8 sps:$4 sm:$0xff]  }
0x109a   :  { %v6782_v62 = vpop.f32.mrb[242].mxu1  ;;  %v11080_v6 = vld [vmem:[%s14463_s10 + $0x294] ss:$8 sps:$4 sm:$0xff]  }
0x109b   :  { %7726 = vmatpush1.bf16.msra.mxu1 %v11006_v14  ;;  %v6812_v11 = vpack.c.bf16 %v6782_v62, %v6782_v62  ;;  %v9585_v37 = vpop.f32.mrb[243].mxu1  ;;  %v11072_v14 = vld [vmem:[%s14463_s10 + $0x270] ss:$8 sps:$4 sm:$0xff]  }
0x109c   :  { %7727 = vmatprep.subr.bf16.mxu1 %v11011_v26  ;;  %v11077_v26 = vld [vmem:[%s14463_s10 + $0x284] ss:$8 sps:$4 sm:$0xff]   ;;  %v11078_v62 = vld [vmem:[%s14463_s10 + $0x290] ss:$8 sps:$4 sm:$0xff]   ;;  %v11086_v37 = vld [vmem:[%s14463_s10 + $0x2b4] ss:$8 sps:$4 sm:$0xff]  }
0x109d   :  { %7755 = vmatprep.mubr.bf16.mxu1 %v6812_v11  ;;  %v11081_v11 = vld [vmem:[%s14463_s10 + $0x2a0] ss:$8 sps:$4 sm:$0xff]  }
0x109f   :  { %7728 = vmatpush1.bf16.msra.mxu1 %v11009_v2  ;;  %v11083_v2 = vld [vmem:[%s14463_s10 + $0x2a4] ss:$8 sps:$4 sm:$0xff]  }
0x10a0   :  { %7729 = vmatprep.subr.bf16.mxu1 %v11014_v59  ;;  %v13989_v43 = vpop.f32.mrb[244].mxu1  ;;  %v11084_v59 = vld [vmem:[%s14463_s10 + $0x2b0] ss:$8 sps:$4 sm:$0xff]  }
0x10a1   :  { %v9588_v13 = vpop.f32.mrb[245].mxu1 }
0x10a2   :  { %v13991_v45 = vpop.f32.mrb[246].mxu1  ;;  %v11092_v13 = vld [vmem:[%s14463_s10 + $0x2d4] ss:$8 sps:$4 sm:$0xff]  }
0x10a3   :  { %7730 = vmatpush1.bf16.msra.mxu1 %v11012_v49  ;;  %v9589_v4 = vpop.f32.mrb[247].mxu1  ;;  %v6814_v16 = vpack.c.bf16 %v13991_v45, %v13991_v45  ;;  %v11089_v49 = vld [vmem:[%s14463_s10 + $0x2c4] ss:$8 sps:$4 sm:$0xff]   ;;  %v11090_v45 = vld [vmem:[%s14463_s10 + $0x2d0] ss:$8 sps:$4 sm:$0xff]  }
0x10a4   :  { %7731 = vmatprep.subr.bf16.mxu1 %v11017_v23  ;;  %v11087_v23 = vld [vmem:[%s14463_s10 + $0x2c0] ss:$8 sps:$4 sm:$0xff]  }
0x10a5   :  { %v11093_v4 = vld [vmem:[%s14463_s10 + $0x2e0] ss:$8 sps:$4 sm:$0xff]  }
0x10a7   :  { %7732 = vmatpush1.bf16.msra.mxu1 %v11015_v39  ;;  %v11095_v39 = vld [vmem:[%s14463_s10 + $0x2e4] ss:$8 sps:$4 sm:$0xff]  }
0x10a8   :  { %7733 = vmatprep.subr.bf16.mxu1 %v11020_v22  ;;  %v14059_v46 = vpop.f32.mrb[248].mxu1  ;;  %v11098_v22 = vld [vmem:[%s14463_s10 + $0x2f4] ss:$8 sps:$4 sm:$0xff]  }
0x10a9   :  { %v9592_v41 = vpop.f32.mrb[249].mxu1 }
0x10aa   :  { %v14067_v9 = vpop.f32.mrb[250].mxu1  ;;  %v11126_v41 = vld [vmem:[%s14463_s10 + $0x390] ss:$8 sps:$4 sm:$0xff]  }
0x10ab   :  { %7734 = vmatpush1.bf16.msra.mxu1 %v11018_v36  ;;  %v9593_v3 = vpop.f32.mrb[251].mxu1  ;;  %v11096_v36 = vld [vmem:[%s14463_s10 + $0x2f0] ss:$8 sps:$4 sm:$0xff]  }
0x10ac   :  { %7735 = vmatprep.subr.bf16.mxu1 %v11023_v51  ;;  %v11101_v51 = vld [vmem:[%s14463_s10 + $0x304] ss:$8 sps:$4 sm:$0xff]   ;;  %v11134_v3 = vld [vmem:[%s14463_s10 + $0x3b4] ss:$8 sps:$4 sm:$0xff]  }
0x10af   :  { %7736 = vmatpush1.bf16.msra.mxu1 %v11021_v27  ;;  %v11099_v27 = vld [vmem:[%s14463_s10 + $0x300] ss:$8 sps:$4 sm:$0xff]  }
0x10b0   :  { %7737 = vmatprep.subr.bf16.mxu1 %v11026_v44  ;;  %v14094_v48 = vpop.f32.mrb[252].mxu1  ;;  %v6816_v44 = vpack.c.bf16 %v14067_v9, %v14067_v9  ;;  %v11129_v9 = vld [vmem:[%s14463_s10 + $0x3a0] ss:$8 sps:$4 sm:$0xff]  }
0x10b1   :  { %v9596_v29 = vpop.f32.mrb[253].mxu1 }
0x10b2   :  { %v6806_v55 = vpop.f32.mrb[254].mxu1  ;;  %v11147_v29 = vld [vmem:[%s14463_s10 + $0x400] ss:$8 sps:$4 sm:$0xff]  }
0x10b3   :  { %7738 = vmatpush1.bf16.msra.mxu1 %v11024_v56  ;;  %v9597_v31 = vpop.f32.mrb[255].mxu1  ;;  %v6813_v56 = vpack.c.bf16 %v13989_v43, %v13989_v43  ;;  %v11105_v43 = vld [vmem:[%s14463_s10 + $0x320] ss:$8 sps:$4 sm:$0xff]   ;;  %v6815_v55 = vpack.c.bf16 %v14059_v46, %v14059_v46 }
0x10b4   :  { %7739 = vmatprep.subr.bf16.mxu1 %v11029_v35  ;;  %v11104_v35 = vld [vmem:[%s14463_s10 + $0x314] ss:$8 sps:$4 sm:$0xff]   ;;  %v11153_v46 = vld [vmem:[%s14463_s10 + $0x420] ss:$8 sps:$4 sm:$0xff]  }
0x10b5   :  { %v11152_v31 = vld [vmem:[%s14463_s10 + $0x414] ss:$8 sps:$4 sm:$0xff]  }
0x10b7   :  { %7740 = vmatpush1.bf16.msra.mxu1 %v11027_v53  ;;  %v11102_v53 = vld [vmem:[%s14463_s10 + $0x310] ss:$8 sps:$4 sm:$0xff]  }
0x10b8   :  { %7741 = vmatprep.subr.bf16.mxu1 %v11032_v52  ;;  %v11107_v52 = vld [vmem:[%s14463_s10 + $0x324] ss:$8 sps:$4 sm:$0xff]  }
0x10bb   :  { %7742 = vmatpush1.bf16.msra.mxu1 %v11030_v60  ;;  %v11110_v60 = vld [vmem:[%s14463_s10 + $0x334] ss:$8 sps:$4 sm:$0xff]  }
0x10bc   :  { %7743 = vmatprep.subr.bf16.mxu1 %v11035_v17  ;;  %v11108_v17 = vld [vmem:[%s14463_s10 + $0x330] ss:$8 sps:$4 sm:$0xff]  }
0x10bf   :  { %7744 = vmatpush1.bf16.msra.mxu1 %v11033_v24  ;;  %v11113_v24 = vld [vmem:[%s14463_s10 + $0x344] ss:$8 sps:$4 sm:$0xff]  }
0x10c0   :  { %7745 = vmatprep.subr.bf16.mxu1 %v11038_v63  ;;  %v11111_v63 = vld [vmem:[%s14463_s10 + $0x340] ss:$8 sps:$4 sm:$0xff]  }
0x10c3   :  { %7746 = vmatpush1.bf16.msra.mxu1 %v11036_v19  ;;  %v11116_v19 = vld [vmem:[%s14463_s10 + $0x354] ss:$8 sps:$4 sm:$0xff]  }
0x10c4   :  { %7747 = vmatprep.subr.bf16.mxu1 %v11041_v12  ;;  %v11114_v12 = vld [vmem:[%s14463_s10 + $0x350] ss:$8 sps:$4 sm:$0xff]  }
0x10c7   :  { %7748 = vmatpush1.bf16.msra.mxu1 %v11039_v15  ;;  %v11119_v15 = vld [vmem:[%s14463_s10 + $0x364] ss:$8 sps:$4 sm:$0xff]  }
0x10c8   :  { %7749 = vmatprep.subr.bf16.mxu1 %v11044_v5  ;;  %v11117_v5 = vld [vmem:[%s14463_s10 + $0x360] ss:$8 sps:$4 sm:$0xff]  }
0x10cb   :  { %7750 = vmatpush1.bf16.msra.mxu1 %v11042_v20  ;;  %v11122_v20 = vld [vmem:[%s14463_s10 + $0x374] ss:$8 sps:$4 sm:$0xff]  }
0x10cc   :  { %7751 = vmatprep.subr.bf16.mxu1 %v11047_v34  ;;  %v11120_v34 = vld [vmem:[%s14463_s10 + $0x370] ss:$8 sps:$4 sm:$0xff]  }
0x10cf   :  { %7752 = vmatpush1.bf16.msra.mxu1 %v11045_v18  ;;  %v11125_v18 = vld [vmem:[%s14463_s10 + $0x384] ss:$8 sps:$4 sm:$0xff]  }
0x10d0   :  { %7753 = vmatprep.subr.bf16.mxu1 %v11050_v25  ;;  %v11123_v25 = vld [vmem:[%s14463_s10 + $0x380] ss:$8 sps:$4 sm:$0xff]  }
0x10d3   :  { %7754 = vmatpush1.bf16.msra.mxu1 %v11048_v7  ;;  %v11128_v7 = vld [vmem:[%s14463_s10 + $0x394] ss:$8 sps:$4 sm:$0xff]  }
0x10d4   :  { %7764 = vmatprep.subr.bf16.mxu1 %v11053_v61  ;;  %v11131_v61 = vld [vmem:[%s14463_s10 + $0x3a4] ss:$8 sps:$4 sm:$0xff]  }
0x10d6   :  { %7756 = vmatmul.mubr.bf16.vlgmr.msra.gmra.mrb[0].mxu1 %v6811_v28  ;;  %v11135_v28 = vld [vmem:[%s14463_s10 + $0x3c0] ss:$8 sps:$4 sm:$0xff]  }
0x10d7   :  { %7765 = vmatpush1.bf16.msra.mxu1 %v11051_v47  ;;  %7796 = vmatprep.mubr.bf16.mxu1 %v6814_v16  ;;  %v11132_v47 = vld [vmem:[%s14463_s10 + $0x3b0] ss:$8 sps:$4 sm:$0xff]   ;;  %v11137_v16 = vld [vmem:[%s14463_s10 + $0x3c4] ss:$8 sps:$4 sm:$0xff]  }
0x10d8   :  { %7766 = vmatprep.subr.bf16.mxu1 %v11056_v40  ;;  %v11140_v40 = vld [vmem:[%s14463_s10 + $0x3d4] ss:$8 sps:$4 sm:$0xff]  }
0x10db   :  { %7767 = vmatpush1.bf16.msra.mxu1 %v11054_v50  ;;  %v11138_v50 = vld [vmem:[%s14463_s10 + $0x3d0] ss:$8 sps:$4 sm:$0xff]  }
0x10dc   :  { %7768 = vmatprep.subr.bf16.mxu1 %v11059_v21  ;;  %v11143_v21 = vld [vmem:[%s14463_s10 + $0x3e4] ss:$8 sps:$4 sm:$0xff]  }
0x10df   :  { %7769 = vmatpush1.bf16.msra.mxu1 %v11057_v38  ;;  %v11141_v38 = vld [vmem:[%s14463_s10 + $0x3e0] ss:$8 sps:$4 sm:$0xff]  }
0x10e0   :  { %7770 = vmatprep.subr.bf16.mxu1 %v11062_v33  ;;  %v11146_v33 = vld [vmem:[%s14463_s10 + $0x3f4] ss:$8 sps:$4 sm:$0xff]  }
0x10e3   :  { %7771 = vmatpush1.bf16.msra.mxu1 %v11060_v42  ;;  %v11144_v42 = vld [vmem:[%s14463_s10 + $0x3f0] ss:$8 sps:$4 sm:$0xff]  }
0x10e4   :  { %7772 = vmatprep.subr.bf16.mxu1 %v11065_v54  ;;  %v11149_v54 = vld [vmem:[%s14463_s10 + $0x404] ss:$8 sps:$4 sm:$0xff]  }
0x10e7   :  { %7773 = vmatpush1.bf16.msra.mxu1 %v11063_v32  ;;  %v11150_v32 = vld [vmem:[%s14463_s10 + $0x410] ss:$8 sps:$4 sm:$0xff]  }
0x10e8   :  { %7774 = vmatprep.subr.bf16.mxu1 %v11068_v0  ;;  %v14503_v0 = vmov 0  }
0x10eb   :  { %7775 = vmatpush1.bf16.msra.mxu1 %v11066_v30  ;;  %v11155_v30 = vld [vmem:[%s14463_s10 + $0x424] ss:$8 sps:$4 sm:$0xff]  }
0x10ec   :  { %7776 = vmatprep.subr.bf16.mxu1 %v11071_v8  ;;  %v11158_v8 = vld [vmem:[%s14463_s10 + $0x434] ss:$8 sps:$4 sm:$0xff]  }
0x10ef   :  { %7777 = vmatpush1.bf16.msra.mxu1 %v11069_v58  ;;  %v11156_v58 = vld [vmem:[%s14463_s10 + $0x430] ss:$8 sps:$4 sm:$0xff]  }
0x10f0   :  { %7778 = vmatprep.subr.bf16.mxu1 %v11074_v57  ;;  %v11161_v57 = vld [vmem:[%s14463_s10 + $0x444] ss:$8 sps:$4 sm:$0xff]  }
0x10f3   :  { %7779 = vmatpush1.bf16.msra.mxu1 %v11072_v14  ;;  %v11159_v14 = vld [vmem:[%s14463_s10 + $0x440] ss:$8 sps:$4 sm:$0xff]  }
0x10f4   :  { %7780 = vmatprep.subr.bf16.mxu1 %v11077_v26  ;;  %v11164_v26 = vld [vmem:[%s14463_s10 + $0x454] ss:$8 sps:$4 sm:$0xff]  }
0x10f7   :  { %7781 = vmatpush1.bf16.msra.mxu1 %v11075_v10  ;;  %v11162_v10 = vld [vmem:[%s14463_s10 + $0x450] ss:$8 sps:$4 sm:$0xff]  }
0x10f8   :  { %7782 = vmatprep.subr.bf16.mxu1 %v11080_v6  ;;  %v11167_v6 = vld [vmem:[%s14463_s10 + $0x464] ss:$8 sps:$4 sm:$0xff]  }
0x10fb   :  { %7783 = vmatpush1.bf16.msra.mxu1 %v11078_v62  ;;  %v11165_v62 = vld [vmem:[%s14463_s10 + $0x460] ss:$8 sps:$4 sm:$0xff]  }
0x10fc   :  { %7784 = vmatprep.subr.bf16.mxu1 %v11083_v2  ;;  %v11170_v2 = vld [vmem:[%s14463_s10 + $0x474] ss:$8 sps:$4 sm:$0xff]  }
0x10ff   :  { %7785 = vmatpush1.bf16.msra.mxu1 %v11081_v11  ;;  %v11168_v11 = vld [vmem:[%s14463_s10 + $0x470] ss:$8 sps:$4 sm:$0xff]  }
0x1100   :  { %7786 = vmatprep.subr.bf16.mxu1 %v11086_v37  ;;  %v6817_v37 = vpack.c.bf16 %v14094_v48, %v14094_v48 }
0x1103   :  { %7787 = vmatpush1.bf16.msra.mxu1 %v11084_v59  ;;  %v7888_v59 = vlaneseq }
0x1104   :  { %7788 = vmatprep.subr.bf16.mxu1 %v11089_v49 }
0x1105   :  { %v7889_v49 = vshrl.u32 %v7888_v59, 7 }
0x1107   :  { %7789 = vmatpush1.bf16.msra.mxu1 %v11087_v23  ;;  %v7890_v23 = vsub.s32 0, %v7889_v49 }
0x1108   :  { %7790 = vmatprep.subr.bf16.mxu1 %v11092_v13  ;;  %v8924_v13 = vld [vmem:[%s14456_s15 + $0x10] ss:$8 sm:$0x3] }
0x110b   :  { %7791 = vmatpush1.bf16.msra.mxu1 %v11090_v45  ;;  %v7894_v45 = vsub.s32 1, %v7889_v49 }
0x110c   :  { %7792 = vmatprep.subr.bf16.mxu1 %v11095_v39  ;;  %v8925_v39 = vld [vmem:[%s14456_s15 + $0x11] ss:$8 sm:$0x3] }
0x110d   :  { %v7908_v48 = vrot.slane %v8925_v39, %v7894_v45 }
0x110f   :  { %7793 = vmatpush1.bf16.msra.mxu1 %v11093_v4  ;;  %v7891_v4 = vrot.slane %v8924_v13, %v7890_v23 }
0x1110   :  { %7794 = vmatprep.subr.bf16.mxu1 %v11098_v22  ;;  %v7895_v22 = vrot.slane %v8924_v13, %v7894_v45 }
0x1113   :  { %7795 = vmatpush1.bf16.msra.mxu1 %v11096_v36  ;;  %v7904_v36 = vrot.slane %v8925_v39, %v7890_v23 }
0x1114   :  { %7805 = vmatprep.subr.bf16.mxu1 %v11101_v51 }
0x1116   :  { %7797 = vmatmul.mubr.bf16.vlgmr.msra.gmra.mrb[0].mxu1 %v6813_v56 }
0x1117   :  { %7806 = vmatpush1.bf16.msra.mxu1 %v11099_v27  ;;  %7837 = vmatprep.mubr.bf16.mxu1 %v6816_v44 }
0x1118   :  { %7807 = vmatprep.subr.bf16.mxu1 %v11104_v35 }
0x111b   :  { %7808 = vmatpush1.bf16.msra.mxu1 %v11102_v53 }
0x111c   :  { %7809 = vmatprep.subr.bf16.mxu1 %v11107_v52 }
0x111f   :  { %7810 = vmatpush1.bf16.msra.mxu1 %v11105_v43 }
0x1120   :  { %7811 = vmatprep.subr.bf16.mxu1 %v11110_v60 }
0x1123   :  { %7812 = vmatpush1.bf16.msra.mxu1 %v11108_v17 }
0x1124   :  { %7813 = vmatprep.subr.bf16.mxu1 %v11113_v24 }
0x1127   :  { %7814 = vmatpush1.bf16.msra.mxu1 %v11111_v63 }
0x1128   :  { %7815 = vmatprep.subr.bf16.mxu1 %v11116_v19 }
0x112b   :  { %7816 = vmatpush1.bf16.msra.mxu1 %v11114_v12 }
0x112c   :  { %7817 = vmatprep.subr.bf16.mxu1 %v11119_v15 }
0x112f   :  { %7818 = vmatpush1.bf16.msra.mxu1 %v11117_v5 }
0x1130   :  { %7819 = vmatprep.subr.bf16.mxu1 %v11122_v20 }
0x1133   :  { %7820 = vmatpush1.bf16.msra.mxu1 %v11120_v34 }
0x1134   :  { %7821 = vmatprep.subr.bf16.mxu1 %v11125_v18 }
0x1137   :  { %7822 = vmatpush1.bf16.msra.mxu1 %v11123_v25 }
0x1138   :  { %7823 = vmatprep.subr.bf16.mxu1 %v11128_v7 }
0x113b   :  { %7824 = vmatpush1.bf16.msra.mxu1 %v11126_v41 }
0x113c   :  { %7825 = vmatprep.subr.bf16.mxu1 %v11131_v61 }
0x113f   :  { %7826 = vmatpush1.bf16.msra.mxu1 %v11129_v9 }
0x1140   :  { %7827 = vmatprep.subr.bf16.mxu1 %v11134_v3 }
0x1143   :  { %7828 = vmatpush1.bf16.msra.mxu1 %v11132_v47 }
0x1144   :  { %7829 = vmatprep.subr.bf16.mxu1 %v11137_v16 }
0x1147   :  { %7830 = vmatpush1.bf16.msra.mxu1 %v11135_v28 }
0x1148   :  { %7831 = vmatprep.subr.bf16.mxu1 %v11140_v40  ;;  %v11173_v40 = vld [vmem:[%s14465_s12 + $0x40] sm:$0xff]  }
0x114b   :  { %7832 = vmatpush1.bf16.msra.mxu1 %v11138_v50 }
0x114c   :  { %7833 = vmatprep.subr.bf16.mxu1 %v11143_v21  ;;  %v11171_v21 = vld [vmem:[%s14464_s11] sm:$0xff]  }
0x114f   :  { %7834 = vmatpush1.bf16.msra.mxu1 %v11141_v38  ;;  %v11174_v38 = vld [vmem:[%s14465_s12] sm:$0xff]  }
0x1150   :  { %7835 = vmatprep.subr.bf16.mxu1 %v11146_v33  ;;  %v11175_v33 = vld [vmem:[%s14465_s12 + $0x48] sm:$0xff]  }
0x1153   :  { %7836 = vmatpush1.bf16.msra.mxu1 %v11144_v42  ;;  %v11176_v42 = vld [vmem:[%s14465_s12 + $0x8] sm:$0xff]  }
0x1154   :  { %7846 = vmatprep.subr.bf16.mxu1 %v11149_v54  ;;  %v11177_v54 = vld [vmem:[%s14465_s12 + $0x50] sm:$0xff]  }
0x1156   :  { %7838 = vmatmul.mubr.bf16.vlgmr.msra.gmra.mrb[0].mxu1 %v6815_v55  ;;  %v11178_v55 = vld [vmem:[%s14465_s12 + $0x10] sm:$0xff]  }
0x1157   :  { %7847 = vmatpush1.bf16.msra.mxu1 %v11147_v29  ;;  %7878 = vmatprep.mubr.bf16.mxu1 %v14503_v0  ;;  %v11172_v29 = vld [vmem:[%s14464_s11 + $0x8] sm:$0xff]  }
0x1158   :  { %7848 = vmatprep.subr.bf16.mxu1 %v11152_v31  ;;  %v11179_v31 = vld [vmem:[%s14465_s12 + $0x58] sm:$0xff]  }
0x115b   :  { %7849 = vmatpush1.bf16.msra.mxu1 %v11150_v32  ;;  %v11180_v32 = vld [vmem:[%s14465_s12 + $0x18] sm:$0xff]  }
0x115c   :  { %7850 = vmatprep.subr.bf16.mxu1 %v11155_v30  ;;  %v11182_v30 = vld [vmem:[%s14465_s12 + $0x20] sm:$0xff]  }
0x115f   :  { %7851 = vmatpush1.bf16.msra.mxu1 %v11153_v46  ;;  %v11183_v46 = vld [vmem:[%s14465_s12 + $0x68] sm:$0xff]  }
0x1160   :  { %7852 = vmatprep.subr.bf16.mxu1 %v11158_v8  ;;  %v11184_v8 = vld [vmem:[%s14465_s12 + $0x28] sm:$0xff]  }
0x1163   :  { %7853 = vmatpush1.bf16.msra.mxu1 %v11156_v58  ;;  %v11185_v58 = vld [vmem:[%s14465_s12 + $0x70] sm:$0xff]  }
0x1164   :  { %7854 = vmatprep.subr.bf16.mxu1 %v11161_v57  ;;  %v11186_v57 = vld [vmem:[%s14465_s12 + $0x30] sm:$0xff]  }
0x1167   :  { %7855 = vmatpush1.bf16.msra.mxu1 %v11159_v14  ;;  %v11187_v14 = vld [vmem:[%s14465_s12 + $0x78] sm:$0xff]  }
0x1168   :  { %7856 = vmatprep.subr.bf16.mxu1 %v11164_v26  ;;  %v11188_v26 = vld [vmem:[%s14465_s12 + $0x38] sm:$0xff]  }
0x116b   :  { %7857 = vmatpush1.bf16.msra.mxu1 %v11162_v10 }
0x116c   :  { %7858 = vmatprep.subr.bf16.mxu1 %v11167_v6 }
0x116f   :  { %7859 = vmatpush1.bf16.msra.mxu1 %v11165_v62 }
0x1170   :  { %7860 = vmatprep.subr.bf16.mxu1 %v11170_v2 }
0x1173   :  { %7861 = vmatpush1.bf16.msra.mxu1 %v11168_v11 }
0x1176   :  { %7879 = vmatmul.mubr.bf16.vlgmr.msra.gmra.mrb[0].mxu1 %v6817_v37 }
0x1177   :  { %7991 = vmatprep.mubr.bf16.mxu1 %v14503_v0 }
0x1249   :  { %v7880_v51 = vpop.f32.mrb[0].mxu1 }
0x124a   :  { %v7898_v27 = vmul.f32 %v7891_v4, %v7880_v51  ;;  %v7882_v44 = vpop.f32.mrb[1].mxu1 }
0x124b   :  { %v7899_v56 = vmul.f32 %v7895_v22, %v7882_v44  ;;  %v7884_v35 = vpop.f32.mrb[2].mxu1  ;;  %v11191_v44 = vld [vmem:[%s14466_s13 + $0x10] sm:$0xff]  }
0x124c   :  { %v7911_v53 = vadd.f32 %v7904_v36, %v7898_v27  ;;  %v7885_v52 = vpop.f32.mrb[3].mxu1  ;;  %v11190_v27 = vld [vmem:[%s14466_s13 + $0x8] sm:$0xff]   ;;  %v11193_v35 = vld [vmem:[%s14466_s13 + $0x20] sm:$0xff]  }
0x124d   :  { %v7912_v43 = vadd.f32 %v7908_v48, %v7899_v56  ;;  %v11189_v48 = vld [vmem:[%s14466_s13] sm:$0xff]   ;;  %v11192_v56 = vld [vmem:[%s14466_s13 + $0x18] sm:$0xff]   ;;  %v11195_v52 = vld [vmem:[%s14466_s13 + $0x30] sm:$0xff]  }
0x124e   :  { %v7915_v60 = vmul.f32 0.044715, %v7911_v53  ;;  %v7913_v7 = vmul.f32 0.5, %v7911_v53 }
0x124f   :  { %v7916_v17 = vmul.f32 0.044715, %v7912_v43  ;;  %v7914_v61 = vmul.f32 0.5, %v7912_v43 }
0x1250   :  { %v7917_v24 = vmul.f32 %v7915_v60, %v7911_v53 }
0x1251   :  { %v7918_v63 = vmul.f32 %v7916_v17, %v7912_v43  ;;  %v8020_v17 = vld [vmem:[%s14456_s15 + $0x12] ss:$0 sm:$0xff] }
0x1252   :  { %v7919_v19 = vmul.f32 %v7917_v24, %v7911_v53 }
0x1253   :  { %v7920_v12 = vmul.f32 %v7918_v63, %v7912_v43 }
0x1254   :  { %v7921_v15 = vadd.f32 %v7919_v19, %v7911_v53  ;;  %v11194_v53 = vld [vmem:[%s14466_s13 + $0x28] sm:$0xff]  }
0x1255   :  { %v7922_v5 = vadd.f32 %v7920_v12, %v7912_v43  ;;  %v11196_v43 = vld [vmem:[%s14466_s13 + $0x38] sm:$0xff]  }
0x1256   :  { %v7923_v20 = vmul.f32 0.7978846, %v7921_v15 }
0x1257   :  { %v7924_v34 = vmul.f32 0.7978846, %v7922_v5 }
0x1258   :  { %11245 = vtanh.f32 %v7923_v20 }
0x1259   :  { %11247 = vtanh.f32 %v7924_v34 }
0x1262   :  { %v11246_v18 = vpop.eup %11245 }
0x1263   :  { %v11248_v25 = vpop.eup %11247  ;;  %v7927_v41 = vadd.f32 1.0, %v11246_v18 }
0x1264   :  { %v7928_v9 = vadd.f32 1.0, %v11248_v25 }
0x1265   :  { %v7929_v3 = vmul.f32 %v7927_v41, %v7913_v7 }
0x1266   :  { %v7930_v47 = vmul.f32 %v7928_v9, %v7914_v61 }
0x1267   :  { %v7931_v16 = vpack.c.bf16 %v7929_v3, %v7929_v3 }
0x1268   :  { %v7932_v28 = vpack.c.bf16 %v7930_v47, %v7930_v47  ;;  %v11197_v47 = vld [vmem:[%s14467_s14] sm:$0xff]  }
0x1269   :  { %v7954_v50 = vsel %vm5332_vm13, %v7931_v16, 0  ;;  %v11198_v16 = vld [vmem:[%s14467_s14 + $0x8] sm:$0xff]  }
0x126a   :  { %9077 = vmatprep.subr.msk.bf16.mxu1 %vm5332_vm13, %v7932_v28  ;;  %v11199_v28 = vld [vmem:[%s14467_s14 + $0x10] sm:$0xff]  }
0x126b   :  { %7960 = vmatpush1.bf16.msra.mxu1 %v7954_v50  ;;  %v8199_v50 = vld [vmem:[%s14456_s15 + $0x13] ss:$0 sm:$0xff] }
0x126c   :  { %9356 = vmatprep.subr.bf16.mxu1 %v11173_v40  ;;  %v11200_v40 = vld [vmem:[%s14467_s14 + $0x18] sm:$0xff]  }
0x126e   :  { %9078 = vmatmul.mubr.msk.bf16.vlgmr.msra.gmra.mrb[4].mxu1 %vm5316_vm14, %v11171_v21 }
0x126f   :  { %8001 = vmatprep.mubr.bf16.mxu1 %v14503_v0  ;;  %9357 = vmatpush3.bf16.msra.mxu1 %v11174_v38  ;;  %v11181_v0 = vld [vmem:[%s14465_s12 + $0x60] sm:$0xff]  }
0x1270   :  { %9358 = vmatprep.subr.bf16.mxu1 %v11175_v33 }
0x1273   :  { %9359 = vmatpush3.bf16.msra.mxu1 %v11176_v42 }
0x1274   :  { %9360 = vmatprep.subr.bf16.mxu1 %v11177_v54 }
0x1276   :  { %9079 = vmatmul.mubr.msk.bf16.gmra.mrb[8].mxu1 %vm5316_vm14, %v11172_v29 }
0x1277   :  { %9361 = vmatpush3.bf16.msra.mxu1 %v11178_v55 }
0x1278   :  { %9362 = vmatprep.subr.bf16.mxu1 %v11179_v31 }
0x127b   :  { %9363 = vmatpush3.bf16.msra.mxu1 %v11180_v32 }
0x127c   :  { %9364 = vmatprep.subr.bf16.mxu1 %v11181_v0 }
0x127f   :  { %9365 = vmatpush3.bf16.msra.mxu1 %v11182_v30 }
0x1280   :  { %9366 = vmatprep.subr.bf16.mxu1 %v11183_v46 }
0x1283   :  { %9367 = vmatpush3.bf16.msra.mxu1 %v11184_v8 }
0x1284   :  { %9368 = vmatprep.subr.bf16.mxu1 %v11185_v58 }
0x1287   :  { %9369 = vmatpush3.bf16.msra.mxu1 %v11186_v57  ;;  %v8314_v57 = vld [vmem:[%s14456_s15 + $0x14] ss:$0 sm:$0xff] }
0x1288   :  { %9370 = vmatprep.subr.bf16.mxu1 %v11187_v14 }
0x128b   :  { %9371 = vmatpush3.bf16.msra.mxu1 %v11188_v26 }
0x128c   :  { %9598 = vmatprep.subr.bf16.mxu1 %v11274_v1 }
0x1341   :  { %v7993_v10 = vpop.f32.mrb[4].mxu1 }
0x1342   :  { %v7995_v6 = vpop.f32.mrb[5].mxu1 }
0x1343   :  { %v7997_v62 = vpop.f32.mrb[6].mxu1 }
0x1344   :  { %v8012_v2 = vmax.f32 %v7993_v10, %v7997_v62  ;;  %v7999_v11 = vpop.f32.mrb[7].mxu1 }
0x1345   :  { %v8013_v37 = vmax.f32 %v7995_v6, %v7999_v11 }
0x1349   :  { %v8003_v59 = vpop.f32.mrb[8].mxu1 }
0x134a   :  { %v8005_v49 = vpop.f32.mrb[9].mxu1 }
0x134b   :  { %v8007_v23 = vpop.f32.mrb[10].mxu1 }
0x134c   :  { %v8014_v13 = vmax.f32 %v8003_v59, %v8007_v23  ;;  %v8009_v45 = vpop.f32.mrb[11].mxu1 }
0x134d   :  { %v8015_v39 = vmax.f32 %v8005_v49, %v8009_v45 }
0x134e   :  { %v8016_v4 = vmax.f32 %v8012_v2, %v8014_v13 }
0x134f   :  { %v8017_v22 = vmax.f32 %v8013_v37, %v8015_v39 }
0x1350   :  { %v8018_v51 = vpack.c.bf16 %v8016_v4, %v8016_v4 }
0x1351   :  { %v8019_v36 = vpack.c.bf16 %v8017_v22, %v8017_v22 }
0x1353   :  { %8181 = vmatprep.mubr.bf16.mxu1 %v8019_v36 }
0x1354   :  { %8182 = vmatmul.mubr.bf16.vlgmr.msra.gmra.mrb[12].mxu1 %v8018_v51 }
0x1355   :  { %9614 = vmatprep.mubr.msk.bf16.mxu1 %vm11275_vm12, %v11274_v1  ;;  %9599 = vmatpush3.bf16.msra.mxu1 %v11189_v48 }
0x1356   :  { %9600 = vmatprep.subr.bf16.mxu1 %v11274_v1 }
0x1359   :  { %9601 = vmatpush3.bf16.msra.mxu1 %v11190_v27 }
0x135a   :  { %9602 = vmatprep.subr.bf16.mxu1 %v11274_v1 }
0x135d   :  { %9603 = vmatpush3.bf16.msra.mxu1 %v11191_v44 }
0x135e   :  { %9604 = vmatprep.subr.bf16.mxu1 %v11274_v1 }
0x1361   :  { %9605 = vmatpush3.bf16.msra.mxu1 %v11192_v56 }
0x1362   :  { %9606 = vmatprep.subr.bf16.mxu1 %v11274_v1 }
0x1365   :  { %9607 = vmatpush3.bf16.msra.mxu1 %v11193_v35 }
0x1366   :  { %9608 = vmatprep.subr.bf16.mxu1 %v11274_v1 }
0x1369   :  { %9609 = vmatpush3.bf16.msra.mxu1 %v11194_v53 }
0x136a   :  { %9610 = vmatprep.subr.bf16.mxu1 %v11274_v1 }
0x136d   :  { %9611 = vmatpush3.bf16.msra.mxu1 %v11195_v52 }
0x136e   :  { %9612 = vmatprep.subr.bf16.mxu1 %v11274_v1 }
0x1371   :  { %9613 = vmatpush3.bf16.msra.mxu1 %v11196_v43 }
0x1372   :  { %9618 = vmatprep.subr.bf16.mxu1 %v11274_v1 }
0x1427   :  { %v9372_v60 = vpop.f32.mrb[12].mxu1 }
0x1428   :  { %v9373_v24 = vpop.f32.mrb[13].mxu1 }
0x1429   :  { %v9374_v63 = vadd.f32 %v9373_v24, %v9372_v60  ;;  %v9375_v19 = vpop.f32.mrb[14].mxu1 }
0x142a   :  { %v9376_v12 = vpop.f32.mrb[15].mxu1 }
0x142b   :  { %v8184_v15 = vadd.f32 %v9374_v63, %v8020_v17 }
0x142d   :  { %v8190_v5 = vmul.f32 0.044715, %v8184_v15  ;;  %v8189_v41 = vmul.f32 0.5, %v8184_v15 }
0x142f   :  { %v8191_v20 = vmul.f32 %v8190_v5, %v8184_v15 }
0x1431   :  { %v8192_v34 = vmul.f32 %v8191_v20, %v8184_v15 }
0x1433   :  { %v8193_v18 = vadd.f32 %v8192_v34, %v8184_v15 }
0x1435   :  { %v8194_v25 = vmul.f32 0.7978846, %v8193_v18 }
0x1437   :  { %11249 = vtanh.f32 %v8194_v25 }
0x1441   :  { %v11250_v7 = vpop.eup %11249 }
0x1442   :  { %v8196_v61 = vadd.f32 1.0, %v11250_v7 }
0x1444   :  { %v8197_v9 = vmul.f32 %v8196_v61, %v8189_v41 }
0x1446   :  { %v8198_v3 = vpack.c.bf16 %v8197_v9, %v8197_v9 }
0x1448   :  { %9615 = vmatmul.mubr.bf16.vlgmr.msra.gmra.mrb[16].mxu1 %v8198_v3 }
0x1449   :  { %9626 = vmatprep.mubr.msk.bf16.mxu1 %vm11275_vm12, %v11274_v1  ;;  %9619 = vmatpush3.bf16.msra.mxu1 %v11197_v47 }
0x144a   :  { %9620 = vmatprep.subr.bf16.mxu1 %v11274_v1 }
0x144d   :  { %9621 = vmatpush3.bf16.msra.mxu1 %v11198_v16 }
0x144e   :  { %9622 = vmatprep.subr.bf16.mxu1 %v11274_v1 }
0x1451   :  { %9623 = vmatpush3.bf16.msra.mxu1 %v11199_v28 }
0x1452   :  { %9624 = vmatprep.subr.bf16.mxu1 %v11274_v1 }
0x1455   :  { %9625 = vmatpush3.bf16.msra.mxu1 %v11200_v40 }
0x151b   :  { %v8298_v21 = vpop.f32.mrb[16].mxu1 }
0x151c   :  { %v8299_v38 = vadd.f32 %v8298_v21, %v8199_v50  ;;  %v9616_v33 = vpop.f32.mrb[17].mxu1 }
0x151d   :  { %v8301_v42 = vpop.f32.mrb[18].mxu1 }
0x151e   :  { %v8305_v54 = vmul.f32 0.044715, %v8299_v38  ;;  %v9617_v29 = vpop.f32.mrb[19].mxu1  ;;  %v8304_v30 = vmul.f32 0.5, %v8299_v38 }
0x1520   :  { %v8306_v55 = vmul.f32 %v8305_v54, %v8299_v38 }
0x1522   :  { %v8307_v31 = vmul.f32 %v8306_v55, %v8299_v38 }
0x1524   :  { %v8308_v32 = vadd.f32 %v8307_v31, %v8299_v38 }
0x1526   :  { %v8309_v0 = vmul.f32 0.7978846, %v8308_v32 }
0x1528   :  { %11251 = vtanh.f32 %v8309_v0 }
0x1532   :  { %v11252_v1 = vpop.eup %11251 }
0x1533   :  { %v8311_v46 = vadd.f32 1.0, %v11252_v1 }
0x1535   :  { %v8312_v8 = vmul.f32 %v8311_v46, %v8304_v30 }
0x1537   :  { %v8313_v58 = vpack.c.bf16 %v8312_v8, %v8312_v8 }
0x1539   :  { %9627 = vmatmul.mubr.msk.bf16.vlgmr.msra.gmra.mrb[20].mxu1 %vm4887_vm10, %v8313_v58 }
0x160c   :  { %v8384_v14 = vpop.f32.mrb[20].mxu1 }
0x160d   :  { %v8385_v26 = vadd.f32 %v8384_v14, %v8314_v57  ;;  %v9628_v10 = vpop.f32.mrb[21].mxu1 }
0x160e   :  { %v8387_v6 = vpop.f32.mrb[22].mxu1 }
0x160f   :  { %v9109_v62 = vmul.f32 -1.442695, %v8385_v26  ;;  %v9629_v2 = vpop.f32.mrb[23].mxu1 }
0x1611   :  { %11253 = vpow2.f32 %v9109_v62 }
0x161b   :  { %v11254_v11 = vpop.eup %11253 }
0x161c   :  { %v8393_v37 = vadd.f32 1.0, %v11254_v11 }
0x161e   :  { %11255 = vrcp.f32 %v8393_v37 }
0x1628   :  { %v11256_v59 = vpop.eup %11255 }
0x1629   :  { %8397 = vst.msk [vmem:[%s14468_s16] sm:$0x3] %vm8396_vm15, %v11256_v59 }

</bundles_post_ra>
